<compile_context>
chip_gen: v7x
topology: tpu7x:2x2x1
jax: 0.10.0
libtpu: 0.0.40
codegen_flags: <defaults>
</compile_context>

<pallas_src>
import functools

import jax
import jax.numpy as jnp
from jax import lax
from jax.experimental import pallas as pl
from jax.experimental.pallas import tpu as pltpu

LRELU_SLOPE = 0.01     # nn.LeakyReLU() default negative_slope
BN_EPS = 1e-5          # nn.BatchNorm2d default eps
LANE = 128             # TPU lane width
FOLD1 = 4              # layer-1 row fold: 32 channels -> 128 lanes


def _round_up(x, m):
    return ((x + m - 1) // m) * m


def _cdiv(a, b):
    return -(-a // b)


def _vmem_capacity_bytes():
    # Generation-aware tiling: 128 MiB VMEM (v5e/v6e) vs 64 MiB (v7x).
    try:
        fn = getattr(pltpu, "get_tpu_info", None)
        if fn is not None:
            info = fn()
            for attr in ("vmem_capacity_bytes", "vmem_bytes", "vmem_size_bytes"):
                v = getattr(info, attr, None)
                if v:
                    return int(v)
    except Exception:
        pass
    return 64 << 20        # conservative fallback (v7x-sized)


_VMEM_CAP = _vmem_capacity_bytes()
if _VMEM_CAP >= (100 << 20):       # v5e / v6e (128 MiB physical VMEM)
    MAX_TILE_M = 2048
    VMEM_LIMIT = 64 << 20
else:                              # v7x (64 MiB physical VMEM)
    MAX_TILE_M = 1024
    VMEM_LIMIT = 32 << 20


def _choose_tile(m):
    # Balanced row tile: multiple of 16 (bf16 sublane packing), minimal padding.
    n = _cdiv(m, MAX_TILE_M)
    return _round_up(_cdiv(m, n), 16)


def _pad_rows(x, m_pad):
    m = x.shape[0]
    return x if m == m_pad else jnp.pad(x, ((0, m_pad - m), (0, 0)))


# ---------------------------------------------------------------------------
# Pallas kernels
# ---------------------------------------------------------------------------
def _mm_bias_lrelu_kernel(p_ref, w_ref, b_ref, o_ref):
    # y = patches @ W + b (f32 acc), LeakyReLU, bf16 store.  Used for layer 1
    # in its 4x-folded (lane-dense) form.
    y = jnp.dot(p_ref[...], w_ref[...], preferred_element_type=jnp.float32)
    y = y + b_ref[...]
    o_ref[...] = jnp.where(y >= 0, y, LRELU_SLOPE * y).astype(o_ref.dtype)


def _conv_stats_kernel(*refs, has_affine):
    # BN conv layer kernel:
    #   [optional prologue] h = lrelu(x * a + c)   (previous layer's deferred BN)
    #   y = h @ W + b  (f32 acc)  -> stored bf16
    #   per-channel sum / sum-of-squares accumulated across the inner grid axis
    #   (padded rows masked via the scalar-prefetched valid-row count).
    if has_affine:
        (cnt_ref, p_ref, a_ref, c_ref, w_ref, b_ref,
         y_ref, s_ref, sq_ref) = refs
    else:
        cnt_ref, p_ref, w_ref, b_ref, y_ref, s_ref, sq_ref = refs

    i = pl.program_id(1)

    @pl.when(i == 0)
    def _():
        s_ref[...] = jnp.zeros_like(s_ref)
        sq_ref[...] = jnp.zeros_like(sq_ref)

    x = p_ref[...]
    if has_affine:
        h = x.astype(jnp.float32) * a_ref[...] + c_ref[...]
        h = jnp.where(h >= 0, h, LRELU_SLOPE * h)
        x = h.astype(jnp.bfloat16)

    y = jnp.dot(x, w_ref[...], preferred_element_type=jnp.float32) + b_ref[...]
    y_ref[...] = y.astype(y_ref.dtype)

    tile_m = y.shape[0]
    row0 = (pl.program_id(0) * pl.num_programs(1) + i) * tile_m
    rows = row0 + lax.broadcasted_iota(jnp.int32, (tile_m, 1), 0)
    ym = jnp.where(rows < cnt_ref[0], y, 0.0)          # mask padded rows
    s_ref[...] += jnp.sum(ym, axis=0, keepdims=True)
    sq_ref[...] += jnp.sum(ym * ym, axis=0, keepdims=True)


def _affine_lrelu_matmul_kernel(y_ref, a_ref, c_ref, w_ref, b_ref, o_ref):
    # Fused tail: layer-4 deferred BN + LeakyReLU + Flatten + Linear
    # (output lane-padded to a 128 multiple for dense stores).
    h = y_ref[...].astype(jnp.float32) * a_ref[...] + c_ref[...]
    h = jnp.where(h >= 0, h, LRELU_SLOPE * h)
    o_ref[...] = (jnp.dot(h.astype(w_ref.dtype), w_ref[...],
                          preferred_element_type=jnp.float32)
                  + b_ref[...]).astype(o_ref.dtype)


# ---------------------------------------------------------------------------
# pallas_call wrappers
# ---------------------------------------------------------------------------
def _conv_lrelu_folded(patches, w_bd, b_fold, fold):
    # Layer 1: 4 patch rows folded into one row against a block-diagonal weight
    # -> 128-lane-dense stores, fewer MXU passes.  K=16 -> DMA/store bound.
    m, k = patches.shape
    kf = k * fold
    cf = w_bd.shape[1]
    mf = _cdiv(m, fold)
    tile = _choose_tile(mf)
    n_tiles = _cdiv(mf, tile)
    mf_pad = n_tiles * tile
    p = patches
    pad = mf_pad * fold - m
    if pad:
        p = jnp.pad(p, ((0, pad), (0, 0)))
    pf = p.reshape(mf_pad, kf).astype(jnp.bfloat16)
    out = pl.pallas_call(
        _mm_bias_lrelu_kernel,
        grid=(n_tiles,),
        out_shape=jax.ShapeDtypeStruct((mf_pad, cf), jnp.bfloat16),
        in_specs=[
            pl.BlockSpec((tile, kf), lambda i: (i, 0)),
            pl.BlockSpec((kf, cf), lambda i: (0, 0)),
            pl.BlockSpec((1, cf), lambda i: (0, 0)),
        ],
        out_specs=pl.BlockSpec((tile, cf), lambda i: (i, 0)),
        compiler_params=pltpu.CompilerParams(
            dimension_semantics=("parallel",),
            vmem_limit_bytes=VMEM_LIMIT),
    )(pf, w_bd, b_fold)
    # Unfold is a free row-major reshape; slice off padded rows.
    return out.reshape(mf_pad * fold, cf // fold)[:m]


def _conv_bn_stats(patches, w, b, affine=None):
    """BN conv layer: optional deferred-BN prologue, matmul, cross-tile stats.

    Returns (y[:m] bf16, channel_sum (1,C) f32, channel_sumsq (1,C) f32).
    """
    m, k = patches.shape
    cout = w.shape[1]
    tile = _choose_tile(m)
    n_tiles = _cdiv(m, tile)
    n_par = 2 if n_tiles >= 2 else 1       # engage both v7x TensorCores
    n_inner = _cdiv(n_tiles, n_par)
    m_pad = n_par * n_inner * tile
    p = _pad_rows(patches, m_pad).astype(jnp.bfloat16)
    cnt = jnp.full((1,), m, jnp.int32)     # valid rows (scalar prefetch)

    has_affine = affine is not None
    in_specs = [pl.BlockSpec((tile, k), lambda p_, i, c_: (p_ * n_inner + i, 0))]
    args = [p]
    if has_affine:
        a_k, c_k = affine
        in_specs += [pl.BlockSpec((1, k), lambda p_, i, c_: (0, 0)),
                     pl.BlockSpec((1, k), lambda p_, i, c_: (0, 0))]
        args += [a_k, c_k]
    in_specs += [pl.BlockSpec((k, cout), lambda p_, i, c_: (0, 0)),
                 pl.BlockSpec((1, cout), lambda p_, i, c_: (0, 0))]
    args += [w, b]

    y, s, sq = pl.pallas_call(
        functools.partial(_conv_stats_kernel, has_affine=has_affine),
        grid_spec=pltpu.PrefetchScalarGridSpec(
            num_scalar_prefetch=1,
            grid=(n_par, n_inner),
            in_specs=in_specs,
            out_specs=(
                pl.BlockSpec((tile, cout), lambda p_, i, c_: (p_ * n_inner + i, 0)),
                pl.BlockSpec((8, cout), lambda p_, i, c_: (p_, 0)),
                pl.BlockSpec((8, cout), lambda p_, i, c_: (p_, 0)),
            )),
        out_shape=(
            jax.ShapeDtypeStruct((m_pad, cout), jnp.bfloat16),
            jax.ShapeDtypeStruct((n_par * 8, cout), jnp.float32),
            jax.ShapeDtypeStruct((n_par * 8, cout), jnp.float32),
        ),
        compiler_params=pltpu.CompilerParams(
            dimension_semantics=("parallel", "arbitrary"),
            vmem_limit_bytes=VMEM_LIMIT),
    )(cnt, *args)
    # Each 8-row chunk block holds its partial sum replicated; combine chunks.
    s = s[0::8].sum(axis=0, keepdims=True)
    sq = sq[0::8].sum(axis=0, keepdims=True)
    return y[:m], s, sq


def _bn_lrelu_linear(y4, a4, c4, wl, bl):
    # Deferred BN4 + LeakyReLU + Flatten + Linear, lane-padded output.
    m, c = y4.shape
    nzp = wl.shape[1]
    tile = _choose_tile(m)
    n_tiles = _cdiv(m, tile)
    m_pad = n_tiles * tile
    y = _pad_rows(y4, m_pad)
    out = pl.pallas_call(
        _affine_lrelu_matmul_kernel,
        grid=(n_tiles,),
        out_shape=jax.ShapeDtypeStruct((m_pad, nzp), jnp.float32),
        in_specs=[
            pl.BlockSpec((tile, c), lambda i: (i, 0)),
            pl.BlockSpec((1, c), lambda i: (0, 0)),
            pl.BlockSpec((1, c), lambda i: (0, 0)),
            pl.BlockSpec((c, nzp), lambda i: (0, 0)),
            pl.BlockSpec((1, nzp), lambda i: (0, 0)),
        ],
        out_specs=pl.BlockSpec((tile, nzp), lambda i: (i, 0)),
        compiler_params=pltpu.CompilerParams(
            dimension_semantics=("parallel",),
            vmem_limit_bytes=VMEM_LIMIT),
    )(y, a4, c4, wl, bl)
    return out[:m]


# ---------------------------------------------------------------------------
# JAX glue: channel-last im2col (pad / strided-slice / stack / reshape only)
# and the tiny (1,C) BN-affine computation.
# ---------------------------------------------------------------------------
def _im2col_nhwc(x, k, stride, pad):
    # x: (B, H, W, C) -> patches (B*OH*OW, k*k*C), column ordering (kh, kw, cin).
    if pad:
        x = jnp.pad(x, ((0, 0), (pad, pad), (pad, pad), (0, 0)))
    b_, h, w, c = x.shape
    oh = (h - k) // stride + 1
    ow = (w - k) // stride + 1
    cols = []
    for kh in range(k):
        for kw in range(k):
            cols.append(x[:, kh:kh + stride * oh:stride, kw:kw + stride * ow:stride, :])
    p = jnp.stack(cols, axis=3)                     # (B, oh, ow, k*k, C)
    return p.reshape(b_ * oh * ow, k * k * c), oh, ow


def _bn_affine(s, sq, m, gamma, beta):
    # Training-mode (biased) full-batch statistics -> per-channel affine.
    inv_m = 1.0 / float(m)
    mean = s * inv_m
    var = jnp.maximum(sq * inv_m - mean * mean, 0.0)
    a = gamma * lax.rsqrt(var + BN_EPS)
    c = beta - mean * a
    return a, c                                     # (1, C) f32 each


# ---------------------------------------------------------------------------
# Parameters (PyTorch-style fan-in uniform init, pre-laid-out for the kernels)
# ---------------------------------------------------------------------------
def init_params(key, nz):
    def conv_wb(k, cout, cin, ksz):
        k1, k2 = jax.random.split(k)
        bound = 1.0 / float(cin * ksz * ksz) ** 0.5
        w = jax.random.uniform(k1, (cout, cin, ksz, ksz), jnp.float32, -bound, bound)
        b = jax.random.uniform(k2, (cout,), jnp.float32, -bound, bound)
        # PyTorch (Cout, Cin, kh, kw) -> (kh*kw*Cin, Cout), matching patch ordering.
        wm = w.transpose(2, 3, 1, 0).reshape(ksz * ksz * cin, cout)
        return wm, b.reshape(1, cout)

    keys = jax.random.split(key, 5)
    p = {}

    # Layer 1: expand to a 4x block-diagonal weight for lane-dense (128) stores.
    w1, b1 = conv_wb(keys[0], 32, 1, 4)              # (16, 32), (1, 32)
    w1bd = jnp.zeros((16 * FOLD1, 32 * FOLD1), jnp.float32)
    for j in range(FOLD1):
        w1bd = w1bd.at[j * 16:(j + 1) * 16, j * 32:(j + 1) * 32].set(w1)
    p["w1bd"] = w1bd.astype(jnp.bfloat16)
    p["b1f"] = jnp.tile(b1, (1, FOLD1))

    for name, spec, kk in (("2", (64, 32, 4), keys[1]),
                           ("3", (128, 64, 3), keys[2]),
                           ("4", (256, 128, 3), keys[3])):
        cout, cin, ksz = spec
        w, b = conv_wb(kk, cout, cin, ksz)
        p["w" + name] = w.astype(jnp.bfloat16)
        p["b" + name] = b
        p["g" + name] = jnp.ones((1, cout), jnp.float32)    # BN gamma init
        p["be" + name] = jnp.zeros((1, cout), jnp.float32)  # BN beta init

    # Linear(256 -> nz): transposed to (256, nzp), output dim zero-padded to a
    # lane multiple so the final stores are lane-dense; sliced back outside.
    k1, k2 = jax.random.split(keys[4])
    bound = 1.0 / float(256) ** 0.5
    wl = jax.random.uniform(k1, (nz, 256), jnp.float32, -bound, bound)
    bl = jax.random.uniform(k2, (nz,), jnp.float32, -bound, bound)
    nzp = max(LANE, _round_up(nz, LANE))
    p["wl"] = jnp.zeros((256, nzp), jnp.float32).at[:, :nz].set(wl.T).astype(jnp.bfloat16)
    p["bl"] = jnp.zeros((1, nzp), jnp.float32).at[:, :nz].set(bl)
    return p


# ---------------------------------------------------------------------------
# Forward pass (5 pallas_calls total)
# ---------------------------------------------------------------------------
def encoder_forward(params, x, *, nz):
    # x: (B, 1, 28, 28) float32 NCHW (PyTorch layout). Internally channel-last.
    x = jnp.transpose(x, (0, 2, 3, 1)).astype(jnp.float32)     # (B, 28, 28, 1)
    B = x.shape[0]

    # Layer 1: Conv(1->32, k4, s2) + LeakyReLU (folded x4 -> lane-dense stores).
    p1, oh1, ow1 = _im2col_nhwc(x, 4, 2, 0)                    # (B*169, 16)
    h1 = _conv_lrelu_folded(p1, params["w1bd"], params["b1f"], FOLD1)
    h1 = h1.reshape(B, oh1, ow1, 32)

    # Layer 2: Conv(32->64, k4, s2, p2); BN normalize deferred to layer 3.
    p2, oh2, ow2 = _im2col_nhwc(h1, 4, 2, 2)                   # (B*49, 512)
    y2, s2, sq2 = _conv_bn_stats(p2, params["w2"], params["b2"])
    m2 = B * oh2 * ow2
    a2, c2 = _bn_affine(s2, sq2, m2, params["g2"], params["be2"])
    y2 = y2.reshape(B, oh2, ow2, 64)

    # Layer 3: Conv(64->128, k3, s2) with in-kernel prologue = BN2 + LeakyReLU.
    p3, oh3, ow3 = _im2col_nhwc(y2, 3, 2, 0)                   # (B*9, 576) raw y2
    a2k = jnp.tile(a2, (1, 9))
    c2k = jnp.tile(c2, (1, 9))
    y3, s3, sq3 = _conv_bn_stats(p3, params["w3"], params["b3"], affine=(a2k, c2k))
    m3 = B * oh3 * ow3
    a3, c3 = _bn_affine(s3, sq3, m3, params["g3"], params["be3"])

    # Layer 4 (k3, s1 on a 3x3 map): im2col is a pure reshape; in-kernel
    # prologue = BN3 + LeakyReLU; BN4 normalize deferred to the linear kernel.
    p4 = y3.reshape(B, oh3 * ow3 * 128)                        # (B, 1152)
    a3k = jnp.tile(a3, (1, oh3 * ow3))
    c3k = jnp.tile(c3, (1, oh3 * ow3))
    y4, s4, sq4 = _conv_bn_stats(p4, params["w4"], params["b4"], affine=(a3k, c3k))
    a4, c4 = _bn_affine(s4, sq4, B, params["g4"], params["be4"])

    # BN4 + LeakyReLU + Flatten + Linear(256 -> nz), fused.
    out = _bn_lrelu_linear(y4, a4, c4, params["wl"], params["bl"])
    return out[:, :nz]


if __name__ == "__main__":
    key = jax.random.PRNGKey(0)
    kx, kp = jax.random.split(key)
    B, nz = 4, 16
    # MNIST-shaped input: the architecture requires 28x28 (Flatten -> 256).
    x = jax.random.normal(kx, (B, 1, 28, 28), jnp.float32)
    params = init_params(kp, nz)

    fwd = jax.jit(functools.partial(encoder_forward, nz=nz))
    out = jax.block_until_ready(fwd(params, x))
    assert out.shape == (B, nz), out.shape
    assert bool(jnp.all(jnp.isfinite(out)))
    print("KERNEL_OK")
</pallas_src>

<mosaic_0001>
module attributes {stable_mosaic.version = 11 : i64} {
  func.func @_mm_bias_lrelu_kernel(%arg0: i32, %arg1: memref<176x64xbf16, #tpu.memory_space<vmem>>, %arg2: memref<64x128xbf16, #tpu.memory_space<vmem>>, %arg3: memref<1x128xf32, #tpu.memory_space<vmem>>, %arg4: memref<176x128xbf16, #tpu.memory_space<vmem>>) attributes {dimension_semantics = [#tpu.dimension_semantics<parallel>], iteration_bounds = array<i64: 1>, scalar_prefetch = 0 : i64, scratch_operands = 0 : i64, tpu.core_type = #tpu.core_type<tc>, window_params = [{transform_indices = @transform_0, window_bounds = array<i64: 176, 64>}, {pipeline_mode = #tpu.pipeline_mode<synchronous>, transform_indices = @transform_1, window_bounds = array<i64: 64, 128>}, {pipeline_mode = #tpu.pipeline_mode<synchronous>, transform_indices = @transform_2, window_bounds = array<i64: 1, 128>}, {transform_indices = @transform_3, window_bounds = array<i64: 176, 128>}]} {
    %c0 = arith.constant 0 : index
    %c0_0 = arith.constant 0 : index
    %0 = vector.load %arg1[%c0, %c0_0] : memref<176x64xbf16, #tpu.memory_space<vmem>>, vector<176x64xbf16>
    %c0_1 = arith.constant 0 : index
    %c0_2 = arith.constant 0 : index
    %1 = vector.load %arg2[%c0_1, %c0_2] : memref<64x128xbf16, #tpu.memory_space<vmem>>, vector<64x128xbf16>
    %cst = arith.constant dense<0.000000e+00> : vector<176x128xf32>
    %2 = tpu.matmul %0, %1, %cst {dimension_numbers = #tpu.dot_dimension_numbers<[1], [0], [0], [1], [0, 0, 1, 1], [], []>} : vector<176x64xbf16>, vector<64x128xbf16>, vector<176x128xf32> -> vector<176x128xf32>
    %c0_3 = arith.constant 0 : index
    %c0_4 = arith.constant 0 : index
    %3 = vector.load %arg3[%c0_3, %c0_4] : memref<1x128xf32, #tpu.memory_space<vmem>>, vector<1x128xf32>
    %4 = vector.broadcast %3 : vector<1x128xf32> to vector<176x128xf32>
    %5 = arith.addf %2, %4 : vector<176x128xf32>
    %cst_5 = arith.constant 0.000000e+00 : f32
    %6 = vector.broadcast %cst_5 : f32 to vector<176x128xf32>
    %7 = arith.cmpf oge, %5, %6 : vector<176x128xf32>
    %cst_6 = arith.constant 0.00999999977 : f32
    %8 = vector.broadcast %cst_6 : f32 to vector<176x128xf32>
    %9 = arith.mulf %8, %5 : vector<176x128xf32>
    %10 = arith.select %7, %5, %9 : vector<176x128xi1>, vector<176x128xf32>
    %11 = arith.truncf %10 : vector<176x128xf32> to vector<176x128xbf16>
    %c0_7 = arith.constant 0 : index
    %c0_8 = arith.constant 0 : index
    %12 = vector.load %arg4[%c0_7, %c0_8] : memref<176x128xbf16, #tpu.memory_space<vmem>>, vector<176x128xbf16>
    tpu.vector_store %arg4[%c0_7, %c0_8], %11 {strides = array<i32>} : memref<176x128xbf16, #tpu.memory_space<vmem>>, vector<176x128xbf16>,
    return
  }
  func.func @transform_0(%arg0: i32) -> (i32, i32) {
    %c0_i32 = arith.constant 0 : i32
    %c0_i32_0 = arith.constant 0 : i32
    return %arg0, %c0_i32 : i32, i32
  }
  func.func @transform_1(%arg0: i32) -> (i32, i32) {
    %c0_i32 = arith.constant 0 : i32
    %c0_i32_0 = arith.constant 0 : i32
    %c0_i32_1 = arith.constant 0 : i32
    return %c0_i32, %c0_i32_0 : i32, i32
  }
  func.func @transform_2(%arg0: i32) -> (i32, i32) {
    %c0_i32 = arith.constant 0 : i32
    %c0_i32_0 = arith.constant 0 : i32
    %c0_i32_1 = arith.constant 0 : i32
    return %c0_i32, %c0_i32_0 : i32, i32
  }
  func.func @transform_3(%arg0: i32) -> (i32, i32) {
    %c0_i32 = arith.constant 0 : i32
    %c0_i32_0 = arith.constant 0 : i32
    return %arg0, %c0_i32 : i32, i32
  }
}

module attributes {stable_mosaic.version = 11 : i64} {
  func.func @_conv_stats_kernel(%arg0: i32, %arg1: i32, %arg2: memref<1xi32, #tpu.memory_space<smem>>, %arg3: memref<208x512xbf16, #tpu.memory_space<vmem>>, %arg4: memref<512x64xbf16, #tpu.memory_space<vmem>>, %arg5: memref<1x64xf32, #tpu.memory_space<vmem>>, %arg6: memref<208x64xbf16, #tpu.memory_space<vmem>>, %arg7: memref<8x64xf32, #tpu.memory_space<vmem>>, %arg8: memref<8x64xf32, #tpu.memory_space<vmem>>) attributes {dimension_semantics = [#tpu.dimension_semantics<parallel>, #tpu.dimension_semantics<arbitrary>], iteration_bounds = array<i64: 1, 1>, scalar_prefetch = 1 : i64, scratch_operands = 0 : i64, tpu.core_type = #tpu.core_type<tc>, window_params = [{transform_indices = @transform_0, window_bounds = array<i64: 208, 512>}, {pipeline_mode = #tpu.pipeline_mode<synchronous>, transform_indices = @transform_1, window_bounds = array<i64: 512, 64>}, {pipeline_mode = #tpu.pipeline_mode<synchronous>, transform_indices = @transform_2, window_bounds = array<i64: 1, 64>}, {transform_indices = @transform_3, window_bounds = array<i64: 208, 64>}, {transform_indices = @transform_4, window_bounds = array<i64: 8, 64>}, {transform_indices = @transform_5, window_bounds = array<i64: 8, 64>}]} {
    %c0_i32 = arith.constant 0 : i32
    %0 = arith.cmpi eq, %arg1, %c0_i32 : i32
    %1 = arith.extui %0 : i1 to i32
    %c0_i32_0 = arith.constant 0 : i32
    %2 = arith.cmpi ne, %1, %c0_i32_0 : i32
    scf.if %2 {
      %cst_20 = arith.constant 0.000000e+00 : f32
      %37 = vector.broadcast %cst_20 : f32 to vector<8x64xf32>
      %c0_21 = arith.constant 0 : index
      %c0_22 = arith.constant 0 : index
      %38 = vector.load %arg7[%c0_21, %c0_22] : memref<8x64xf32, #tpu.memory_space<vmem>>, vector<8x64xf32>
      tpu.vector_store %arg7[%c0_21, %c0_22], %37 {strides = array<i32>} : memref<8x64xf32, #tpu.memory_space<vmem>>, vector<8x64xf32>,
      %cst_23 = arith.constant 0.000000e+00 : f32
      %39 = vector.broadcast %cst_23 : f32 to vector<8x64xf32>
      %c0_24 = arith.constant 0 : index
      %c0_25 = arith.constant 0 : index
      %40 = vector.load %arg8[%c0_24, %c0_25] : memref<8x64xf32, #tpu.memory_space<vmem>>, vector<8x64xf32>
      tpu.vector_store %arg8[%c0_24, %c0_25], %39 {strides = array<i32>} : memref<8x64xf32, #tpu.memory_space<vmem>>, vector<8x64xf32>,
    } else {
    }
    %c0 = arith.constant 0 : index
    %c0_1 = arith.constant 0 : index
    %3 = vector.load %arg3[%c0, %c0_1] : memref<208x512xbf16, #tpu.memory_space<vmem>>, vector<208x512xbf16>
    %c0_2 = arith.constant 0 : index
    %c0_3 = arith.constant 0 : index
    %4 = vector.load %arg4[%c0_2, %c0_3] : memref<512x64xbf16, #tpu.memory_space<vmem>>, vector<512x64xbf16>
    %cst = arith.constant dense<0.000000e+00> : vector<208x64xf32>
    %5 = tpu.matmul %3, %4, %cst {dimension_numbers = #tpu.dot_dimension_numbers<[1], [0], [0], [1], [0, 0, 1, 1], [], []>} : vector<208x512xbf16>, vector<512x64xbf16>, vector<208x64xf32> -> vector<208x64xf32>
    %c0_4 = arith.constant 0 : index
    %c0_5 = arith.constant 0 : index
    %6 = vector.load %arg5[%c0_4, %c0_5] : memref<1x64xf32, #tpu.memory_space<vmem>>, vector<1x64xf32>
    %7 = vector.broadcast %6 : vector<1x64xf32> to vector<208x64xf32>
    %8 = arith.addf %5, %7 : vector<208x64xf32>
    %9 = arith.truncf %8 : vector<208x64xf32> to vector<208x64xbf16>
    %c0_6 = arith.constant 0 : index
    %c0_7 = arith.constant 0 : index
    %10 = vector.load %arg6[%c0_6, %c0_7] : memref<208x64xbf16, #tpu.memory_space<vmem>>, vector<208x64xbf16>
    tpu.vector_store %arg6[%c0_6, %c0_7], %9 {strides = array<i32>} : memref<208x64xbf16, #tpu.memory_space<vmem>>, vector<208x64xbf16>,
    %c1_i32 = arith.constant 1 : i32
    %11 = arith.muli %arg0, %c1_i32 : i32
    %12 = arith.addi %11, %arg1 : i32
    %c208_i32 = arith.constant 208 : i32
    %13 = arith.muli %12, %c208_i32 : i32
    %14 = tpu.iota {dimensions = array<i32: 0>} : vector<208x1xi32>
    %15 = vector.broadcast %13 : i32 to vector<208x1xi32>
    %16 = arith.addi %15, %14 : vector<208x1xi32>
    %c0_8 = arith.constant 0 : index
    %17 = memref.load %arg2[%c0_8] : memref<1xi32, #tpu.memory_space<smem>>
    %18 = vector.broadcast %17 : i32 to vector<208x1xi32>
    %19 = arith.cmpi slt, %16, %18 : vector<208x1xi32>
    %cst_9 = arith.constant 0.000000e+00 : f32
    %20 = vector.shape_cast %19 : vector<208x1xi1> to vector<208x1xi1>
    %21 = vector.broadcast %20 : vector<208x1xi1> to vector<208x64xi1>
    %22 = vector.broadcast %cst_9 : f32 to vector<208x64xf32>
    %23 = arith.select %21, %8, %22 : vector<208x64xi1>, vector<208x64xf32>
    %c0_10 = arith.constant 0 : index
    %c0_11 = arith.constant 0 : index
    %24 = vector.load %arg7[%c0_10, %c0_11] : memref<8x64xf32, #tpu.memory_space<vmem>>, vector<8x64xf32>
    %cst_12 = arith.constant dense<0.000000e+00> : vector<64xf32>
    %25 = vector.multi_reduction <add>, %23, %cst_12 [0] : vector<208x64xf32> to vector<64xf32>
    %26 = vector.shape_cast %25 : vector<64xf32> to vector<1x64xf32>
    %27 = vector.broadcast %26 : vector<1x64xf32> to vector<8x64xf32>
    %28 = arith.addf %24, %27 : vector<8x64xf32>
    %c0_13 = arith.constant 0 : index
    %c0_14 = arith.constant 0 : index
    %29 = vector.load %arg7[%c0_13, %c0_14] : memref<8x64xf32, #tpu.memory_space<vmem>>, vector<8x64xf32>
    tpu.vector_store %arg7[%c0_13, %c0_14], %28 {strides = array<i32>} : memref<8x64xf32, #tpu.memory_space<vmem>>, vector<8x64xf32>,
    %c0_15 = arith.constant 0 : index
    %c0_16 = arith.constant 0 : index
    %30 = vector.load %arg8[%c0_15, %c0_16] : memref<8x64xf32, #tpu.memory_space<vmem>>, vector<8x64xf32>
    %31 = arith.mulf %23, %23 : vector<208x64xf32>
    %cst_17 = arith.constant dense<0.000000e+00> : vector<64xf32>
    %32 = vector.multi_reduction <add>, %31, %cst_17 [0] : vector<208x64xf32> to vector<64xf32>
    %33 = vector.shape_cast %32 : vector<64xf32> to vector<1x64xf32>
    %34 = vector.broadcast %33 : vector<1x64xf32> to vector<8x64xf32>
    %35 = arith.addf %30, %34 : vector<8x64xf32>
    %c0_18 = arith.constant 0 : index
    %c0_19 = arith.constant 0 : index
    %36 = vector.load %arg8[%c0_18, %c0_19] : memref<8x64xf32, #tpu.memory_space<vmem>>, vector<8x64xf32>
    tpu.vector_store %arg8[%c0_18, %c0_19], %35 {strides = array<i32>} : memref<8x64xf32, #tpu.memory_space<vmem>>, vector<8x64xf32>,
    return
  }
  func.func @transform_0(%arg0: i32, %arg1: i32, %arg2: memref<1xi32, #tpu.memory_space<smem>>) -> (i32, i32) {
    %c1_i32 = arith.constant 1 : i32
    %0 = arith.muli %arg0, %c1_i32 : i32
    %1 = arith.addi %0, %arg1 : i32
    %c0_i32 = arith.constant 0 : i32
    %c0_i32_0 = arith.constant 0 : i32
    return %1, %c0_i32 : i32, i32
  }
  func.func @transform_1(%arg0: i32, %arg1: i32, %arg2: memref<1xi32, #tpu.memory_space<smem>>) -> (i32, i32) {
    %c0_i32 = arith.constant 0 : i32
    %c0_i32_0 = arith.constant 0 : i32
    %c0_i32_1 = arith.constant 0 : i32
    return %c0_i32, %c0_i32_0 : i32, i32
  }
  func.func @transform_2(%arg0: i32, %arg1: i32, %arg2: memref<1xi32, #tpu.memory_space<smem>>) -> (i32, i32) {
    %c0_i32 = arith.constant 0 : i32
    %c0_i32_0 = arith.constant 0 : i32
    %c0_i32_1 = arith.constant 0 : i32
    return %c0_i32, %c0_i32_0 : i32, i32
  }
  func.func @transform_3(%arg0: i32, %arg1: i32, %arg2: memref<1xi32, #tpu.memory_space<smem>>) -> (i32, i32) {
    %c1_i32 = arith.constant 1 : i32
    %0 = arith.muli %arg0, %c1_i32 : i32
    %1 = arith.addi %0, %arg1 : i32
    %c0_i32 = arith.constant 0 : i32
    %c0_i32_0 = arith.constant 0 : i32
    return %1, %c0_i32 : i32, i32
  }
  func.func @transform_4(%arg0: i32, %arg1: i32, %arg2: memref<1xi32, #tpu.memory_space<smem>>) -> (i32, i32) {
    %c0_i32 = arith.constant 0 : i32
    %c0_i32_0 = arith.constant 0 : i32
    return %arg0, %c0_i32 : i32, i32
  }
  func.func @transform_5(%arg0: i32, %arg1: i32, %arg2: memref<1xi32, #tpu.memory_space<smem>>) -> (i32, i32) {
    %c0_i32 = arith.constant 0 : i32
    %c0_i32_0 = arith.constant 0 : i32
    return %arg0, %c0_i32 : i32, i32
  }
}

module attributes {stable_mosaic.version = 11 : i64} {
  func.func @_conv_stats_kernel(%arg0: i32, %arg1: i32, %arg2: memref<1xi32, #tpu.memory_space<smem>>, %arg3: memref<48x576xbf16, #tpu.memory_space<vmem>>, %arg4: memref<1x576xf32, #tpu.memory_space<vmem>>, %arg5: memref<1x576xf32, #tpu.memory_space<vmem>>, %arg6: memref<576x128xbf16, #tpu.memory_space<vmem>>, %arg7: memref<1x128xf32, #tpu.memory_space<vmem>>, %arg8: memref<48x128xbf16, #tpu.memory_space<vmem>>, %arg9: memref<8x128xf32, #tpu.memory_space<vmem>>, %arg10: memref<8x128xf32, #tpu.memory_space<vmem>>) attributes {dimension_semantics = [#tpu.dimension_semantics<parallel>, #tpu.dimension_semantics<arbitrary>], iteration_bounds = array<i64: 1, 1>, scalar_prefetch = 1 : i64, scratch_operands = 0 : i64, tpu.core_type = #tpu.core_type<tc>, window_params = [{transform_indices = @transform_0, window_bounds = array<i64: 48, 576>}, {pipeline_mode = #tpu.pipeline_mode<synchronous>, transform_indices = @transform_1, window_bounds = array<i64: 1, 576>}, {pipeline_mode = #tpu.pipeline_mode<synchronous>, transform_indices = @transform_2, window_bounds = array<i64: 1, 576>}, {pipeline_mode = #tpu.pipeline_mode<synchronous>, transform_indices = @transform_3, window_bounds = array<i64: 576, 128>}, {pipeline_mode = #tpu.pipeline_mode<synchronous>, transform_indices = @transform_4, window_bounds = array<i64: 1, 128>}, {transform_indices = @transform_5, window_bounds = array<i64: 48, 128>}, {transform_indices = @transform_6, window_bounds = array<i64: 8, 128>}, {transform_indices = @transform_7, window_bounds = array<i64: 8, 128>}]} {
    %c0_i32 = arith.constant 0 : i32
    %0 = arith.cmpi eq, %arg1, %c0_i32 : i32
    %1 = arith.extui %0 : i1 to i32
    %c0_i32_0 = arith.constant 0 : i32
    %2 = arith.cmpi ne, %1, %c0_i32_0 : i32
    scf.if %2 {
      %cst_26 = arith.constant 0.000000e+00 : f32
      %50 = vector.broadcast %cst_26 : f32 to vector<8x128xf32>
      %c0_27 = arith.constant 0 : index
      %c0_28 = arith.constant 0 : index
      %51 = vector.load %arg9[%c0_27, %c0_28] : memref<8x128xf32, #tpu.memory_space<vmem>>, vector<8x128xf32>
      tpu.vector_store %arg9[%c0_27, %c0_28], %50 {strides = array<i32>} : memref<8x128xf32, #tpu.memory_space<vmem>>, vector<8x128xf32>,
      %cst_29 = arith.constant 0.000000e+00 : f32
      %52 = vector.broadcast %cst_29 : f32 to vector<8x128xf32>
      %c0_30 = arith.constant 0 : index
      %c0_31 = arith.constant 0 : index
      %53 = vector.load %arg10[%c0_30, %c0_31] : memref<8x128xf32, #tpu.memory_space<vmem>>, vector<8x128xf32>
      tpu.vector_store %arg10[%c0_30, %c0_31], %52 {strides = array<i32>} : memref<8x128xf32, #tpu.memory_space<vmem>>, vector<8x128xf32>,
    } else {
    }
    %c0 = arith.constant 0 : index
    %c0_1 = arith.constant 0 : index
    %3 = vector.load %arg3[%c0, %c0_1] : memref<48x576xbf16, #tpu.memory_space<vmem>>, vector<48x576xbf16>
    %4 = arith.extf %3 : vector<48x576xbf16> to vector<48x576xf32>
    %c0_2 = arith.constant 0 : index
    %c0_3 = arith.constant 0 : index
    %5 = vector.load %arg4[%c0_2, %c0_3] : memref<1x576xf32, #tpu.memory_space<vmem>>, vector<1x576xf32>
    %6 = vector.broadcast %5 : vector<1x576xf32> to vector<48x576xf32>
    %7 = arith.mulf %4, %6 : vector<48x576xf32>
    %c0_4 = arith.constant 0 : index
    %c0_5 = arith.constant 0 : index
    %8 = vector.load %arg5[%c0_4, %c0_5] : memref<1x576xf32, #tpu.memory_space<vmem>>, vector<1x576xf32>
    %9 = vector.broadcast %8 : vector<1x576xf32> to vector<48x576xf32>
    %10 = arith.addf %7, %9 : vector<48x576xf32>
    %cst = arith.constant 0.000000e+00 : f32
    %11 = vector.broadcast %cst : f32 to vector<48x576xf32>
    %12 = arith.cmpf oge, %10, %11 : vector<48x576xf32>
    %cst_6 = arith.constant 0.00999999977 : f32
    %13 = vector.broadcast %cst_6 : f32 to vector<48x576xf32>
    %14 = arith.mulf %13, %10 : vector<48x576xf32>
    %15 = arith.select %12, %10, %14 : vector<48x576xi1>, vector<48x576xf32>
    %16 = arith.truncf %15 : vector<48x576xf32> to vector<48x576xbf16>
    %c0_7 = arith.constant 0 : index
    %c0_8 = arith.constant 0 : index
    %17 = vector.load %arg6[%c0_7, %c0_8] : memref<576x128xbf16, #tpu.memory_space<vmem>>, vector<576x128xbf16>
    %cst_9 = arith.constant dense<0.000000e+00> : vector<48x128xf32>
    %18 = tpu.matmul %16, %17, %cst_9 {dimension_numbers = #tpu.dot_dimension_numbers<[1], [0], [0], [1], [0, 0, 1, 1], [], []>} : vector<48x576xbf16>, vector<576x128xbf16>, vector<48x128xf32> -> vector<48x128xf32>
    %c0_10 = arith.constant 0 : index
    %c0_11 = arith.constant 0 : index
    %19 = vector.load %arg7[%c0_10, %c0_11] : memref<1x128xf32, #tpu.memory_space<vmem>>, vector<1x128xf32>
    %20 = vector.broadcast %19 : vector<1x128xf32> to vector<48x128xf32>
    %21 = arith.addf %18, %20 : vector<48x128xf32>
    %22 = arith.truncf %21 : vector<48x128xf32> to vector<48x128xbf16>
    %c0_12 = arith.constant 0 : index
    %c0_13 = arith.constant 0 : index
    %23 = vector.load %arg8[%c0_12, %c0_13] : memref<48x128xbf16, #tpu.memory_space<vmem>>, vector<48x128xbf16>
    tpu.vector_store %arg8[%c0_12, %c0_13], %22 {strides = array<i32>} : memref<48x128xbf16, #tpu.memory_space<vmem>>, vector<48x128xbf16>,
    %c1_i32 = arith.constant 1 : i32
    %24 = arith.muli %arg0, %c1_i32 : i32
    %25 = arith.addi %24, %arg1 : i32
    %c48_i32 = arith.constant 48 : i32
    %26 = arith.muli %25, %c48_i32 : i32
    %27 = tpu.iota {dimensions = array<i32: 0>} : vector<48x1xi32>
    %28 = vector.broadcast %26 : i32 to vector<48x1xi32>
    %29 = arith.addi %28, %27 : vector<48x1xi32>
    %c0_14 = arith.constant 0 : index
    %30 = memref.load %arg2[%c0_14] : memref<1xi32, #tpu.memory_space<smem>>
    %31 = vector.broadcast %30 : i32 to vector<48x1xi32>
    %32 = arith.cmpi slt, %29, %31 : vector<48x1xi32>
    %cst_15 = arith.constant 0.000000e+00 : f32
    %33 = vector.shape_cast %32 : vector<48x1xi1> to vector<48x1xi1>
    %34 = vector.broadcast %33 : vector<48x1xi1> to vector<48x128xi1>
    %35 = vector.broadcast %cst_15 : f32 to vector<48x128xf32>
    %36 = arith.select %34, %21, %35 : vector<48x128xi1>, vector<48x128xf32>
    %c0_16 = arith.constant 0 : index
    %c0_17 = arith.constant 0 : index
    %37 = vector.load %arg9[%c0_16, %c0_17] : memref<8x128xf32, #tpu.memory_space<vmem>>, vector<8x128xf32>
    %cst_18 = arith.constant dense<0.000000e+00> : vector<128xf32>
    %38 = vector.multi_reduction <add>, %36, %cst_18 [0] : vector<48x128xf32> to vector<128xf32>
    %39 = vector.shape_cast %38 : vector<128xf32> to vector<1x128xf32>
    %40 = vector.broadcast %39 : vector<1x128xf32> to vector<8x128xf32>
    %41 = arith.addf %37, %40 : vector<8x128xf32>
    %c0_19 = arith.constant 0 : index
    %c0_20 = arith.constant 0 : index
    %42 = vector.load %arg9[%c0_19, %c0_20] : memref<8x128xf32, #tpu.memory_space<vmem>>, vector<8x128xf32>
    tpu.vector_store %arg9[%c0_19, %c0_20], %41 {strides = array<i32>} : memref<8x128xf32, #tpu.memory_space<vmem>>, vector<8x128xf32>,
    %c0_21 = arith.constant 0 : index
    %c0_22 = arith.constant 0 : index
    %43 = vector.load %arg10[%c0_21, %c0_22] : memref<8x128xf32, #tpu.memory_space<vmem>>, vector<8x128xf32>
    %44 = arith.mulf %36, %36 : vector<48x128xf32>
    %cst_23 = arith.constant dense<0.000000e+00> : vector<128xf32>
    %45 = vector.multi_reduction <add>, %44, %cst_23 [0] : vector<48x128xf32> to vector<128xf32>
    %46 = vector.shape_cast %45 : vector<128xf32> to vector<1x128xf32>
    %47 = vector.broadcast %46 : vector<1x128xf32> to vector<8x128xf32>
    %48 = arith.addf %43, %47 : vector<8x128xf32>
    %c0_24 = arith.constant 0 : index
    %c0_25 = arith.constant 0 : index
    %49 = vector.load %arg10[%c0_24, %c0_25] : memref<8x128xf32, #tpu.memory_space<vmem>>, vector<8x128xf32>
    tpu.vector_store %arg10[%c0_24, %c0_25], %48 {strides = array<i32>} : memref<8x128xf32, #tpu.memory_space<vmem>>, vector<8x128xf32>,
    return
  }
  func.func @transform_0(%arg0: i32, %arg1: i32, %arg2: memref<1xi32, #tpu.memory_space<smem>>) -> (i32, i32) {
    %c1_i32 = arith.constant 1 : i32
    %0 = arith.muli %arg0, %c1_i32 : i32
    %1 = arith.addi %0, %arg1 : i32
    %c0_i32 = arith.constant 0 : i32
    %c0_i32_0 = arith.constant 0 : i32
    return %1, %c0_i32 : i32, i32
  }
  func.func @transform_1(%arg0: i32, %arg1: i32, %arg2: memref<1xi32, #tpu.memory_space<smem>>) -> (i32, i32) {
    %c0_i32 = arith.constant 0 : i32
    %c0_i32_0 = arith.constant 0 : i32
    %c0_i32_1 = arith.constant 0 : i32
    return %c0_i32, %c0_i32_0 : i32, i32
  }
  func.func @transform_2(%arg0: i32, %arg1: i32, %arg2: memref<1xi32, #tpu.memory_space<smem>>) -> (i32, i32) {
    %c0_i32 = arith.constant 0 : i32
    %c0_i32_0 = arith.constant 0 : i32
    %c0_i32_1 = arith.constant 0 : i32
    return %c0_i32, %c0_i32_0 : i32, i32
  }
  func.func @transform_3(%arg0: i32, %arg1: i32, %arg2: memref<1xi32, #tpu.memory_space<smem>>) -> (i32, i32) {
    %c0_i32 = arith.constant 0 : i32
    %c0_i32_0 = arith.constant 0 : i32
    %c0_i32_1 = arith.constant 0 : i32
    return %c0_i32, %c0_i32_0 : i32, i32
  }
  func.func @transform_4(%arg0: i32, %arg1: i32, %arg2: memref<1xi32, #tpu.memory_space<smem>>) -> (i32, i32) {
    %c0_i32 = arith.constant 0 : i32
    %c0_i32_0 = arith.constant 0 : i32
    %c0_i32_1 = arith.constant 0 : i32
    return %c0_i32, %c0_i32_0 : i32, i32
  }
  func.func @transform_5(%arg0: i32, %arg1: i32, %arg2: memref<1xi32, #tpu.memory_space<smem>>) -> (i32, i32) {
    %c1_i32 = arith.constant 1 : i32
    %0 = arith.muli %arg0, %c1_i32 : i32
    %1 = arith.addi %0, %arg1 : i32
    %c0_i32 = arith.constant 0 : i32
    %c0_i32_0 = arith.constant 0 : i32
    return %1, %c0_i32 : i32, i32
  }
  func.func @transform_6(%arg0: i32, %arg1: i32, %arg2: memref<1xi32, #tpu.memory_space<smem>>) -> (i32, i32) {
    %c0_i32 = arith.constant 0 : i32
    %c0_i32_0 = arith.constant 0 : i32
    return %arg0, %c0_i32 : i32, i32
  }
  func.func @transform_7(%arg0: i32, %arg1: i32, %arg2: memref<1xi32, #tpu.memory_space<smem>>) -> (i32, i32) {
    %c0_i32 = arith.constant 0 : i32
    %c0_i32_0 = arith.constant 0 : i32
    return %arg0, %c0_i32 : i32, i32
  }
}

module attributes {stable_mosaic.version = 11 : i64} {
  func.func @_conv_stats_kernel(%arg0: i32, %arg1: i32, %arg2: memref<1xi32, #tpu.memory_space<smem>>, %arg3: memref<16x1152xbf16, #tpu.memory_space<vmem>>, %arg4: memref<1x1152xf32, #tpu.memory_space<vmem>>, %arg5: memref<1x1152xf32, #tpu.memory_space<vmem>>, %arg6: memref<1152x256xbf16, #tpu.memory_space<vmem>>, %arg7: memref<1x256xf32, #tpu.memory_space<vmem>>, %arg8: memref<16x256xbf16, #tpu.memory_space<vmem>>, %arg9: memref<8x256xf32, #tpu.memory_space<vmem>>, %arg10: memref<8x256xf32, #tpu.memory_space<vmem>>) attributes {dimension_semantics = [#tpu.dimension_semantics<parallel>, #tpu.dimension_semantics<arbitrary>], iteration_bounds = array<i64: 1, 1>, scalar_prefetch = 1 : i64, scratch_operands = 0 : i64, tpu.core_type = #tpu.core_type<tc>, window_params = [{transform_indices = @transform_0, window_bounds = array<i64: 16, 1152>}, {pipeline_mode = #tpu.pipeline_mode<synchronous>, transform_indices = @transform_1, window_bounds = array<i64: 1, 1152>}, {pipeline_mode = #tpu.pipeline_mode<synchronous>, transform_indices = @transform_2, window_bounds = array<i64: 1, 1152>}, {pipeline_mode = #tpu.pipeline_mode<synchronous>, transform_indices = @transform_3, window_bounds = array<i64: 1152, 256>}, {pipeline_mode = #tpu.pipeline_mode<synchronous>, transform_indices = @transform_4, window_bounds = array<i64: 1, 256>}, {transform_indices = @transform_5, window_bounds = array<i64: 16, 256>}, {transform_indices = @transform_6, window_bounds = array<i64: 8, 256>}, {transform_indices = @transform_7, window_bounds = array<i64: 8, 256>}]} {
    %c0_i32 = arith.constant 0 : i32
    %0 = arith.cmpi eq, %arg1, %c0_i32 : i32
    %1 = arith.extui %0 : i1 to i32
    %c0_i32_0 = arith.constant 0 : i32
    %2 = arith.cmpi ne, %1, %c0_i32_0 : i32
    scf.if %2 {
      %cst_26 = arith.constant 0.000000e+00 : f32
      %50 = vector.broadcast %cst_26 : f32 to vector<8x256xf32>
      %c0_27 = arith.constant 0 : index
      %c0_28 = arith.constant 0 : index
      %51 = vector.load %arg9[%c0_27, %c0_28] : memref<8x256xf32, #tpu.memory_space<vmem>>, vector<8x256xf32>
      tpu.vector_store %arg9[%c0_27, %c0_28], %50 {strides = array<i32>} : memref<8x256xf32, #tpu.memory_space<vmem>>, vector<8x256xf32>,
      %cst_29 = arith.constant 0.000000e+00 : f32
      %52 = vector.broadcast %cst_29 : f32 to vector<8x256xf32>
      %c0_30 = arith.constant 0 : index
      %c0_31 = arith.constant 0 : index
      %53 = vector.load %arg10[%c0_30, %c0_31] : memref<8x256xf32, #tpu.memory_space<vmem>>, vector<8x256xf32>
      tpu.vector_store %arg10[%c0_30, %c0_31], %52 {strides = array<i32>} : memref<8x256xf32, #tpu.memory_space<vmem>>, vector<8x256xf32>,
    } else {
    }
    %c0 = arith.constant 0 : index
    %c0_1 = arith.constant 0 : index
    %3 = vector.load %arg3[%c0, %c0_1] : memref<16x1152xbf16, #tpu.memory_space<vmem>>, vector<16x1152xbf16>
    %4 = arith.extf %3 : vector<16x1152xbf16> to vector<16x1152xf32>
    %c0_2 = arith.constant 0 : index
    %c0_3 = arith.constant 0 : index
    %5 = vector.load %arg4[%c0_2, %c0_3] : memref<1x1152xf32, #tpu.memory_space<vmem>>, vector<1x1152xf32>
    %6 = vector.broadcast %5 : vector<1x1152xf32> to vector<16x1152xf32>
    %7 = arith.mulf %4, %6 : vector<16x1152xf32>
    %c0_4 = arith.constant 0 : index
    %c0_5 = arith.constant 0 : index
    %8 = vector.load %arg5[%c0_4, %c0_5] : memref<1x1152xf32, #tpu.memory_space<vmem>>, vector<1x1152xf32>
    %9 = vector.broadcast %8 : vector<1x1152xf32> to vector<16x1152xf32>
    %10 = arith.addf %7, %9 : vector<16x1152xf32>
    %cst = arith.constant 0.000000e+00 : f32
    %11 = vector.broadcast %cst : f32 to vector<16x1152xf32>
    %12 = arith.cmpf oge, %10, %11 : vector<16x1152xf32>
    %cst_6 = arith.constant 0.00999999977 : f32
    %13 = vector.broadcast %cst_6 : f32 to vector<16x1152xf32>
    %14 = arith.mulf %13, %10 : vector<16x1152xf32>
    %15 = arith.select %12, %10, %14 : vector<16x1152xi1>, vector<16x1152xf32>
    %16 = arith.truncf %15 : vector<16x1152xf32> to vector<16x1152xbf16>
    %c0_7 = arith.constant 0 : index
    %c0_8 = arith.constant 0 : index
    %17 = vector.load %arg6[%c0_7, %c0_8] : memref<1152x256xbf16, #tpu.memory_space<vmem>>, vector<1152x256xbf16>
    %cst_9 = arith.constant dense<0.000000e+00> : vector<16x256xf32>
    %18 = tpu.matmul %16, %17, %cst_9 {dimension_numbers = #tpu.dot_dimension_numbers<[1], [0], [0], [1], [0, 0, 1, 1], [], []>} : vector<16x1152xbf16>, vector<1152x256xbf16>, vector<16x256xf32> -> vector<16x256xf32>
    %c0_10 = arith.constant 0 : index
    %c0_11 = arith.constant 0 : index
    %19 = vector.load %arg7[%c0_10, %c0_11] : memref<1x256xf32, #tpu.memory_space<vmem>>, vector<1x256xf32>
    %20 = vector.broadcast %19 : vector<1x256xf32> to vector<16x256xf32>
    %21 = arith.addf %18, %20 : vector<16x256xf32>
    %22 = arith.truncf %21 : vector<16x256xf32> to vector<16x256xbf16>
    %c0_12 = arith.constant 0 : index
    %c0_13 = arith.constant 0 : index
    %23 = vector.load %arg8[%c0_12, %c0_13] : memref<16x256xbf16, #tpu.memory_space<vmem>>, vector<16x256xbf16>
    tpu.vector_store %arg8[%c0_12, %c0_13], %22 {strides = array<i32>} : memref<16x256xbf16, #tpu.memory_space<vmem>>, vector<16x256xbf16>,
    %c1_i32 = arith.constant 1 : i32
    %24 = arith.muli %arg0, %c1_i32 : i32
    %25 = arith.addi %24, %arg1 : i32
    %c16_i32 = arith.constant 16 : i32
    %26 = arith.muli %25, %c16_i32 : i32
    %27 = tpu.iota {dimensions = array<i32: 0>} : vector<16x1xi32>
    %28 = vector.broadcast %26 : i32 to vector<16x1xi32>
    %29 = arith.addi %28, %27 : vector<16x1xi32>
    %c0_14 = arith.constant 0 : index
    %30 = memref.load %arg2[%c0_14] : memref<1xi32, #tpu.memory_space<smem>>
    %31 = vector.broadcast %30 : i32 to vector<16x1xi32>
    %32 = arith.cmpi slt, %29, %31 : vector<16x1xi32>
    %cst_15 = arith.constant 0.000000e+00 : f32
    %33 = vector.shape_cast %32 : vector<16x1xi1> to vector<16x1xi1>
    %34 = vector.broadcast %33 : vector<16x1xi1> to vector<16x256xi1>
    %35 = vector.broadcast %cst_15 : f32 to vector<16x256xf32>
    %36 = arith.select %34, %21, %35 : vector<16x256xi1>, vector<16x256xf32>
    %c0_16 = arith.constant 0 : index
    %c0_17 = arith.constant 0 : index
    %37 = vector.load %arg9[%c0_16, %c0_17] : memref<8x256xf32, #tpu.memory_space<vmem>>, vector<8x256xf32>
    %cst_18 = arith.constant dense<0.000000e+00> : vector<256xf32>
    %38 = vector.multi_reduction <add>, %36, %cst_18 [0] : vector<16x256xf32> to vector<256xf32>
    %39 = vector.shape_cast %38 : vector<256xf32> to vector<1x256xf32>
    %40 = vector.broadcast %39 : vector<1x256xf32> to vector<8x256xf32>
    %41 = arith.addf %37, %40 : vector<8x256xf32>
    %c0_19 = arith.constant 0 : index
    %c0_20 = arith.constant 0 : index
    %42 = vector.load %arg9[%c0_19, %c0_20] : memref<8x256xf32, #tpu.memory_space<vmem>>, vector<8x256xf32>
    tpu.vector_store %arg9[%c0_19, %c0_20], %41 {strides = array<i32>} : memref<8x256xf32, #tpu.memory_space<vmem>>, vector<8x256xf32>,
    %c0_21 = arith.constant 0 : index
    %c0_22 = arith.constant 0 : index
    %43 = vector.load %arg10[%c0_21, %c0_22] : memref<8x256xf32, #tpu.memory_space<vmem>>, vector<8x256xf32>
    %44 = arith.mulf %36, %36 : vector<16x256xf32>
    %cst_23 = arith.constant dense<0.000000e+00> : vector<256xf32>
    %45 = vector.multi_reduction <add>, %44, %cst_23 [0] : vector<16x256xf32> to vector<256xf32>
    %46 = vector.shape_cast %45 : vector<256xf32> to vector<1x256xf32>
    %47 = vector.broadcast %46 : vector<1x256xf32> to vector<8x256xf32>
    %48 = arith.addf %43, %47 : vector<8x256xf32>
    %c0_24 = arith.constant 0 : index
    %c0_25 = arith.constant 0 : index
    %49 = vector.load %arg10[%c0_24, %c0_25] : memref<8x256xf32, #tpu.memory_space<vmem>>, vector<8x256xf32>
    tpu.vector_store %arg10[%c0_24, %c0_25], %48 {strides = array<i32>} : memref<8x256xf32, #tpu.memory_space<vmem>>, vector<8x256xf32>,
    return
  }
  func.func @transform_0(%arg0: i32, %arg1: i32, %arg2: memref<1xi32, #tpu.memory_space<smem>>) -> (i32, i32) {
    %c1_i32 = arith.constant 1 : i32
    %0 = arith.muli %arg0, %c1_i32 : i32
    %1 = arith.addi %0, %arg1 : i32
    %c0_i32 = arith.constant 0 : i32
    %c0_i32_0 = arith.constant 0 : i32
    return %1, %c0_i32 : i32, i32
  }
  func.func @transform_1(%arg0: i32, %arg1: i32, %arg2: memref<1xi32, #tpu.memory_space<smem>>) -> (i32, i32) {
    %c0_i32 = arith.constant 0 : i32
    %c0_i32_0 = arith.constant 0 : i32
    %c0_i32_1 = arith.constant 0 : i32
    return %c0_i32, %c0_i32_0 : i32, i32
  }
  func.func @transform_2(%arg0: i32, %arg1: i32, %arg2: memref<1xi32, #tpu.memory_space<smem>>) -> (i32, i32) {
    %c0_i32 = arith.constant 0 : i32
    %c0_i32_0 = arith.constant 0 : i32
    %c0_i32_1 = arith.constant 0 : i32
    return %c0_i32, %c0_i32_0 : i32, i32
  }
  func.func @transform_3(%arg0: i32, %arg1: i32, %arg2: memref<1xi32, #tpu.memory_space<smem>>) -> (i32, i32) {
    %c0_i32 = arith.constant 0 : i32
    %c0_i32_0 = arith.constant 0 : i32
    %c0_i32_1 = arith.constant 0 : i32
    return %c0_i32, %c0_i32_0 : i32, i32
  }
  func.func @transform_4(%arg0: i32, %arg1: i32, %arg2: memref<1xi32, #tpu.memory_space<smem>>) -> (i32, i32) {
    %c0_i32 = arith.constant 0 : i32
    %c0_i32_0 = arith.constant 0 : i32
    %c0_i32_1 = arith.constant 0 : i32
    return %c0_i32, %c0_i32_0 : i32, i32
  }
  func.func @transform_5(%arg0: i32, %arg1: i32, %arg2: memref<1xi32, #tpu.memory_space<smem>>) -> (i32, i32) {
    %c1_i32 = arith.constant 1 : i32
    %0 = arith.muli %arg0, %c1_i32 : i32
    %1 = arith.addi %0, %arg1 : i32
    %c0_i32 = arith.constant 0 : i32
    %c0_i32_0 = arith.constant 0 : i32
    return %1, %c0_i32 : i32, i32
  }
  func.func @transform_6(%arg0: i32, %arg1: i32, %arg2: memref<1xi32, #tpu.memory_space<smem>>) -> (i32, i32) {
    %c0_i32 = arith.constant 0 : i32
    %c0_i32_0 = arith.constant 0 : i32
    return %arg0, %c0_i32 : i32, i32
  }
  func.func @transform_7(%arg0: i32, %arg1: i32, %arg2: memref<1xi32, #tpu.memory_space<smem>>) -> (i32, i32) {
    %c0_i32 = arith.constant 0 : i32
    %c0_i32_0 = arith.constant 0 : i32
    return %arg0, %c0_i32 : i32, i32
  }
}

module attributes {stable_mosaic.version = 11 : i64} {
  func.func @_affine_lrelu_matmul_kernel(%arg0: i32, %arg1: memref<16x256xbf16, #tpu.memory_space<vmem>>, %arg2: memref<1x256xf32, #tpu.memory_space<vmem>>, %arg3: memref<1x256xf32, #tpu.memory_space<vmem>>, %arg4: memref<256x128xbf16, #tpu.memory_space<vmem>>, %arg5: memref<1x128xf32, #tpu.memory_space<vmem>>, %arg6: memref<16x128xf32, #tpu.memory_space<vmem>>) attributes {dimension_semantics = [#tpu.dimension_semantics<parallel>], iteration_bounds = array<i64: 1>, scalar_prefetch = 0 : i64, scratch_operands = 0 : i64, tpu.core_type = #tpu.core_type<tc>, window_params = [{transform_indices = @transform_0, window_bounds = array<i64: 16, 256>}, {pipeline_mode = #tpu.pipeline_mode<synchronous>, transform_indices = @transform_1, window_bounds = array<i64: 1, 256>}, {pipeline_mode = #tpu.pipeline_mode<synchronous>, transform_indices = @transform_2, window_bounds = array<i64: 1, 256>}, {pipeline_mode = #tpu.pipeline_mode<synchronous>, transform_indices = @transform_3, window_bounds = array<i64: 256, 128>}, {pipeline_mode = #tpu.pipeline_mode<synchronous>, transform_indices = @transform_4, window_bounds = array<i64: 1, 128>}, {transform_indices = @transform_5, window_bounds = array<i64: 16, 128>}]} {
    %c0 = arith.constant 0 : index
    %c0_0 = arith.constant 0 : index
    %0 = vector.load %arg1[%c0, %c0_0] : memref<16x256xbf16, #tpu.memory_space<vmem>>, vector<16x256xbf16>
    %1 = arith.extf %0 : vector<16x256xbf16> to vector<16x256xf32>
    %c0_1 = arith.constant 0 : index
    %c0_2 = arith.constant 0 : index
    %2 = vector.load %arg2[%c0_1, %c0_2] : memref<1x256xf32, #tpu.memory_space<vmem>>, vector<1x256xf32>
    %3 = vector.broadcast %2 : vector<1x256xf32> to vector<16x256xf32>
    %4 = arith.mulf %1, %3 : vector<16x256xf32>
    %c0_3 = arith.constant 0 : index
    %c0_4 = arith.constant 0 : index
    %5 = vector.load %arg3[%c0_3, %c0_4] : memref<1x256xf32, #tpu.memory_space<vmem>>, vector<1x256xf32>
    %6 = vector.broadcast %5 : vector<1x256xf32> to vector<16x256xf32>
    %7 = arith.addf %4, %6 : vector<16x256xf32>
    %cst = arith.constant 0.000000e+00 : f32
    %8 = vector.broadcast %cst : f32 to vector<16x256xf32>
    %9 = arith.cmpf oge, %7, %8 : vector<16x256xf32>
    %cst_5 = arith.constant 0.00999999977 : f32
    %10 = vector.broadcast %cst_5 : f32 to vector<16x256xf32>
    %11 = arith.mulf %10, %7 : vector<16x256xf32>
    %12 = arith.select %9, %7, %11 : vector<16x256xi1>, vector<16x256xf32>
    %13 = arith.truncf %12 : vector<16x256xf32> to vector<16x256xbf16>
    %c0_6 = arith.constant 0 : index
    %c0_7 = arith.constant 0 : index
    %14 = vector.load %arg4[%c0_6, %c0_7] : memref<256x128xbf16, #tpu.memory_space<vmem>>, vector<256x128xbf16>
    %cst_8 = arith.constant dense<0.000000e+00> : vector<16x128xf32>
    %15 = tpu.matmul %13, %14, %cst_8 {dimension_numbers = #tpu.dot_dimension_numbers<[1], [0], [0], [1], [0, 0, 1, 1], [], []>} : vector<16x256xbf16>, vector<256x128xbf16>, vector<16x128xf32> -> vector<16x128xf32>
    %c0_9 = arith.constant 0 : index
    %c0_10 = arith.constant 0 : index
    %16 = vector.load %arg5[%c0_9, %c0_10] : memref<1x128xf32, #tpu.memory_space<vmem>>, vector<1x128xf32>
    %17 = vector.broadcast %16 : vector<1x128xf32> to vector<16x128xf32>
    %18 = arith.addf %15, %17 : vector<16x128xf32>
    %c0_11 = arith.constant 0 : index
    %c0_12 = arith.constant 0 : index
    %19 = vector.load %arg6[%c0_11, %c0_12] : memref<16x128xf32, #tpu.memory_space<vmem>>, vector<16x128xf32>
    tpu.vector_store %arg6[%c0_11, %c0_12], %18 {strides = array<i32>} : memref<16x128xf32, #tpu.memory_space<vmem>>, vector<16x128xf32>,
    return
  }
  func.func @transform_0(%arg0: i32) -> (i32, i32) {
    %c0_i32 = arith.constant 0 : i32
    %c0_i32_0 = arith.constant 0 : i32
    return %arg0, %c0_i32 : i32, i32
  }
  func.func @transform_1(%arg0: i32) -> (i32, i32) {
    %c0_i32 = arith.constant 0 : i32
    %c0_i32_0 = arith.constant 0 : i32
    %c0_i32_1 = arith.constant 0 : i32
    return %c0_i32, %c0_i32_0 : i32, i32
  }
  func.func @transform_2(%arg0: i32) -> (i32, i32) {
    %c0_i32 = arith.constant 0 : i32
    %c0_i32_0 = arith.constant 0 : i32
    %c0_i32_1 = arith.constant 0 : i32
    return %c0_i32, %c0_i32_0 : i32, i32
  }
  func.func @transform_3(%arg0: i32) -> (i32, i32) {
    %c0_i32 = arith.constant 0 : i32
    %c0_i32_0 = arith.constant 0 : i32
    %c0_i32_1 = arith.constant 0 : i32
    return %c0_i32, %c0_i32_0 : i32, i32
  }
  func.func @transform_4(%arg0: i32) -> (i32, i32) {
    %c0_i32 = arith.constant 0 : i32
    %c0_i32_0 = arith.constant 0 : i32
    %c0_i32_1 = arith.constant 0 : i32
    return %c0_i32, %c0_i32_0 : i32, i32
  }
  func.func @transform_5(%arg0: i32) -> (i32, i32) {
    %c0_i32 = arith.constant 0 : i32
    %c0_i32_0 = arith.constant 0 : i32
    return %arg0, %c0_i32 : i32, i32
  }
}

</mosaic_0001>

<bundles_post_ra>
// kernel: encoder_forward.5
= control target key start
LH: loop header
LB: loop body
LE: loop exit
PB: predicated region body
PF: predicated region fallthrough
CT: control target
= control target key end

     0   :  { %v694_v0 = vmov 0.0   ;;  %vm695_vm0 = vmmov 0   ;;  %vm131_vm1 = vcmask 523264   ;;  %s843_s1 = inlined_call_operand.vmem [shape: bf16[64,128], index: 1, kind: input, shape index: {}]   ;;  %s844_s0 = inlined_call_operand.vmem [shape: bf16[176,64], index: 0, kind: input, shape index: {}]   ;;  %s845_s2 = inlined_call_operand.vmem [shape: f32[1,128], index: 2, kind: input, shape index: {}]   ;;  %s846_s3 = inlined_call_operand.vmem [shape: bf16[176,128], index: 3, kind: output, shape index: {}]  }
   0x1   :  { %617 = vmatprep.subr.bf16.mxu0 %v694_v0  ;;  %v679_v1 = vld [vmem:[%s843_s1] sm:$0xff]   ;;  %669 = vmatprep.subr.bf16.mxu1 %v694_v0  ;;  %v680_v2 = vld [vmem:[%s843_s1 + $0x8] sm:$0xff]   ;;  %v681_v3 = vld [vmem:[%s843_s1 + $0x10] sm:$0xff]  }
   0x2   :  { %625 = vmatprep.mubr.msk.bf16.mxu0 %vm695_vm0, %v694_v0  ;;  %649 = vmatprep.mubr.msk.bf16.mxu1 %vm695_vm0, %v694_v0  ;;  %v682_v4 = vld [vmem:[%s843_s1 + $0x18] sm:$0xff]   ;;  %v683_v5 = vld [vmem:[%s844_s0] sm:$0xff]   ;;  %v684_v6 = vld [vmem:[%s844_s0 + $0x30] sm:$0xff]  }
   0x3   :  { %618 = vmatpush3.bf16.msra.mxu0 %v679_v1  ;;  %673 = vmatpush3.bf16.msra.mxu1 %v679_v1  ;;  %v685_v7 = vld [vmem:[%s844_s0 + $0x8] sm:$0xff]   ;;  %v686_v8 = vld [vmem:[%s844_s0 + $0x38] sm:$0xff]   ;;  %v687_v9 = vld [vmem:[%s844_s0 + $0x10] sm:$0xff]  }
   0x4   :  { %619 = vmatprep.subr.bf16.mxu0 %v694_v0  ;;  %670 = vmatprep.subr.bf16.mxu1 %v694_v0  ;;  %v688_v10 = vld [vmem:[%s844_s0 + $0x40] sm:$0xff]   ;;  %v689_v11 = vld [vmem:[%s844_s0 + $0x18] sm:$0xff]   ;;  %v690_v12 = vld [vmem:[%s844_s0 + $0x48] sm:$0xff]  }
   0x5   :  { %v691_v13 = vld [vmem:[%s844_s0 + $0x20] sm:$0xff]   ;;  %v692_v14 = vld [vmem:[%s844_s0 + $0x50] sm:$0xff]   ;;  %v693_v15 = vld [vmem:[%s844_s0 + $0x28] sm:$0xff]  }
   0x6   :  { %v786_v16 = vld [vmem:[%s845_s2] ss:$0 sm:$0xff] }
   0x7   :  { %620 = vmatpush3.bf16.msra.mxu0 %v680_v2  ;;  %674 = vmatpush3.bf16.msra.mxu1 %v680_v2 }
   0x8   :  { %621 = vmatprep.subr.bf16.mxu0 %v694_v0  ;;  %671 = vmatprep.subr.bf16.mxu1 %v694_v0 }
   0xb   :  { %622 = vmatpush3.bf16.msra.mxu0 %v681_v3  ;;  %675 = vmatpush3.bf16.msra.mxu1 %v681_v3 }
   0xc   :  { %623 = vmatprep.subr.bf16.mxu0 %v694_v0  ;;  %672 = vmatprep.subr.bf16.mxu1 %v694_v0 }
   0xf   :  { %624 = vmatpush3.bf16.msra.mxu0 %v682_v4  ;;  %676 = vmatpush3.bf16.msra.mxu1 %v682_v4 }
  0x12   :  { %626 = vmatmul.mubr.msk.bf16.vlgmr.msra.gmra.mrb[0].mxu0 %vm131_vm1, %v683_v5  ;;  %650 = vmatmul.mubr.msk.bf16.vlgmr.msra.gmra.mrb[0].mxu1 %vm131_vm1, %v684_v6 }
  0x13   :  { %629 = vmatprep.mubr.msk.bf16.mxu0 %vm695_vm0, %v694_v0  ;;  %653 = vmatprep.mubr.msk.bf16.mxu1 %vm695_vm0, %v694_v0 }
  0x1a   :  { %630 = vmatmul.mubr.msk.bf16.gmra.mrb[4].mxu0 %vm131_vm1, %v685_v7  ;;  %654 = vmatmul.mubr.msk.bf16.gmra.mrb[4].mxu1 %vm131_vm1, %v686_v8 }
  0x1b   :  { %633 = vmatprep.mubr.msk.bf16.mxu0 %vm695_vm0, %v694_v0  ;;  %657 = vmatprep.mubr.msk.bf16.mxu1 %vm695_vm0, %v694_v0 }
  0x22   :  { %634 = vmatmul.mubr.msk.bf16.gmra.mrb[8].mxu0 %vm131_vm1, %v687_v9  ;;  %658 = vmatmul.mubr.msk.bf16.gmra.mrb[8].mxu1 %vm131_vm1, %v688_v10 }
  0x23   :  { %637 = vmatprep.mubr.msk.bf16.mxu0 %vm695_vm0, %v694_v0  ;;  %661 = vmatprep.mubr.msk.bf16.mxu1 %vm695_vm0, %v694_v0 }
  0x2a   :  { %638 = vmatmul.mubr.msk.bf16.gmra.mrb[12].mxu0 %vm131_vm1, %v689_v11  ;;  %662 = vmatmul.mubr.msk.bf16.gmra.mrb[12].mxu1 %vm131_vm1, %v690_v12 }
  0x2b   :  { %641 = vmatprep.mubr.msk.bf16.mxu0 %vm695_vm0, %v694_v0  ;;  %665 = vmatprep.mubr.msk.bf16.mxu1 %vm695_vm0, %v694_v0 }
  0x32   :  { %642 = vmatmul.mubr.msk.bf16.gmra.mrb[16].mxu0 %vm131_vm1, %v691_v13  ;;  %666 = vmatmul.mubr.msk.bf16.gmra.mrb[16].mxu1 %vm131_vm1, %v692_v14 }
  0x33   :  { %645 = vmatprep.mubr.msk.bf16.mxu0 %vm695_vm0, %v694_v0 }
  0x3a   :  { %646 = vmatmul.mubr.msk.bf16.gmra.mrb[20].mxu0 %vm131_vm1, %v693_v15 }
  0xe5   :  { %v199_v17 = vpop.f32.mrb[0].mxu0  ;;  %v247_v18 = vpop.f32.mrb[0].mxu1 }
  0xe6   :  { %v200_v19 = vadd.f32 %v786_v16, %v199_v17  ;;  %v627_v20 = vpop.f32.mrb[1].mxu0  ;;  %v248_v21 = vadd.f32 %v786_v16, %v247_v18  ;;  %v651_v22 = vpop.f32.mrb[1].mxu1 }
  0xe7   :  { %v202_v23 = vpop.f32.mrb[2].mxu0  ;;  %v250_v24 = vpop.f32.mrb[2].mxu1 }
  0xe8   :  { %v308_v25 = vmul.f32 0.01, %v200_v19  ;;  %v203_v26 = vadd.f32 %v786_v16, %v202_v23  ;;  %v628_v27 = vpop.f32.mrb[3].mxu0  ;;  %vm298_vm2 = vcmp.ge.f32.partialorder %v248_v21, 0.0  ;;  %v652_v28 = vpop.f32.mrb[3].mxu1  ;;  %vm286_vm3 = vcmp.ge.f32.partialorder %v200_v19, 0.0 }
  0xe9   :  { %v320_v29 = vmul.f32 0.01, %v248_v21  ;;  %v251_v30 = vadd.f32 %v786_v16, %v250_v24 }
  0xea   :  { %vm287_vm4 = vcmp.ge.f32.partialorder %v203_v26, 0.0  ;;  %v309_v31 = vmul.f32 0.01, %v203_v26  ;;  %v330_v34 = vsel %vm286_vm3, %v200_v19, %v308_v25 }
  0xeb   :  { %v342_v32 = vsel %vm298_vm2, %v248_v21, %v320_v29  ;;  %vm299_vm5 = vcmp.ge.f32.partialorder %v251_v30, 0.0  ;;  %v321_v33 = vmul.f32 0.01, %v251_v30 }
  0xec   :  { %v331_v35 = vsel %vm287_vm4, %v203_v26, %v309_v31 }
  0xed   :  { %v540_v36 = vpack.c.bf16 %v331_v35, %v330_v34  ;;  %v343_v37 = vsel %vm299_vm5, %v251_v30, %v321_v33  ;;  %v207_v38 = vpop.f32.mrb[4].mxu0  ;;  %v255_v39 = vpop.f32.mrb[4].mxu1 }
  0xee   :  { %v570_v40 = vpack.c.bf16 %v343_v37, %v342_v32  ;;  %v208_v41 = vadd.f32 %v786_v16, %v207_v38  ;;  %v631_v42 = vpop.f32.mrb[5].mxu0  ;;  %v256_v43 = vadd.f32 %v786_v16, %v255_v39  ;;  %v655_v44 = vpop.f32.mrb[5].mxu1 }
  0xef   :  { %541 = vst [vmem:[%s846_s3] sm:$0xff] %v540_v36   ;;  %v210_v45 = vpop.f32.mrb[6].mxu0  ;;  %v258_v46 = vpop.f32.mrb[6].mxu1 }
  0xf0   :  { %597 = vst [vmem:[%s846_s3 + $0x30] sm:$0xff] %v570_v40   ;;  %v310_v47 = vmul.f32 0.01, %v208_v41  ;;  %v211_v48 = vadd.f32 %v786_v16, %v210_v45  ;;  %v632_v49 = vpop.f32.mrb[7].mxu0  ;;  %vm300_vm6 = vcmp.ge.f32.partialorder %v256_v43, 0.0  ;;  %v656_v50 = vpop.f32.mrb[7].mxu1  ;;  %v259_v52 = vadd.f32 %v786_v16, %v258_v46 }
  0xf1   :  { %vm288_vm7 = vcmp.ge.f32.partialorder %v208_v41, 0.0  ;;  %v322_v51 = vmul.f32 0.01, %v256_v43 }
  0xf2   :  { %vm289_vm8 = vcmp.ge.f32.partialorder %v211_v48, 0.0  ;;  %v311_v53 = vmul.f32 0.01, %v211_v48  ;;  %vm301_vm9 = vcmp.ge.f32.partialorder %v259_v52, 0.0  ;;  %v323_v55 = vmul.f32 0.01, %v259_v52 }
  0xf3   :  { %v344_v54 = vsel %vm300_vm6, %v256_v43, %v322_v51  ;;  %v332_v56 = vsel %vm288_vm7, %v208_v41, %v310_v47 }
  0xf4   :  { %v333_v57 = vsel %vm289_vm8, %v211_v48, %v311_v53  ;;  %v345_v59 = vsel %vm301_vm9, %v259_v52, %v323_v55 }
  0xf5   :  { %v545_v58 = vpack.c.bf16 %v333_v57, %v332_v56  ;;  %v215_v60 = vpop.f32.mrb[8].mxu0  ;;  %v263_v61 = vpop.f32.mrb[8].mxu1  ;;  %v575_v62 = vpack.c.bf16 %v345_v59, %v344_v54 }
  0xf6   :  { %v216_v63 = vadd.f32 %v786_v16, %v215_v60  ;;  %v635_v0 = vpop.f32.mrb[9].mxu0  ;;  %v264_v1 = vadd.f32 %v786_v16, %v263_v61  ;;  %v659_v2 = vpop.f32.mrb[9].mxu1 }
  0xf7   :  { %592 = vst [vmem:[%s846_s3 + $0x8] sm:$0xff] %v545_v58   ;;  %v218_v3 = vpop.f32.mrb[10].mxu0  ;;  %v266_v4 = vpop.f32.mrb[10].mxu1  ;;  %598 = vst [vmem:[%s846_s3 + $0x38] sm:$0xff] %v575_v62  }
  0xf8   :  { %v312_v5 = vmul.f32 0.01, %v216_v63  ;;  %v219_v6 = vadd.f32 %v786_v16, %v218_v3  ;;  %v636_v7 = vpop.f32.mrb[11].mxu0  ;;  %vm302_vm10 = vcmp.ge.f32.partialorder %v264_v1, 0.0  ;;  %v660_v8 = vpop.f32.mrb[11].mxu1  ;;  %vm290_vm11 = vcmp.ge.f32.partialorder %v216_v63, 0.0 }
  0xf9   :  { %v324_v9 = vmul.f32 0.01, %v264_v1  ;;  %v267_v10 = vadd.f32 %v786_v16, %v266_v4 }
  0xfa   :  { %vm291_vm12 = vcmp.ge.f32.partialorder %v219_v6, 0.0  ;;  %v313_v11 = vmul.f32 0.01, %v219_v6  ;;  %v334_v14 = vsel %vm290_vm11, %v216_v63, %v312_v5 }
  0xfb   :  { %v346_v12 = vsel %vm302_vm10, %v264_v1, %v324_v9  ;;  %vm303_vm13 = vcmp.ge.f32.partialorder %v267_v10, 0.0  ;;  %v325_v13 = vmul.f32 0.01, %v267_v10 }
  0xfc   :  { %v335_v15 = vsel %vm291_vm12, %v219_v6, %v313_v11 }
  0xfd   :  { %v550_v17 = vpack.c.bf16 %v335_v15, %v334_v14  ;;  %v347_v18 = vsel %vm303_vm13, %v267_v10, %v325_v13  ;;  %v223_v19 = vpop.f32.mrb[12].mxu0  ;;  %v271_v20 = vpop.f32.mrb[12].mxu1 }
  0xfe   :  { %v580_v21 = vpack.c.bf16 %v347_v18, %v346_v12  ;;  %v224_v22 = vadd.f32 %v786_v16, %v223_v19  ;;  %v639_v23 = vpop.f32.mrb[13].mxu0  ;;  %v272_v24 = vadd.f32 %v786_v16, %v271_v20  ;;  %v663_v25 = vpop.f32.mrb[13].mxu1 }
  0xff   :  { %593 = vst [vmem:[%s846_s3 + $0x10] sm:$0xff] %v550_v17   ;;  %v226_v26 = vpop.f32.mrb[14].mxu0  ;;  %v274_v27 = vpop.f32.mrb[14].mxu1 }
 0x100   :  { %599 = vst [vmem:[%s846_s3 + $0x40] sm:$0xff] %v580_v21   ;;  %v314_v28 = vmul.f32 0.01, %v224_v22  ;;  %v227_v29 = vadd.f32 %v786_v16, %v226_v26  ;;  %v640_v30 = vpop.f32.mrb[15].mxu0  ;;  %vm304_vm14 = vcmp.ge.f32.partialorder %v272_v24, 0.0  ;;  %v664_v31 = vpop.f32.mrb[15].mxu1  ;;  %v275_v33 = vadd.f32 %v786_v16, %v274_v27 }
 0x101   :  { %vm292_vm15 = vcmp.ge.f32.partialorder %v224_v22, 0.0  ;;  %v326_v32 = vmul.f32 0.01, %v272_v24 }
 0x102   :  { %vm293_vm0 = vcmp.ge.f32.partialorder %v227_v29, 0.0  ;;  %v315_v34 = vmul.f32 0.01, %v227_v29  ;;  %vm305_vm1 = vcmp.ge.f32.partialorder %v275_v33, 0.0  ;;  %v327_v36 = vmul.f32 0.01, %v275_v33 }
 0x103   :  { %v348_v35 = vsel %vm304_vm14, %v272_v24, %v326_v32  ;;  %v336_v37 = vsel %vm292_vm15, %v224_v22, %v314_v28 }
 0x104   :  { %v337_v38 = vsel %vm293_vm0, %v227_v29, %v315_v34  ;;  %v349_v40 = vsel %vm305_vm1, %v275_v33, %v327_v36 }
 0x105   :  { %v555_v39 = vpack.c.bf16 %v337_v38, %v336_v37  ;;  %v231_v41 = vpop.f32.mrb[16].mxu0  ;;  %v279_v42 = vpop.f32.mrb[16].mxu1  ;;  %v585_v43 = vpack.c.bf16 %v349_v40, %v348_v35 }
 0x106   :  { %v232_v44 = vadd.f32 %v786_v16, %v231_v41  ;;  %v643_v45 = vpop.f32.mrb[17].mxu0  ;;  %v280_v46 = vadd.f32 %v786_v16, %v279_v42  ;;  %v667_v47 = vpop.f32.mrb[17].mxu1 }
 0x107   :  { %594 = vst [vmem:[%s846_s3 + $0x18] sm:$0xff] %v555_v39   ;;  %v234_v48 = vpop.f32.mrb[18].mxu0  ;;  %v282_v49 = vpop.f32.mrb[18].mxu1  ;;  %600 = vst [vmem:[%s846_s3 + $0x48] sm:$0xff] %v585_v43  }
 0x108   :  { %v316_v50 = vmul.f32 0.01, %v232_v44  ;;  %v235_v51 = vadd.f32 %v786_v16, %v234_v48  ;;  %v644_v52 = vpop.f32.mrb[19].mxu0  ;;  %vm306_vm2 = vcmp.ge.f32.partialorder %v280_v46, 0.0  ;;  %v668_v53 = vpop.f32.mrb[19].mxu1  ;;  %vm294_vm3 = vcmp.ge.f32.partialorder %v232_v44, 0.0 }
 0x109   :  { %v328_v54 = vmul.f32 0.01, %v280_v46  ;;  %v283_v55 = vadd.f32 %v786_v16, %v282_v49 }
 0x10a   :  { %vm295_vm4 = vcmp.ge.f32.partialorder %v235_v51, 0.0  ;;  %v317_v56 = vmul.f32 0.01, %v235_v51  ;;  %v338_v59 = vsel %vm294_vm3, %v232_v44, %v316_v50 }
 0x10b   :  { %v350_v57 = vsel %vm306_vm2, %v280_v46, %v328_v54  ;;  %vm307_vm5 = vcmp.ge.f32.partialorder %v283_v55, 0.0  ;;  %v329_v58 = vmul.f32 0.01, %v283_v55 }
 0x10c   :  { %v339_v60 = vsel %vm295_vm4, %v235_v51, %v317_v56 }
 0x10d   :  { %v560_v61 = vpack.c.bf16 %v339_v60, %v338_v59  ;;  %v351_v62 = vsel %vm307_vm5, %v283_v55, %v329_v58  ;;  %v239_v63 = vpop.f32.mrb[20].mxu0 }
 0x10e   :  { %v590_v0 = vpack.c.bf16 %v351_v62, %v350_v57  ;;  %v240_v1 = vadd.f32 %v786_v16, %v239_v63  ;;  %v647_v2 = vpop.f32.mrb[21].mxu0 }
 0x10f   :  { %595 = vst [vmem:[%s846_s3 + $0x20] sm:$0xff] %v560_v61   ;;  %v242_v3 = vpop.f32.mrb[22].mxu0 }
 0x110   :  { %601 = vst [vmem:[%s846_s3 + $0x50] sm:$0xff] %v590_v0   ;;  %v318_v4 = vmul.f32 0.01, %v240_v1  ;;  %v243_v5 = vadd.f32 %v786_v16, %v242_v3  ;;  %v648_v6 = vpop.f32.mrb[23].mxu0  ;;  %vm296_vm6 = vcmp.ge.f32.partialorder %v240_v1, 0.0 }
 0x112   :  { %vm297_vm7 = vcmp.ge.f32.partialorder %v243_v5, 0.0  ;;  %v319_v7 = vmul.f32 0.01, %v243_v5  ;;  %v340_v8 = vsel %vm296_vm6, %v240_v1, %v318_v4 }
 0x114   :  { %v341_v9 = vsel %vm297_vm7, %v243_v5, %v319_v7 }
 0x115   :  { %v565_v10 = vpack.c.bf16 %v341_v9, %v340_v8 }
 0x117   :  { %596 = vst [vmem:[%s846_s3 + $0x28] sm:$0xff] %v565_v10  }

// kernel: encoder_forward.6
= control target key start
LH: loop header
LB: loop body
LE: loop exit
PB: predicated region body
PF: predicated region fallthrough
CT: control target
= control target key end

     0   :  { %vm63_vm0 = vcmask 523264   ;;  %vm1019_vm2 = vcmask 519168   ;;  %s2387_s2 = inlined_call_operand.vmem [shape: bf16[512,64], index: 2, kind: input, shape index: {}]   ;;  %s2388_s1 = inlined_call_operand.vmem [shape: bf16[208,512], index: 1, kind: input, shape index: {}]   ;;  %s2389_s5 = inlined_call_operand.vmem [shape: f32[8,64], index: 5, kind: output, shape index: {1}]   ;;  %s2390_s6 = inlined_call_operand.vmem [shape: f32[8,64], index: 6, kind: output, shape index: {2}]   ;;  %s2391_s3 = inlined_call_operand.vmem [shape: f32[1,64], index: 3, kind: input, shape index: {}]   ;;  %s2392_s0 = inlined_call_operand.<no memory space> [shape: s32[1], index: 0, kind: input, shape index: {}]   ;;  %s2393_s4 = inlined_call_operand.vmem [shape: bf16[208,64], index: 4, kind: output, shape index: {0}]  }
   0x1   :  { %v1721_v0 = vld [vmem:[%s2387_s2 + $0x40] sm:$0xff]   ;;  %v1725_v4 = vld [vmem:[%s2387_s2 + $0x48] sm:$0xff]   ;;  %v1729_v8 = vld [vmem:[%s2387_s2 + $0x50] sm:$0xff]  }
   0x2   :  { %v1722_v1 = vld [vmem:[%s2387_s2 + $0xc0] sm:$0xff]   ;;  %1532 = vmatprep.subr.bf16.mxu0 %v1721_v0  ;;  %v1726_v5 = vld [vmem:[%s2387_s2 + $0xc8] sm:$0xff]   ;;  %v1730_v9 = vld [vmem:[%s2387_s2 + $0xd0] sm:$0xff]  }
   0x3   :  { %v1723_v2 = vld [vmem:[%s2387_s2] sm:$0xff]   ;;  %1626 = vmatprep.subr.bf16.mxu1 %v1722_v1  ;;  %v1727_v6 = vld [vmem:[%s2387_s2 + $0x8] sm:$0xff]   ;;  %v1731_v10 = vld [vmem:[%s2387_s2 + $0x10] sm:$0xff]  }
   0x4   :  { %v1724_v3 = vld [vmem:[%s2387_s2 + $0x80] sm:$0xff]   ;;  %1533 = vmatpush3.bf16.msra.mxu0 %v1723_v2  ;;  %v1728_v7 = vld [vmem:[%s2387_s2 + $0x88] sm:$0xff]   ;;  %v1732_v11 = vld [vmem:[%s2387_s2 + $0x90] sm:$0xff]  }
   0x5   :  { %1627 = vmatpush3.bf16.msra.mxu1 %v1724_v3  ;;  %1534 = vmatprep.subr.bf16.mxu0 %v1725_v4  ;;  %v1733_v12 = vld [vmem:[%s2387_s2 + $0x58] sm:$0xff]   ;;  %v1737_v16 = vld [vmem:[%s2387_s2 + $0x60] sm:$0xff]   ;;  %v1741_v20 = vld [vmem:[%s2387_s2 + $0x68] sm:$0xff]  }
   0x6   :  { %1628 = vmatprep.subr.bf16.mxu1 %v1726_v5  ;;  %v1734_v13 = vld [vmem:[%s2387_s2 + $0xd8] sm:$0xff]   ;;  %v1738_v17 = vld [vmem:[%s2387_s2 + $0xe0] sm:$0xff]   ;;  %v1742_v21 = vld [vmem:[%s2387_s2 + $0xe8] sm:$0xff]  }
   0x7   :  { %v1735_v14 = vld [vmem:[%s2387_s2 + $0x18] sm:$0xff]   ;;  %v1739_v18 = vld [vmem:[%s2387_s2 + $0x20] sm:$0xff]   ;;  %v1743_v22 = vld [vmem:[%s2387_s2 + $0x28] sm:$0xff]  }
   0x8   :  { %1535 = vmatpush3.bf16.msra.mxu0 %v1727_v6  ;;  %v1736_v15 = vld [vmem:[%s2387_s2 + $0x98] sm:$0xff]   ;;  %v1740_v19 = vld [vmem:[%s2387_s2 + $0xa0] sm:$0xff]   ;;  %v1744_v23 = vld [vmem:[%s2387_s2 + $0xa8] sm:$0xff]  }
   0x9   :  { %1629 = vmatpush3.bf16.msra.mxu1 %v1728_v7  ;;  %1536 = vmatprep.subr.bf16.mxu0 %v1729_v8  ;;  %v1745_v24 = vld [vmem:[%s2387_s2 + $0x70] sm:$0xff]   ;;  %v1749_v28 = vld [vmem:[%s2387_s2 + $0x78] sm:$0xff]  }
   0xa   :  { %1630 = vmatprep.subr.bf16.mxu1 %v1730_v9  ;;  %v1746_v25 = vld [vmem:[%s2387_s2 + $0xf0] sm:$0xff]   ;;  %v1750_v29 = vld [vmem:[%s2387_s2 + $0xf8] sm:$0xff]  }
   0xb   :  { %v1747_v26 = vld [vmem:[%s2387_s2 + $0x30] sm:$0xff]   ;;  %v1751_v30 = vld [vmem:[%s2387_s2 + $0x38] sm:$0xff]  }
   0xc   :  { %1537 = vmatpush3.bf16.msra.mxu0 %v1731_v10  ;;  %v1748_v27 = vld [vmem:[%s2387_s2 + $0xb0] sm:$0xff]   ;;  %v1752_v31 = vld [vmem:[%s2387_s2 + $0xb8] sm:$0xff]  }
   0xd   :  { %1631 = vmatpush3.bf16.msra.mxu1 %v1732_v11  ;;  %1538 = vmatprep.subr.bf16.mxu0 %v1733_v12  ;;  %v1753_v32 = vld [vmem:[%s2388_s1] ss:$16 sps:$4 sm:$0xff]   ;;  %v1755_v33 = vld [vmem:[%s2388_s1 + $0x4] ss:$16 sps:$4 sm:$0xff]   ;;  %v1756_v34 = vld [vmem:[%s2388_s1 + $0x8] ss:$16 sps:$4 sm:$0xff]  }
   0xe   :  { %1632 = vmatprep.subr.bf16.mxu1 %v1734_v13  ;;  %v1758_v35 = vld [vmem:[%s2388_s1 + $0xc] ss:$16 sps:$4 sm:$0xff]   ;;  %673 = vmatprep.mubr.bf16.mxu0 %v1755_v33  ;;  %v1759_v36 = vld [vmem:[%s2388_s1 + $0x24] ss:$16 sps:$4 sm:$0xff]   ;;  %v1763_v38 = vld [vmem:[%s2388_s1 + $0x20] ss:$16 sps:$4 sm:$0xff]  }
   0xf   :  { %810 = vmatprep.mubr.bf16.mxu1 %v1758_v35  ;;  %v1761_v37 = vld [vmem:[%s2388_s1 + $0x2c] ss:$16 sps:$4 sm:$0xff]   ;;  %v1764_v39 = vld [vmem:[%s2388_s1 + $0x28] ss:$16 sps:$4 sm:$0xff]   ;;  %v1765_v40 = vld [vmem:[%s2388_s1 + $0x44] ss:$16 sps:$4 sm:$0xff]  }
  0x10   :  { %1539 = vmatpush3.bf16.msra.mxu0 %v1735_v14  ;;  %v1767_v41 = vld [vmem:[%s2388_s1 + $0x4c] ss:$16 sps:$4 sm:$0xff]   ;;  %v1769_v42 = vld [vmem:[%s2388_s1 + $0x40] ss:$16 sps:$4 sm:$0xff]   ;;  %v1770_v43 = vld [vmem:[%s2388_s1 + $0x48] ss:$16 sps:$4 sm:$0xff]  }
  0x11   :  { %1633 = vmatpush3.bf16.msra.mxu1 %v1736_v15  ;;  %1540 = vmatprep.subr.bf16.mxu0 %v1737_v16  ;;  %v1771_v44 = vld [vmem:[%s2388_s1 + $0x64] ss:$16 sps:$4 sm:$0xff]   ;;  %v1773_v45 = vld [vmem:[%s2388_s1 + $0x6c] ss:$16 sps:$4 sm:$0xff]   ;;  %v1775_v46 = vld [vmem:[%s2388_s1 + $0x60] ss:$16 sps:$4 sm:$0xff]  }
  0x12   :  { %1634 = vmatprep.subr.bf16.mxu1 %v1738_v17  ;;  %v1776_v47 = vld [vmem:[%s2388_s1 + $0x68] ss:$16 sps:$4 sm:$0xff]   ;;  %v1777_v48 = vld [vmem:[%s2388_s1 + $0x84] ss:$16 sps:$4 sm:$0xff]   ;;  %v1779_v49 = vld [vmem:[%s2388_s1 + $0x8c] ss:$16 sps:$4 sm:$0xff]  }
  0x13   :  { %v1781_v50 = vld [vmem:[%s2388_s1 + $0x80] ss:$16 sps:$4 sm:$0xff]   ;;  %v1782_v51 = vld [vmem:[%s2388_s1 + $0x88] ss:$16 sps:$4 sm:$0xff]   ;;  %v1783_v52 = vld [vmem:[%s2388_s1 + $0xa4] ss:$16 sps:$4 sm:$0xff]  }
  0x14   :  { %1541 = vmatpush3.bf16.msra.mxu0 %v1739_v18  ;;  %v1785_v53 = vld [vmem:[%s2388_s1 + $0xac] ss:$16 sps:$4 sm:$0xff]   ;;  %v1787_v54 = vld [vmem:[%s2388_s1 + $0xa0] ss:$16 sps:$4 sm:$0xff]   ;;  %v1788_v55 = vld [vmem:[%s2388_s1 + $0xa8] ss:$16 sps:$4 sm:$0xff]  }
  0x15   :  { %1635 = vmatpush3.bf16.msra.mxu1 %v1740_v19  ;;  %1542 = vmatprep.subr.bf16.mxu0 %v1741_v20  ;;  %v1789_v56 = vld [vmem:[%s2388_s1 + $0xc4] ss:$16 sps:$4 sm:$0xff]   ;;  %v1791_v57 = vld [vmem:[%s2388_s1 + $0xcc] ss:$16 sps:$4 sm:$0xff]   ;;  %v1793_v58 = vld [vmem:[%s2388_s1 + $0xc0] ss:$16 sps:$4 sm:$0xff]  }
  0x16   :  { %1636 = vmatprep.subr.bf16.mxu1 %v1742_v21  ;;  %v1794_v59 = vld [vmem:[%s2388_s1 + $0xc8] ss:$16 sps:$4 sm:$0xff]   ;;  %v1795_v60 = vld [vmem:[%s2388_s1 + $0xe4] ss:$16 sps:$4 sm:$0xff]   ;;  %v1797_v61 = vld [vmem:[%s2388_s1 + $0xec] ss:$16 sps:$4 sm:$0xff]   ;;  %v1048_v21 = vlaneseq }
  0x17   :  { %v1799_v62 = vld [vmem:[%s2388_s1 + $0xe0] ss:$16 sps:$4 sm:$0xff]   ;;  %v1800_v63 = vld [vmem:[%s2388_s1 + $0xe8] ss:$16 sps:$4 sm:$0xff]   ;;  %v1801_v0 = vld [vmem:[%s2388_s1 + $0x104] ss:$16 sps:$4 sm:$0xff]  }
  0x18   :  { %1543 = vmatpush3.bf16.msra.mxu0 %v1743_v22  ;;  %v1803_v1 = vld [vmem:[%s2388_s1 + $0x10c] ss:$16 sps:$4 sm:$0xff]   ;;  %v1805_v2 = vld [vmem:[%s2388_s1 + $0x100] ss:$16 sps:$4 sm:$0xff]   ;;  %v1806_v3 = vld [vmem:[%s2388_s1 + $0x108] ss:$16 sps:$4 sm:$0xff]  }
  0x19   :  { %1637 = vmatpush3.bf16.msra.mxu1 %v1744_v23  ;;  %1544 = vmatprep.subr.bf16.mxu0 %v1745_v24  ;;  %v1807_v4 = vld [vmem:[%s2388_s1 + $0x124] ss:$16 sps:$4 sm:$0xff]   ;;  %v1809_v5 = vld [vmem:[%s2388_s1 + $0x12c] ss:$16 sps:$4 sm:$0xff]   ;;  %v1811_v6 = vld [vmem:[%s2388_s1 + $0x120] ss:$16 sps:$4 sm:$0xff]  }
  0x1a   :  { %1638 = vmatprep.subr.bf16.mxu1 %v1746_v25  ;;  %v1812_v7 = vld [vmem:[%s2388_s1 + $0x128] ss:$16 sps:$4 sm:$0xff]   ;;  %v1813_v8 = vld [vmem:[%s2388_s1 + $0x144] ss:$16 sps:$4 sm:$0xff]   ;;  %v1815_v9 = vld [vmem:[%s2388_s1 + $0x14c] ss:$16 sps:$4 sm:$0xff]  }
  0x1b   :  { %v1817_v10 = vld [vmem:[%s2388_s1 + $0x140] ss:$16 sps:$4 sm:$0xff]   ;;  %v1818_v11 = vld [vmem:[%s2388_s1 + $0x148] ss:$16 sps:$4 sm:$0xff]   ;;  %v1819_v12 = vld [vmem:[%s2388_s1 + $0x164] ss:$16 sps:$4 sm:$0xff]  }
  0x1c   :  { %1545 = vmatpush3.bf16.msra.mxu0 %v1747_v26  ;;  %v1821_v13 = vld [vmem:[%s2388_s1 + $0x16c] ss:$16 sps:$4 sm:$0xff]   ;;  %v1823_v14 = vld [vmem:[%s2388_s1 + $0x160] ss:$16 sps:$4 sm:$0xff]   ;;  %v1824_v15 = vld [vmem:[%s2388_s1 + $0x168] ss:$16 sps:$4 sm:$0xff]  }
  0x1d   :  { %1639 = vmatpush3.bf16.msra.mxu1 %v1748_v27  ;;  %1546 = vmatprep.subr.bf16.mxu0 %v1749_v28  ;;  %v1825_v16 = vld [vmem:[%s2388_s1 + $0x184] ss:$16 sps:$4 sm:$0xff]   ;;  %v1827_v17 = vld [vmem:[%s2388_s1 + $0x18c] ss:$16 sps:$4 sm:$0xff]   ;;  %v1829_v18 = vld [vmem:[%s2388_s1 + $0x180] ss:$16 sps:$4 sm:$0xff]  }
  0x1e   :  { %1640 = vmatprep.subr.bf16.mxu1 %v1750_v29  ;;  %v1830_v19 = vld [vmem:[%s2388_s1 + $0x188] ss:$16 sps:$4 sm:$0xff]   ;;  %v1831_v20 = vmov 0.0   ;;  %v2127_v22 = vshrl.u32 %v1048_v21, 7  ;;  %v2132_v25 = vld [vmem:[%s2391_s3] ss:$0 sm:$0xff]  ;;  %v2137_v29 = vstv %s2392_s0 }
  0x1f   :  { %64 = vst.msk [vmem:[%s2389_s5] sm:$0xff] %vm63_vm0, %v1831_v20  ;;  %65 = vst.msk [vmem:[%s2390_s6] sm:$0xff] %vm63_vm0, %v1831_v20 }
  0x20   :  { %1547 = vmatpush3.bf16.msra.mxu0 %v1751_v30  ;;  %vm1104_vm1 = vcmp.lt.s32.totalorder %v2127_v22, %v2137_v29 }
  0x21   :  { %1641 = vmatpush3.bf16.msra.mxu1 %v1752_v31 }
  0x23   :  { %674 = vmatmul.mubr.bf16.vlgmr.msra.gmra.mrb[0].mxu0 %v1753_v32 }
  0x24   :  { %811 = vmatmul.mubr.bf16.vlgmr.msra.gmra.mrb[0].mxu1 %v1756_v34  ;;  %681 = vmatprep.mubr.bf16.mxu0 %v1759_v36  ;;  %v1050_v34 = vadd.s32 8, %v2127_v22 }
  0x25   :  { %818 = vmatprep.mubr.bf16.mxu1 %v1761_v37 }
  0x26   :  { %vm1105_vm3 = vcmp.lt.s32.totalorder %v1050_v34, %v2137_v29 }
  0x2b   :  { %682 = vmatmul.mubr.bf16.gmra.mrb[4].mxu0 %v1763_v38 }
  0x2c   :  { %819 = vmatmul.mubr.bf16.gmra.mrb[4].mxu1 %v1764_v39  ;;  %689 = vmatprep.mubr.bf16.mxu0 %v1765_v40 }
  0x2d   :  { %826 = vmatprep.mubr.bf16.mxu1 %v1767_v41 }
  0x33   :  { %690 = vmatmul.mubr.bf16.gmra.mrb[8].mxu0 %v1769_v42 }
  0x34   :  { %827 = vmatmul.mubr.bf16.gmra.mrb[8].mxu1 %v1770_v43  ;;  %697 = vmatprep.mubr.bf16.mxu0 %v1771_v44 }
  0x35   :  { %834 = vmatprep.mubr.bf16.mxu1 %v1773_v45 }
  0x3b   :  { %698 = vmatmul.mubr.bf16.gmra.mrb[12].mxu0 %v1775_v46 }
  0x3c   :  { %835 = vmatmul.mubr.bf16.gmra.mrb[12].mxu1 %v1776_v47  ;;  %705 = vmatprep.mubr.bf16.mxu0 %v1777_v48  ;;  %v1051_v48 = vadd.s32 16, %v2127_v22 }
  0x3d   :  { %842 = vmatprep.mubr.bf16.mxu1 %v1779_v49 }
  0x3e   :  { %vm1106_vm4 = vcmp.lt.s32.totalorder %v1051_v48, %v2137_v29 }
  0x43   :  { %706 = vmatmul.mubr.bf16.gmra.mrb[16].mxu0 %v1781_v50 }
  0x44   :  { %843 = vmatmul.mubr.bf16.gmra.mrb[16].mxu1 %v1782_v51  ;;  %713 = vmatprep.mubr.bf16.mxu0 %v1783_v52 }
  0x45   :  { %850 = vmatprep.mubr.bf16.mxu1 %v1785_v53 }
  0x4b   :  { %714 = vmatmul.mubr.bf16.gmra.mrb[20].mxu0 %v1787_v54  ;;  %v1052_v54 = vadd.s32 24, %v2127_v22 }
  0x4c   :  { %851 = vmatmul.mubr.bf16.gmra.mrb[20].mxu1 %v1788_v55  ;;  %721 = vmatprep.mubr.bf16.mxu0 %v1789_v56 }
  0x4d   :  { %858 = vmatprep.mubr.bf16.mxu1 %v1791_v57  ;;  %vm1107_vm5 = vcmp.lt.s32.totalorder %v1052_v54, %v2137_v29 }
  0x53   :  { %722 = vmatmul.mubr.bf16.gmra.mrb[24].mxu0 %v1793_v58 }
  0x54   :  { %859 = vmatmul.mubr.bf16.gmra.mrb[24].mxu1 %v1794_v59  ;;  %729 = vmatprep.mubr.bf16.mxu0 %v1795_v60 }
  0x55   :  { %866 = vmatprep.mubr.bf16.mxu1 %v1797_v61 }
  0x5b   :  { %730 = vmatmul.mubr.bf16.gmra.mrb[28].mxu0 %v1799_v62 }
  0x5c   :  { %867 = vmatmul.mubr.bf16.gmra.mrb[28].mxu1 %v1800_v63  ;;  %737 = vmatprep.mubr.bf16.mxu0 %v1801_v0 }
  0x5d   :  { %874 = vmatprep.mubr.bf16.mxu1 %v1803_v1 }
  0x63   :  { %738 = vmatmul.mubr.bf16.gmra.mrb[32].mxu0 %v1805_v2 }
  0x64   :  { %875 = vmatmul.mubr.bf16.gmra.mrb[32].mxu1 %v1806_v3  ;;  %745 = vmatprep.mubr.bf16.mxu0 %v1807_v4 }
  0x65   :  { %882 = vmatprep.mubr.bf16.mxu1 %v1809_v5 }
  0x6b   :  { %746 = vmatmul.mubr.bf16.gmra.mrb[36].mxu0 %v1811_v6 }
  0x6c   :  { %883 = vmatmul.mubr.bf16.gmra.mrb[36].mxu1 %v1812_v7  ;;  %753 = vmatprep.mubr.bf16.mxu0 %v1813_v8 }
  0x6d   :  { %890 = vmatprep.mubr.bf16.mxu1 %v1815_v9 }
  0x73   :  { %754 = vmatmul.mubr.bf16.gmra.mrb[40].mxu0 %v1817_v10 }
  0x74   :  { %891 = vmatmul.mubr.bf16.gmra.mrb[40].mxu1 %v1818_v11  ;;  %761 = vmatprep.mubr.bf16.mxu0 %v1819_v12 }
  0x75   :  { %898 = vmatprep.mubr.bf16.mxu1 %v1821_v13 }
  0x7b   :  { %762 = vmatmul.mubr.bf16.gmra.mrb[44].mxu0 %v1823_v14 }
  0x7c   :  { %899 = vmatmul.mubr.bf16.gmra.mrb[44].mxu1 %v1824_v15  ;;  %769 = vmatprep.mubr.bf16.mxu0 %v1825_v16  ;;  %v1053_v15 = vadd.s32 32, %v2127_v22  ;;  %v1054_v16 = vadd.s32 40, %v2127_v22 }
  0x7d   :  { %906 = vmatprep.mubr.bf16.mxu1 %v1827_v17 }
  0x7e   :  { %vm1108_vm6 = vcmp.lt.s32.totalorder %v1053_v15, %v2137_v29  ;;  %vm1109_vm7 = vcmp.lt.s32.totalorder %v1054_v16, %v2137_v29 }
  0x83   :  { %770 = vmatmul.mubr.bf16.gmra.mrb[48].mxu0 %v1829_v18 }
  0x84   :  { %907 = vmatmul.mubr.bf16.gmra.mrb[48].mxu1 %v1830_v19 }
  0xf6   :  { %v1548_v23 = vpop.f32.mrb[0].mxu0 }
  0xf7   :  { %v1642_v24 = vpop.f32.mrb[0].mxu1  ;;  %v1549_v26 = vpop.f32.mrb[1].mxu0 }
  0xf8   :  { %v1550_v27 = vadd.f32 %v1549_v26, %v1548_v23  ;;  %v1643_v28 = vpop.f32.mrb[1].mxu1  ;;  %v1551_v30 = vpop.f32.mrb[2].mxu0 }
  0xf9   :  { %v1644_v31 = vadd.f32 %v1643_v28, %v1642_v24  ;;  %v1645_v32 = vpop.f32.mrb[2].mxu1  ;;  %v1552_v33 = vpop.f32.mrb[3].mxu0 }
  0xfa   :  { %v676_v35 = vadd.f32 %v1550_v27, %v2132_v25  ;;  %v1553_v36 = vadd.f32 %v1552_v33, %v1551_v30  ;;  %v1646_v37 = vpop.f32.mrb[3].mxu1 }
  0xfb   :  { %v1647_v38 = vadd.f32 %v1646_v37, %v1645_v32 }
  0xfc   :  { %v813_v39 = vadd.f32 %v1644_v31, %v676_v35  ;;  %v679_v40 = vadd.f32 %v1553_v36, %v2132_v25 }
  0xfe   :  { %v1506_v41 = vpack.c.bf16 %v813_v39, %v813_v39  ;;  %v1182_v42 = vsel %vm1104_vm1, %v813_v39, 0.0  ;;  %v816_v43 = vadd.f32 %v1647_v38, %v679_v40  ;;  %v1554_v44 = vpop.f32.mrb[4].mxu0 }
  0xff   :  { %v1270_v45 = vmul.f32 %v1182_v42, %v1182_v42  ;;  %v1648_v46 = vpop.f32.mrb[4].mxu1  ;;  %v1555_v47 = vpop.f32.mrb[5].mxu0  ;;  %v1210_v55 = vsel %vm63_vm0, %v1182_v42, 0.0 }
 0x100   :  { %1020 = vst.msk [vmem:[%s2393_s4] sm:$0xf] %vm1019_vm2, %v1506_v41  ;;  %v1507_v49 = vpack.c.bf16 %v816_v43, %v816_v43  ;;  %v1183_v50 = vsel %vm1105_vm3, %v816_v43, 0.0  ;;  %v1556_v51 = vadd.f32 %v1555_v47, %v1554_v44  ;;  %v1649_v52 = vpop.f32.mrb[5].mxu1  ;;  %v1557_v53 = vpop.f32.mrb[6].mxu0 }
 0x101   :  { %v1211_v56 = vsel %vm63_vm0, %v1183_v50, 0.0  ;;  %v1271_v57 = vmul.f32 %v1183_v50, %v1183_v50  ;;  %v1650_v58 = vadd.f32 %v1649_v52, %v1648_v46  ;;  %v1651_v59 = vpop.f32.mrb[6].mxu1  ;;  %v1558_v60 = vpop.f32.mrb[7].mxu0  ;;  %v1296_v1 = vsel %vm63_vm0, %v1270_v45, 0.0 }
 0x102   :  { %1021 = vst.msk [vmem:[%s2393_s4 + $0x4] sm:$0xf] %vm1019_vm2, %v1507_v49  ;;  %v1212_v61 = vadd.f32 %v1211_v56, %v1210_v55  ;;  %v684_v62 = vadd.f32 %v1556_v51, %v2132_v25  ;;  %v1559_v63 = vadd.f32 %v1558_v60, %v1557_v53  ;;  %v1652_v0 = vpop.f32.mrb[7].mxu1  ;;  %v1055_v50 = vadd.s32 48, %v2127_v22 }
 0x103   :  { %v1297_v2 = vsel %vm63_vm0, %v1271_v57, 0.0  ;;  %v1653_v3 = vadd.f32 %v1652_v0, %v1651_v59  ;;  %v1056_v51 = vadd.s32 56, %v2127_v22 }
 0x104   :  { %v1298_v4 = vadd.f32 %v1297_v2, %v1296_v1  ;;  %v821_v5 = vadd.f32 %v1650_v58, %v684_v62  ;;  %v687_v6 = vadd.f32 %v1559_v63, %v2132_v25  ;;  %vm1110_vm8 = vcmp.lt.s32.totalorder %v1055_v50, %v2137_v29 }
 0x105   :  { %vm1111_vm9 = vcmp.lt.s32.totalorder %v1056_v51, %v2137_v29 }
 0x106   :  { %v1508_v7 = vpack.c.bf16 %v821_v5, %v821_v5  ;;  %v1184_v8 = vsel %vm1106_vm4, %v821_v5, 0.0  ;;  %v824_v9 = vadd.f32 %v1653_v3, %v687_v6  ;;  %v1560_v10 = vpop.f32.mrb[8].mxu0 }
 0x107   :  { %v1213_v11 = vsel %vm63_vm0, %v1184_v8, 0.0  ;;  %v1272_v12 = vmul.f32 %v1184_v8, %v1184_v8  ;;  %v1654_v13 = vpop.f32.mrb[8].mxu1  ;;  %v1561_v14 = vpop.f32.mrb[9].mxu0 }
 0x108   :  { %1022 = vst.msk [vmem:[%s2393_s4 + $0x8] sm:$0xf] %vm1019_vm2, %v1508_v7  ;;  %v1214_v17 = vadd.f32 %v1213_v11, %v1212_v61  ;;  %v1509_v18 = vpack.c.bf16 %v824_v9, %v824_v9  ;;  %v1185_v19 = vsel %vm1107_vm5, %v824_v9, 0.0  ;;  %v1562_v20 = vadd.f32 %v1561_v14, %v1560_v10  ;;  %v1655_v21 = vpop.f32.mrb[9].mxu1  ;;  %v1563_v23 = vpop.f32.mrb[10].mxu0 }
 0x109   :  { %v1299_v24 = vsel %vm63_vm0, %v1272_v12, 0.0  ;;  %v1215_v26 = vsel %vm63_vm0, %v1185_v19, 0.0  ;;  %v1273_v27 = vmul.f32 %v1185_v19, %v1185_v19  ;;  %v1656_v28 = vadd.f32 %v1655_v21, %v1654_v13  ;;  %v1657_v30 = vpop.f32.mrb[10].mxu1  ;;  %v1564_v31 = vpop.f32.mrb[11].mxu0 }
 0x10a   :  { %v1300_v32 = vadd.f32 %v1299_v24, %v1298_v4  ;;  %1023 = vst.msk [vmem:[%s2393_s4 + $0xc] sm:$0xf] %vm1019_vm2, %v1509_v18  ;;  %v1216_v33 = vadd.f32 %v1215_v26, %v1214_v17  ;;  %v692_v34 = vadd.f32 %v1562_v20, %v2132_v25  ;;  %v1565_v35 = vadd.f32 %v1564_v31, %v1563_v23  ;;  %v1658_v36 = vpop.f32.mrb[11].mxu1 }
 0x10b   :  { %v1301_v37 = vsel %vm63_vm0, %v1273_v27, 0.0  ;;  %v1659_v38 = vadd.f32 %v1658_v36, %v1657_v30  ;;  %v1057_v18 = vadd.s32 64, %v2127_v22  ;;  %v1058_v19 = vadd.s32 72, %v2127_v22 }
 0x10c   :  { %v1302_v39 = vadd.f32 %v1301_v37, %v1300_v32  ;;  %v829_v40 = vadd.f32 %v1656_v28, %v692_v34  ;;  %v695_v41 = vadd.f32 %v1565_v35, %v2132_v25 }
 0x10d   :  { %vm1112_vm10 = vcmp.lt.s32.totalorder %v1057_v18, %v2137_v29  ;;  %vm1113_vm11 = vcmp.lt.s32.totalorder %v1058_v19, %v2137_v29 }
 0x10e   :  { %v1510_v42 = vpack.c.bf16 %v829_v40, %v829_v40  ;;  %v1186_v43 = vsel %vm1108_vm6, %v829_v40, 0.0  ;;  %v832_v44 = vadd.f32 %v1659_v38, %v695_v41  ;;  %v1566_v45 = vpop.f32.mrb[12].mxu0 }
 0x10f   :  { %v1217_v46 = vsel %vm63_vm0, %v1186_v43, 0.0  ;;  %v1274_v47 = vmul.f32 %v1186_v43, %v1186_v43  ;;  %v1660_v48 = vpop.f32.mrb[12].mxu1  ;;  %v1567_v49 = vpop.f32.mrb[13].mxu0 }
 0x110   :  { %1024 = vst.msk [vmem:[%s2393_s4 + $0x10] sm:$0xf] %vm1019_vm2, %v1510_v42  ;;  %v1218_v52 = vadd.f32 %v1217_v46, %v1216_v33  ;;  %v1511_v53 = vpack.c.bf16 %v832_v44, %v832_v44  ;;  %v1187_v54 = vsel %vm1109_vm7, %v832_v44, 0.0  ;;  %v1568_v55 = vadd.f32 %v1567_v49, %v1566_v45  ;;  %v1661_v56 = vpop.f32.mrb[13].mxu1  ;;  %v1569_v57 = vpop.f32.mrb[14].mxu0 }
 0x111   :  { %v1303_v58 = vsel %vm63_vm0, %v1274_v47, 0.0  ;;  %v1219_v59 = vsel %vm63_vm0, %v1187_v54, 0.0  ;;  %v1275_v60 = vmul.f32 %v1187_v54, %v1187_v54  ;;  %v1662_v61 = vadd.f32 %v1661_v56, %v1660_v48  ;;  %v1663_v62 = vpop.f32.mrb[14].mxu1  ;;  %v1570_v63 = vpop.f32.mrb[15].mxu0 }
 0x112   :  { %v1304_v0 = vadd.f32 %v1303_v58, %v1302_v39  ;;  %1025 = vst.msk [vmem:[%s2393_s4 + $0x14] sm:$0xf] %vm1019_vm2, %v1511_v53  ;;  %v1220_v1 = vadd.f32 %v1219_v59, %v1218_v52  ;;  %v700_v2 = vadd.f32 %v1568_v55, %v2132_v25  ;;  %v1571_v3 = vadd.f32 %v1570_v63, %v1569_v57  ;;  %v1664_v4 = vpop.f32.mrb[15].mxu1 }
 0x113   :  { %v1305_v5 = vsel %vm63_vm0, %v1275_v60, 0.0  ;;  %v1665_v6 = vadd.f32 %v1664_v4, %v1663_v62  ;;  %v1059_v53 = vadd.s32 80, %v2127_v22  ;;  %v1060_v54 = vadd.s32 88, %v2127_v22 }
 0x114   :  { %v1306_v7 = vadd.f32 %v1305_v5, %v1304_v0  ;;  %v837_v8 = vadd.f32 %v1662_v61, %v700_v2  ;;  %v703_v9 = vadd.f32 %v1571_v3, %v2132_v25 }
 0x115   :  { %vm1114_vm12 = vcmp.lt.s32.totalorder %v1059_v53, %v2137_v29  ;;  %vm1115_vm13 = vcmp.lt.s32.totalorder %v1060_v54, %v2137_v29 }
 0x116   :  { %v1512_v10 = vpack.c.bf16 %v837_v8, %v837_v8  ;;  %v1188_v11 = vsel %vm1110_vm8, %v837_v8, 0.0  ;;  %v840_v12 = vadd.f32 %v1665_v6, %v703_v9  ;;  %v1572_v13 = vpop.f32.mrb[16].mxu0 }
 0x117   :  { %v1221_v14 = vsel %vm63_vm0, %v1188_v11, 0.0  ;;  %v1276_v15 = vmul.f32 %v1188_v11, %v1188_v11  ;;  %v1666_v16 = vpop.f32.mrb[16].mxu1  ;;  %v1573_v17 = vpop.f32.mrb[17].mxu0 }
 0x118   :  { %1026 = vst.msk [vmem:[%s2393_s4 + $0x18] sm:$0xf] %vm1019_vm2, %v1512_v10  ;;  %v1222_v20 = vadd.f32 %v1221_v14, %v1220_v1  ;;  %v1513_v21 = vpack.c.bf16 %v840_v12, %v840_v12  ;;  %v1189_v23 = vsel %vm1111_vm9, %v840_v12, 0.0  ;;  %v1574_v24 = vadd.f32 %v1573_v17, %v1572_v13  ;;  %v1667_v26 = vpop.f32.mrb[17].mxu1  ;;  %v1575_v27 = vpop.f32.mrb[18].mxu0 }
 0x119   :  { %v1307_v28 = vsel %vm63_vm0, %v1276_v15, 0.0  ;;  %v1223_v30 = vsel %vm63_vm0, %v1189_v23, 0.0  ;;  %v1277_v31 = vmul.f32 %v1189_v23, %v1189_v23  ;;  %v1668_v32 = vadd.f32 %v1667_v26, %v1666_v16  ;;  %v1669_v33 = vpop.f32.mrb[18].mxu1  ;;  %v1576_v34 = vpop.f32.mrb[19].mxu0 }
 0x11a   :  { %v1308_v35 = vadd.f32 %v1307_v28, %v1306_v7  ;;  %1027 = vst.msk [vmem:[%s2393_s4 + $0x1c] sm:$0xf] %vm1019_vm2, %v1513_v21  ;;  %v1224_v36 = vadd.f32 %v1223_v30, %v1222_v20  ;;  %v708_v37 = vadd.f32 %v1574_v24, %v2132_v25  ;;  %v1577_v38 = vadd.f32 %v1576_v34, %v1575_v27  ;;  %v1670_v39 = vpop.f32.mrb[19].mxu1 }
 0x11b   :  { %v1309_v40 = vsel %vm63_vm0, %v1277_v31, 0.0  ;;  %v1671_v41 = vadd.f32 %v1670_v39, %v1669_v33  ;;  %v1061_v21 = vadd.s32 96, %v2127_v22  ;;  %v1062_v23 = vadd.s32 104, %v2127_v22 }
 0x11c   :  { %v1310_v42 = vadd.f32 %v1309_v40, %v1308_v35  ;;  %v845_v43 = vadd.f32 %v1668_v32, %v708_v37  ;;  %v711_v44 = vadd.f32 %v1577_v38, %v2132_v25 }
 0x11d   :  { %vm1116_vm14 = vcmp.lt.s32.totalorder %v1061_v21, %v2137_v29  ;;  %vm1117_vm15 = vcmp.lt.s32.totalorder %v1062_v23, %v2137_v29 }
 0x11e   :  { %v1514_v45 = vpack.c.bf16 %v845_v43, %v845_v43  ;;  %v1190_v46 = vsel %vm1112_vm10, %v845_v43, 0.0  ;;  %v848_v47 = vadd.f32 %v1671_v41, %v711_v44  ;;  %v1578_v48 = vpop.f32.mrb[20].mxu0 }
 0x11f   :  { %v1225_v49 = vsel %vm63_vm0, %v1190_v46, 0.0  ;;  %v1278_v50 = vmul.f32 %v1190_v46, %v1190_v46  ;;  %v1672_v51 = vpop.f32.mrb[20].mxu1  ;;  %v1579_v52 = vpop.f32.mrb[21].mxu0 }
 0x120   :  { %1028 = vst.msk [vmem:[%s2393_s4 + $0x20] sm:$0xf] %vm1019_vm2, %v1514_v45  ;;  %v1226_v55 = vadd.f32 %v1225_v49, %v1224_v36  ;;  %v1515_v56 = vpack.c.bf16 %v848_v47, %v848_v47  ;;  %v1191_v57 = vsel %vm1113_vm11, %v848_v47, 0.0  ;;  %v1580_v58 = vadd.f32 %v1579_v52, %v1578_v48  ;;  %v1673_v59 = vpop.f32.mrb[21].mxu1  ;;  %v1581_v60 = vpop.f32.mrb[22].mxu0 }
 0x121   :  { %v1311_v61 = vsel %vm63_vm0, %v1278_v50, 0.0  ;;  %v1227_v62 = vsel %vm63_vm0, %v1191_v57, 0.0  ;;  %v1279_v63 = vmul.f32 %v1191_v57, %v1191_v57  ;;  %v1674_v0 = vadd.f32 %v1673_v59, %v1672_v51  ;;  %v1675_v1 = vpop.f32.mrb[22].mxu1  ;;  %v1582_v2 = vpop.f32.mrb[23].mxu0 }
 0x122   :  { %v1312_v3 = vadd.f32 %v1311_v61, %v1310_v42  ;;  %1029 = vst.msk [vmem:[%s2393_s4 + $0x24] sm:$0xf] %vm1019_vm2, %v1515_v56  ;;  %v1228_v4 = vadd.f32 %v1227_v62, %v1226_v55  ;;  %v716_v5 = vadd.f32 %v1580_v58, %v2132_v25  ;;  %v1583_v6 = vadd.f32 %v1582_v2, %v1581_v60  ;;  %v1676_v7 = vpop.f32.mrb[23].mxu1 }
 0x123   :  { %v1313_v8 = vsel %vm63_vm0, %v1279_v63, 0.0  ;;  %v1677_v9 = vadd.f32 %v1676_v7, %v1675_v1  ;;  %v1063_v56 = vadd.s32 112, %v2127_v22  ;;  %v1064_v57 = vadd.s32 120, %v2127_v22 }
 0x124   :  { %v1314_v10 = vadd.f32 %v1313_v8, %v1312_v3  ;;  %v853_v11 = vadd.f32 %v1674_v0, %v716_v5  ;;  %v719_v12 = vadd.f32 %v1583_v6, %v2132_v25 }
 0x125   :  { %vm1118_vm1 = vcmp.lt.s32.totalorder %v1063_v56, %v2137_v29  ;;  %vm1119_vm3 = vcmp.lt.s32.totalorder %v1064_v57, %v2137_v29 }
 0x126   :  { %v1516_v13 = vpack.c.bf16 %v853_v11, %v853_v11  ;;  %v1192_v14 = vsel %vm1114_vm12, %v853_v11, 0.0  ;;  %v856_v15 = vadd.f32 %v1677_v9, %v719_v12  ;;  %v1584_v16 = vpop.f32.mrb[24].mxu0 }
 0x127   :  { %v1229_v17 = vsel %vm63_vm0, %v1192_v14, 0.0  ;;  %v1280_v18 = vmul.f32 %v1192_v14, %v1192_v14  ;;  %v1678_v19 = vpop.f32.mrb[24].mxu1  ;;  %v1585_v20 = vpop.f32.mrb[25].mxu0 }
 0x128   :  { %1030 = vst.msk [vmem:[%s2393_s4 + $0x28] sm:$0xf] %vm1019_vm2, %v1516_v13  ;;  %v1230_v24 = vadd.f32 %v1229_v17, %v1228_v4  ;;  %v1517_v26 = vpack.c.bf16 %v856_v15, %v856_v15  ;;  %v1193_v27 = vsel %vm1115_vm13, %v856_v15, 0.0  ;;  %v1586_v28 = vadd.f32 %v1585_v20, %v1584_v16  ;;  %v1679_v30 = vpop.f32.mrb[25].mxu1  ;;  %v1587_v31 = vpop.f32.mrb[26].mxu0 }
 0x129   :  { %v1315_v32 = vsel %vm63_vm0, %v1280_v18, 0.0  ;;  %v1231_v33 = vsel %vm63_vm0, %v1193_v27, 0.0  ;;  %v1281_v34 = vmul.f32 %v1193_v27, %v1193_v27  ;;  %v1680_v35 = vadd.f32 %v1679_v30, %v1678_v19  ;;  %v1681_v36 = vpop.f32.mrb[26].mxu1  ;;  %v1588_v37 = vpop.f32.mrb[27].mxu0 }
 0x12a   :  { %v1316_v38 = vadd.f32 %v1315_v32, %v1314_v10  ;;  %1031 = vst.msk [vmem:[%s2393_s4 + $0x2c] sm:$0xf] %vm1019_vm2, %v1517_v26  ;;  %v1232_v39 = vadd.f32 %v1231_v33, %v1230_v24  ;;  %v724_v40 = vadd.f32 %v1586_v28, %v2132_v25  ;;  %v1589_v41 = vadd.f32 %v1588_v37, %v1587_v31  ;;  %v1682_v42 = vpop.f32.mrb[27].mxu1 }
 0x12b   :  { %v1317_v43 = vsel %vm63_vm0, %v1281_v34, 0.0  ;;  %v1683_v44 = vadd.f32 %v1682_v42, %v1681_v36  ;;  %v1065_v26 = vadd.s32 128, %v2127_v22  ;;  %v1066_v27 = vadd.s32 136, %v2127_v22 }
 0x12c   :  { %v1318_v45 = vadd.f32 %v1317_v43, %v1316_v38  ;;  %v861_v46 = vadd.f32 %v1680_v35, %v724_v40  ;;  %v727_v47 = vadd.f32 %v1589_v41, %v2132_v25 }
 0x12d   :  { %vm1120_vm4 = vcmp.lt.s32.totalorder %v1065_v26, %v2137_v29  ;;  %vm1121_vm5 = vcmp.lt.s32.totalorder %v1066_v27, %v2137_v29 }
 0x12e   :  { %v1518_v48 = vpack.c.bf16 %v861_v46, %v861_v46  ;;  %v1194_v49 = vsel %vm1116_vm14, %v861_v46, 0.0  ;;  %v864_v50 = vadd.f32 %v1683_v44, %v727_v47  ;;  %v1590_v51 = vpop.f32.mrb[28].mxu0 }
 0x12f   :  { %v1233_v52 = vsel %vm63_vm0, %v1194_v49, 0.0  ;;  %v1282_v53 = vmul.f32 %v1194_v49, %v1194_v49  ;;  %v1684_v54 = vpop.f32.mrb[28].mxu1  ;;  %v1591_v55 = vpop.f32.mrb[29].mxu0 }
 0x130   :  { %1032 = vst.msk [vmem:[%s2393_s4 + $0x30] sm:$0xf] %vm1019_vm2, %v1518_v48  ;;  %v1234_v58 = vadd.f32 %v1233_v52, %v1232_v39  ;;  %v1519_v59 = vpack.c.bf16 %v864_v50, %v864_v50  ;;  %v1195_v60 = vsel %vm1117_vm15, %v864_v50, 0.0  ;;  %v1592_v61 = vadd.f32 %v1591_v55, %v1590_v51  ;;  %v1685_v62 = vpop.f32.mrb[29].mxu1  ;;  %v1593_v63 = vpop.f32.mrb[30].mxu0 }
 0x131   :  { %v1319_v0 = vsel %vm63_vm0, %v1282_v53, 0.0  ;;  %v1235_v1 = vsel %vm63_vm0, %v1195_v60, 0.0  ;;  %v1283_v2 = vmul.f32 %v1195_v60, %v1195_v60  ;;  %v1686_v3 = vadd.f32 %v1685_v62, %v1684_v54  ;;  %v1687_v4 = vpop.f32.mrb[30].mxu1  ;;  %v1594_v5 = vpop.f32.mrb[31].mxu0 }
 0x132   :  { %v1320_v6 = vadd.f32 %v1319_v0, %v1318_v45  ;;  %1033 = vst.msk [vmem:[%s2393_s4 + $0x34] sm:$0xf] %vm1019_vm2, %v1519_v59  ;;  %v1236_v7 = vadd.f32 %v1235_v1, %v1234_v58  ;;  %v732_v8 = vadd.f32 %v1592_v61, %v2132_v25  ;;  %v1595_v9 = vadd.f32 %v1594_v5, %v1593_v63  ;;  %v1688_v10 = vpop.f32.mrb[31].mxu1 }
 0x133   :  { %v1321_v11 = vsel %vm63_vm0, %v1283_v2, 0.0  ;;  %v1689_v12 = vadd.f32 %v1688_v10, %v1687_v4  ;;  %v1067_v59 = vadd.s32 144, %v2127_v22  ;;  %v1068_v60 = vadd.s32 152, %v2127_v22 }
 0x134   :  { %v1322_v13 = vadd.f32 %v1321_v11, %v1320_v6  ;;  %v869_v14 = vadd.f32 %v1686_v3, %v732_v8  ;;  %v735_v15 = vadd.f32 %v1595_v9, %v2132_v25 }
 0x135   :  { %vm1122_vm6 = vcmp.lt.s32.totalorder %v1067_v59, %v2137_v29  ;;  %vm1123_vm7 = vcmp.lt.s32.totalorder %v1068_v60, %v2137_v29 }
 0x136   :  { %v1520_v16 = vpack.c.bf16 %v869_v14, %v869_v14  ;;  %v1196_v17 = vsel %vm1118_vm1, %v869_v14, 0.0  ;;  %v872_v18 = vadd.f32 %v1689_v12, %v735_v15  ;;  %v1596_v19 = vpop.f32.mrb[32].mxu0 }
 0x137   :  { %v1237_v20 = vsel %vm63_vm0, %v1196_v17, 0.0  ;;  %v1284_v21 = vmul.f32 %v1196_v17, %v1196_v17  ;;  %v1690_v23 = vpop.f32.mrb[32].mxu1  ;;  %v1597_v24 = vpop.f32.mrb[33].mxu0 }
 0x138   :  { %1034 = vst.msk [vmem:[%s2393_s4 + $0x38] sm:$0xf] %vm1019_vm2, %v1520_v16  ;;  %v1238_v28 = vadd.f32 %v1237_v20, %v1236_v7  ;;  %v1521_v30 = vpack.c.bf16 %v872_v18, %v872_v18  ;;  %v1197_v31 = vsel %vm1119_vm3, %v872_v18, 0.0  ;;  %v1598_v32 = vadd.f32 %v1597_v24, %v1596_v19  ;;  %v1691_v33 = vpop.f32.mrb[33].mxu1  ;;  %v1599_v34 = vpop.f32.mrb[34].mxu0 }
 0x139   :  { %v1323_v35 = vsel %vm63_vm0, %v1284_v21, 0.0  ;;  %v1239_v36 = vsel %vm63_vm0, %v1197_v31, 0.0  ;;  %v1285_v37 = vmul.f32 %v1197_v31, %v1197_v31  ;;  %v1692_v38 = vadd.f32 %v1691_v33, %v1690_v23  ;;  %v1693_v39 = vpop.f32.mrb[34].mxu1  ;;  %v1600_v40 = vpop.f32.mrb[35].mxu0 }
 0x13a   :  { %v1324_v41 = vadd.f32 %v1323_v35, %v1322_v13  ;;  %1035 = vst.msk [vmem:[%s2393_s4 + $0x3c] sm:$0xf] %vm1019_vm2, %v1521_v30  ;;  %v1240_v42 = vadd.f32 %v1239_v36, %v1238_v28  ;;  %v740_v43 = vadd.f32 %v1598_v32, %v2132_v25  ;;  %v1601_v44 = vadd.f32 %v1600_v40, %v1599_v34  ;;  %v1694_v45 = vpop.f32.mrb[35].mxu1 }
 0x13b   :  { %v1325_v46 = vsel %vm63_vm0, %v1285_v37, 0.0  ;;  %v1695_v47 = vadd.f32 %v1694_v45, %v1693_v39  ;;  %v1069_v30 = vadd.s32 160, %v2127_v22  ;;  %v1070_v31 = vadd.s32 168, %v2127_v22 }
 0x13c   :  { %v1326_v48 = vadd.f32 %v1325_v46, %v1324_v41  ;;  %v877_v49 = vadd.f32 %v1692_v38, %v740_v43  ;;  %v743_v50 = vadd.f32 %v1601_v44, %v2132_v25 }
 0x13d   :  { %vm1124_vm8 = vcmp.lt.s32.totalorder %v1069_v30, %v2137_v29  ;;  %vm1125_vm9 = vcmp.lt.s32.totalorder %v1070_v31, %v2137_v29 }
 0x13e   :  { %v1522_v51 = vpack.c.bf16 %v877_v49, %v877_v49  ;;  %v1198_v52 = vsel %vm1120_vm4, %v877_v49, 0.0  ;;  %v880_v53 = vadd.f32 %v1695_v47, %v743_v50  ;;  %v1602_v54 = vpop.f32.mrb[36].mxu0 }
 0x13f   :  { %v1241_v55 = vsel %vm63_vm0, %v1198_v52, 0.0  ;;  %v1286_v56 = vmul.f32 %v1198_v52, %v1198_v52  ;;  %v1696_v57 = vpop.f32.mrb[36].mxu1  ;;  %v1603_v58 = vpop.f32.mrb[37].mxu0 }
 0x140   :  { %1036 = vst.msk [vmem:[%s2393_s4 + $0x40] sm:$0xf] %vm1019_vm2, %v1522_v51  ;;  %v1242_v61 = vadd.f32 %v1241_v55, %v1240_v42  ;;  %v1523_v62 = vpack.c.bf16 %v880_v53, %v880_v53  ;;  %v1199_v63 = vsel %vm1121_vm5, %v880_v53, 0.0  ;;  %v1604_v0 = vadd.f32 %v1603_v58, %v1602_v54  ;;  %v1697_v1 = vpop.f32.mrb[37].mxu1  ;;  %v1605_v2 = vpop.f32.mrb[38].mxu0 }
 0x141   :  { %v1327_v3 = vsel %vm63_vm0, %v1286_v56, 0.0  ;;  %v1243_v4 = vsel %vm63_vm0, %v1199_v63, 0.0  ;;  %v1287_v5 = vmul.f32 %v1199_v63, %v1199_v63  ;;  %v1698_v6 = vadd.f32 %v1697_v1, %v1696_v57  ;;  %v1699_v7 = vpop.f32.mrb[38].mxu1  ;;  %v1606_v8 = vpop.f32.mrb[39].mxu0 }
 0x142   :  { %v1328_v9 = vadd.f32 %v1327_v3, %v1326_v48  ;;  %1037 = vst.msk [vmem:[%s2393_s4 + $0x44] sm:$0xf] %vm1019_vm2, %v1523_v62  ;;  %v1244_v10 = vadd.f32 %v1243_v4, %v1242_v61  ;;  %v748_v11 = vadd.f32 %v1604_v0, %v2132_v25  ;;  %v1607_v12 = vadd.f32 %v1606_v8, %v1605_v2  ;;  %v1700_v13 = vpop.f32.mrb[39].mxu1 }
 0x143   :  { %v1329_v14 = vsel %vm63_vm0, %v1287_v5, 0.0  ;;  %v1701_v15 = vadd.f32 %v1700_v13, %v1699_v7  ;;  %v1071_v62 = vadd.s32 176, %v2127_v22  ;;  %v1072_v63 = vadd.s32 184, %v2127_v22 }
 0x144   :  { %v1330_v16 = vadd.f32 %v1329_v14, %v1328_v9  ;;  %v885_v17 = vadd.f32 %v1698_v6, %v748_v11  ;;  %v751_v18 = vadd.f32 %v1607_v12, %v2132_v25 }
 0x145   :  { %vm1126_vm10 = vcmp.lt.s32.totalorder %v1071_v62, %v2137_v29  ;;  %vm1127_vm11 = vcmp.lt.s32.totalorder %v1072_v63, %v2137_v29 }
 0x146   :  { %v1524_v19 = vpack.c.bf16 %v885_v17, %v885_v17  ;;  %v1200_v20 = vsel %vm1122_vm6, %v885_v17, 0.0  ;;  %v888_v21 = vadd.f32 %v1701_v15, %v751_v18  ;;  %v1608_v23 = vpop.f32.mrb[40].mxu0 }
 0x147   :  { %v1245_v24 = vsel %vm63_vm0, %v1200_v20, 0.0  ;;  %v1288_v26 = vmul.f32 %v1200_v20, %v1200_v20  ;;  %v1702_v27 = vpop.f32.mrb[40].mxu1  ;;  %v1609_v28 = vpop.f32.mrb[41].mxu0 }
 0x148   :  { %1038 = vst.msk [vmem:[%s2393_s4 + $0x48] sm:$0xf] %vm1019_vm2, %v1524_v19  ;;  %v1246_v32 = vadd.f32 %v1245_v24, %v1244_v10  ;;  %v1525_v33 = vpack.c.bf16 %v888_v21, %v888_v21  ;;  %v1201_v34 = vsel %vm1123_vm7, %v888_v21, 0.0  ;;  %v1610_v35 = vadd.f32 %v1609_v28, %v1608_v23  ;;  %v1703_v36 = vpop.f32.mrb[41].mxu1  ;;  %v1611_v37 = vpop.f32.mrb[42].mxu0 }
 0x149   :  { %v1331_v38 = vsel %vm63_vm0, %v1288_v26, 0.0  ;;  %v1247_v39 = vsel %vm63_vm0, %v1201_v34, 0.0  ;;  %v1289_v40 = vmul.f32 %v1201_v34, %v1201_v34  ;;  %v1704_v41 = vadd.f32 %v1703_v36, %v1702_v27  ;;  %v1705_v42 = vpop.f32.mrb[42].mxu1  ;;  %v1612_v43 = vpop.f32.mrb[43].mxu0 }
 0x14a   :  { %v1332_v44 = vadd.f32 %v1331_v38, %v1330_v16  ;;  %1039 = vst.msk [vmem:[%s2393_s4 + $0x4c] sm:$0xf] %vm1019_vm2, %v1525_v33  ;;  %v1248_v45 = vadd.f32 %v1247_v39, %v1246_v32  ;;  %v756_v46 = vadd.f32 %v1610_v35, %v2132_v25  ;;  %v1613_v47 = vadd.f32 %v1612_v43, %v1611_v37  ;;  %v1706_v48 = vpop.f32.mrb[43].mxu1 }
 0x14b   :  { %v1333_v49 = vsel %vm63_vm0, %v1289_v40, 0.0  ;;  %v1707_v50 = vadd.f32 %v1706_v48, %v1705_v42  ;;  %v1073_v33 = vadd.s32 192, %v2127_v22  ;;  %v1074_v34 = vadd.s32 200, %v2127_v22 }
 0x14c   :  { %v1334_v51 = vadd.f32 %v1333_v49, %v1332_v44  ;;  %v893_v52 = vadd.f32 %v1704_v41, %v756_v46  ;;  %v759_v53 = vadd.f32 %v1613_v47, %v2132_v25 }
 0x14d   :  { %vm1128_vm12 = vcmp.lt.s32.totalorder %v1073_v33, %v2137_v29  ;;  %vm1129_vm13 = vcmp.lt.s32.totalorder %v1074_v34, %v2137_v29 }
 0x14e   :  { %v1526_v54 = vpack.c.bf16 %v893_v52, %v893_v52  ;;  %v1202_v55 = vsel %vm1124_vm8, %v893_v52, 0.0  ;;  %v896_v56 = vadd.f32 %v1707_v50, %v759_v53  ;;  %v1614_v57 = vpop.f32.mrb[44].mxu0 }
 0x14f   :  { %v1249_v58 = vsel %vm63_vm0, %v1202_v55, 0.0  ;;  %v1290_v59 = vmul.f32 %v1202_v55, %v1202_v55  ;;  %v1708_v60 = vpop.f32.mrb[44].mxu1  ;;  %v1615_v61 = vpop.f32.mrb[45].mxu0 }
 0x150   :  { %1040 = vst.msk [vmem:[%s2393_s4 + $0x50] sm:$0xf] %vm1019_vm2, %v1526_v54  ;;  %v1250_v0 = vadd.f32 %v1249_v58, %v1248_v45  ;;  %v1527_v1 = vpack.c.bf16 %v896_v56, %v896_v56  ;;  %v1203_v2 = vsel %vm1125_vm9, %v896_v56, 0.0  ;;  %v1616_v3 = vadd.f32 %v1615_v61, %v1614_v57  ;;  %v1709_v4 = vpop.f32.mrb[45].mxu1  ;;  %v1617_v5 = vpop.f32.mrb[46].mxu0 }
 0x151   :  { %v1335_v6 = vsel %vm63_vm0, %v1290_v59, 0.0  ;;  %v1251_v7 = vsel %vm63_vm0, %v1203_v2, 0.0  ;;  %v1291_v8 = vmul.f32 %v1203_v2, %v1203_v2  ;;  %v1710_v9 = vadd.f32 %v1709_v4, %v1708_v60  ;;  %v1711_v10 = vpop.f32.mrb[46].mxu1  ;;  %v1618_v11 = vpop.f32.mrb[47].mxu0 }
 0x152   :  { %v1336_v12 = vadd.f32 %v1335_v6, %v1334_v51  ;;  %1041 = vst.msk [vmem:[%s2393_s4 + $0x54] sm:$0xf] %vm1019_vm2, %v1527_v1  ;;  %v1252_v13 = vadd.f32 %v1251_v7, %v1250_v0  ;;  %v764_v14 = vadd.f32 %v1616_v3, %v2132_v25  ;;  %v1619_v15 = vadd.f32 %v1618_v11, %v1617_v5  ;;  %v1712_v16 = vpop.f32.mrb[47].mxu1 }
 0x153   :  { %v1337_v17 = vsel %vm63_vm0, %v1291_v8, 0.0  ;;  %v1713_v18 = vadd.f32 %v1712_v16, %v1711_v10 }
 0x154   :  { %v1338_v19 = vadd.f32 %v1337_v17, %v1336_v12  ;;  %v901_v20 = vadd.f32 %v1710_v9, %v764_v14  ;;  %v767_v21 = vadd.f32 %v1619_v15, %v2132_v25  ;;  %v1208_v14 = vld [vmem:[%s2389_s5] sm:$0xff] }
 0x155   :  { %v1269_v17 = vld [vmem:[%s2390_s6] sm:$0xff] }
 0x156   :  { %v1528_v23 = vpack.c.bf16 %v901_v20, %v901_v20  ;;  %v1204_v24 = vsel %vm1126_vm10, %v901_v20, 0.0  ;;  %v904_v26 = vadd.f32 %v1713_v18, %v767_v21  ;;  %v1620_v27 = vpop.f32.mrb[48].mxu0 }
 0x157   :  { %v1253_v28 = vsel %vm63_vm0, %v1204_v24, 0.0  ;;  %v1292_v30 = vmul.f32 %v1204_v24, %v1204_v24  ;;  %v1714_v31 = vpop.f32.mrb[48].mxu1  ;;  %v1621_v32 = vpop.f32.mrb[49].mxu0 }
 0x158   :  { %1042 = vst.msk [vmem:[%s2393_s4 + $0x58] sm:$0xf] %vm1019_vm2, %v1528_v23  ;;  %v1254_v35 = vadd.f32 %v1253_v28, %v1252_v13  ;;  %v1529_v36 = vpack.c.bf16 %v904_v26, %v904_v26  ;;  %v1205_v37 = vsel %vm1127_vm11, %v904_v26, 0.0  ;;  %v1622_v38 = vadd.f32 %v1621_v32, %v1620_v27  ;;  %v1715_v39 = vpop.f32.mrb[49].mxu1  ;;  %v1623_v40 = vpop.f32.mrb[50].mxu0 }
 0x159   :  { %v1339_v41 = vsel %vm63_vm0, %v1292_v30, 0.0  ;;  %v1255_v42 = vsel %vm63_vm0, %v1205_v37, 0.0  ;;  %v1293_v43 = vmul.f32 %v1205_v37, %v1205_v37  ;;  %v1716_v44 = vadd.f32 %v1715_v39, %v1714_v31  ;;  %v1717_v45 = vpop.f32.mrb[50].mxu1  ;;  %v1624_v46 = vpop.f32.mrb[51].mxu0 }
 0x15a   :  { %v1340_v22 = vadd.f32 %v1339_v41, %v1338_v19  ;;  %1043 = vst.msk [vmem:[%s2393_s4 + $0x5c] sm:$0xf] %vm1019_vm2, %v1529_v36  ;;  %v1256_v47 = vadd.f32 %v1255_v42, %v1254_v35  ;;  %v772_v48 = vadd.f32 %v1622_v38, %v2132_v25  ;;  %v1625_v49 = vadd.f32 %v1624_v46, %v1623_v40  ;;  %v1718_v50 = vpop.f32.mrb[51].mxu1 }
 0x15b   :  { %v1341_v51 = vsel %vm63_vm0, %v1293_v43, 0.0  ;;  %v1719_v52 = vadd.f32 %v1718_v50, %v1717_v45 }
 0x15c   :  { %v1342_v53 = vadd.f32 %v1341_v51, %v1340_v22  ;;  %v909_v54 = vadd.f32 %v1716_v44, %v772_v48  ;;  %v775_v55 = vadd.f32 %v1625_v49, %v2132_v25 }
 0x15e   :  { %v1530_v56 = vpack.c.bf16 %v909_v54, %v909_v54  ;;  %v1206_v57 = vsel %vm1128_vm12, %v909_v54, 0.0  ;;  %v912_v58 = vadd.f32 %v1719_v52, %v775_v55 }
 0x15f   :  { %v1257_v59 = vsel %vm63_vm0, %v1206_v57, 0.0  ;;  %v1294_v60 = vmul.f32 %v1206_v57, %v1206_v57 }
 0x160   :  { %1044 = vst.msk [vmem:[%s2393_s4 + $0x60] sm:$0xf] %vm1019_vm2, %v1530_v56  ;;  %v1258_v61 = vadd.f32 %v1257_v59, %v1256_v47  ;;  %v1531_v62 = vpack.c.bf16 %v912_v58, %v912_v58  ;;  %v1207_v63 = vsel %vm1129_vm13, %v912_v58, 0.0 }
 0x161   :  { %v1343_v0 = vsel %vm63_vm0, %v1294_v60, 0.0  ;;  %v1259_v25 = vsel %vm63_vm0, %v1207_v63, 0.0  ;;  %v1295_v1 = vmul.f32 %v1207_v63, %v1207_v63 }
 0x162   :  { %v1344_v29 = vadd.f32 %v1343_v0, %v1342_v53  ;;  %1045 = vst.msk [vmem:[%s2393_s4 + $0x64] sm:$0xf] %vm1019_vm2, %v1531_v62  ;;  %v1260_v2 = vadd.f32 %v1259_v25, %v1258_v61 }
 0x163   :  { %v1345_v3 = vsel %vm63_vm0, %v1295_v1, 0.0 }
 0x164   :  { %v1261_v4 = vrot.slane %v1260_v2, 4  ;;  %v1346_v5 = vadd.f32 %v1345_v3, %v1344_v29 }
 0x166   :  { %v1262_v6 = vadd.f32 %v1261_v4, %v1260_v2  ;;  %v1347_v7 = vrot.slane %v1346_v5, 4 }
 0x168   :  { %v1263_v8 = vrot.slane %v1262_v6, 2  ;;  %v1348_v9 = vadd.f32 %v1347_v7, %v1346_v5 }
 0x16a   :  { %v1264_v10 = vadd.f32 %v1263_v8, %v1262_v6  ;;  %v1349_v11 = vrot.slane %v1348_v9, 2 }
 0x16c   :  { %v1265_v12 = vrot.slane %v1264_v10, 1  ;;  %v1350_v13 = vadd.f32 %v1349_v11, %v1348_v9 }
 0x16e   :  { %v1266_v15 = vadd.f32 %v1265_v12, %v1264_v10  ;;  %v1351_v16 = vrot.slane %v1350_v13, 1 }
 0x170   :  { %v1267_v18 = vadd.f32 %v1266_v15, %v1208_v14  ;;  %v1352_v19 = vadd.f32 %v1351_v16, %v1350_v13 }
 0x172   :  { %1268 = vst.msk [vmem:[%s2389_s5] sm:$0xff] %vm63_vm0, %v1267_v18  ;;  %v1353_v20 = vadd.f32 %v1352_v19, %v1269_v17 }
 0x174   :  { %1354 = vst.msk [vmem:[%s2390_s6] sm:$0xff] %vm63_vm0, %v1353_v20 }

// kernel: encoder_forward.7
= control target key start
LH: loop header
LB: loop body
LE: loop exit
PB: predicated region body
PF: predicated region fallthrough
CT: control target
= control target key end

     0   :  { %v121_v22 = vlaneseq  ;;  %v1170_v49 = vmov 0.0   ;;  %s1515_s4 = inlined_call_operand.vmem [shape: bf16[576,128], index: 4, kind: input, shape index: {}]   ;;  %s1516_s1 = inlined_call_operand.vmem [shape: bf16[48,576], index: 1, kind: input, shape index: {}]   ;;  %s1517_s2 = inlined_call_operand.vmem [shape: f32[1,576], index: 2, kind: input, shape index: {}]   ;;  %s1518_s3 = inlined_call_operand.vmem [shape: f32[1,576], index: 3, kind: input, shape index: {}]   ;;  %s1519_s5 = inlined_call_operand.vmem [shape: f32[1,128], index: 5, kind: input, shape index: {}]   ;;  %s1520_s0 = inlined_call_operand.<no memory space> [shape: s32[1], index: 0, kind: input, shape index: {}]   ;;  %s1521_s6 = inlined_call_operand.vmem [shape: bf16[48,128], index: 6, kind: output, shape index: {0}]   ;;  %s1522_s7 = inlined_call_operand.vmem [shape: f32[8,128], index: 7, kind: output, shape index: {1}]   ;;  %s1523_s8 = inlined_call_operand.vmem [shape: f32[8,128], index: 8, kind: output, shape index: {2}]  }
   0x1   :  { %v1134_v0 = vld [vmem:[%s1515_s4 + $0x40] sm:$0xff]   ;;  %v1138_v4 = vld [vmem:[%s1515_s4 + $0x48] sm:$0xff]   ;;  %v1142_v8 = vld [vmem:[%s1515_s4 + $0x50] sm:$0xff]  }
   0x2   :  { %v1135_v1 = vld [vmem:[%s1515_s4 + $0xc0] sm:$0xff]   ;;  %1029 = vmatprep.subr.bf16.mxu0 %v1134_v0  ;;  %v1139_v5 = vld [vmem:[%s1515_s4 + $0xc8] sm:$0xff]   ;;  %v1143_v9 = vld [vmem:[%s1515_s4 + $0xd0] sm:$0xff]   ;;  %v1295_v27 = vshrl.u32 %v121_v22, 7 }
   0x3   :  { %v1136_v2 = vld [vmem:[%s1515_s4] sm:$0xff]   ;;  %1063 = vmatprep.subr.bf16.mxu1 %v1135_v1  ;;  %v1140_v6 = vld [vmem:[%s1515_s4 + $0x8] sm:$0xff]   ;;  %v1144_v10 = vld [vmem:[%s1515_s4 + $0x10] sm:$0xff]  }
   0x4   :  { %v1137_v3 = vld [vmem:[%s1515_s4 + $0x80] sm:$0xff]   ;;  %1030 = vmatpush3.bf16.msra.mxu0 %v1136_v2  ;;  %v1141_v7 = vld [vmem:[%s1515_s4 + $0x88] sm:$0xff]   ;;  %v1145_v11 = vld [vmem:[%s1515_s4 + $0x90] sm:$0xff]   ;;  %v127_v32 = vsub.s32 1, %v1295_v27  ;;  %v139_v34 = vsub.s32 4, %v1295_v27  ;;  %v135_v36 = vsub.s32 3, %v1295_v27 }
   0x5   :  { %1064 = vmatpush3.bf16.msra.mxu1 %v1137_v3  ;;  %1031 = vmatprep.subr.bf16.mxu0 %v1138_v4  ;;  %v1146_v12 = vld [vmem:[%s1515_s4 + $0x58] sm:$0xff]   ;;  %v1150_v16 = vld [vmem:[%s1515_s4 + $0x60] sm:$0xff]   ;;  %v1154_v20 = vld [vmem:[%s1515_s4 + $0x68] sm:$0xff]   ;;  %v123_v40 = vsub.s32 0, %v1295_v27  ;;  %v131_v41 = vsub.s32 2, %v1295_v27 }
   0x6   :  { %1065 = vmatprep.subr.bf16.mxu1 %v1139_v5  ;;  %v1147_v13 = vld [vmem:[%s1515_s4 + $0xd8] sm:$0xff]   ;;  %v1151_v17 = vld [vmem:[%s1515_s4 + $0xe0] sm:$0xff]   ;;  %v1155_v21 = vld [vmem:[%s1515_s4 + $0xe8] sm:$0xff]  }
   0x7   :  { %v1148_v14 = vld [vmem:[%s1515_s4 + $0x18] sm:$0xff]   ;;  %v1152_v18 = vld [vmem:[%s1515_s4 + $0x20] sm:$0xff]   ;;  %v1156_v23 = vld [vmem:[%s1515_s4 + $0x28] sm:$0xff]  }
   0x8   :  { %1032 = vmatpush3.bf16.msra.mxu0 %v1140_v6  ;;  %v1149_v15 = vld [vmem:[%s1515_s4 + $0x98] sm:$0xff]   ;;  %v1153_v19 = vld [vmem:[%s1515_s4 + $0xa0] sm:$0xff]   ;;  %v1157_v24 = vld [vmem:[%s1515_s4 + $0xa8] sm:$0xff]  }
   0x9   :  { %1066 = vmatpush3.bf16.msra.mxu1 %v1141_v7  ;;  %1033 = vmatprep.subr.bf16.mxu0 %v1142_v8  ;;  %v1158_v25 = vld [vmem:[%s1515_s4 + $0x70] sm:$0xff]   ;;  %v1162_v30 = vld [vmem:[%s1515_s4 + $0x78] sm:$0xff]   ;;  %v71_v37 = vld [vmem:[%s1516_s1] sm:$0xff] }
   0xa   :  { %1067 = vmatprep.subr.bf16.mxu1 %v1143_v9  ;;  %v1159_v26 = vld [vmem:[%s1515_s4 + $0xf0] sm:$0xff]   ;;  %v1163_v31 = vld [vmem:[%s1515_s4 + $0xf8] sm:$0xff]   ;;  %v119_v39 = vld [vmem:[%s1517_s2] sm:$0x1f]  ;;  %v89_v42 = vunpack.c.l.bf16 %v71_v37  ;;  %v90_v43 = vunpack.c.h.bf16 %v71_v37 }
   0xb   :  { %v1160_v28 = vld [vmem:[%s1515_s4 + $0x30] sm:$0xff]   ;;  %v1164_v33 = vld [vmem:[%s1515_s4 + $0x38] sm:$0xff]   ;;  %v176_v46 = vld [vmem:[%s1518_s3] sm:$0x1f]  ;;  %v1339_v50 = vrot.slane %v119_v39, %v127_v32  ;;  %v1341_v51 = vrot.slane %v119_v39, %v139_v34  ;;  %v1350_v60 = vrot.slane %v119_v39, %v135_v36  ;;  %v1354_v62 = vrot.slane %v119_v39, %v123_v40 }
   0xc   :  { %1034 = vmatpush3.bf16.msra.mxu0 %v1144_v10  ;;  %v1161_v29 = vld [vmem:[%s1515_s4 + $0xb0] sm:$0xff]   ;;  %v1165_v35 = vld [vmem:[%s1515_s4 + $0xb8] sm:$0xff]   ;;  %v72_v47 = vld [vmem:[%s1516_s1 + $0x8] sm:$0xff]  ;;  %v1343_v52 = vrot.slane %v176_v46, %v127_v32  ;;  %v1345_v53 = vrot.slane %v176_v46, %v139_v34  ;;  %v1352_v61 = vrot.slane %v176_v46, %v135_v36  ;;  %v1356_v63 = vrot.slane %v176_v46, %v123_v40 }
   0xd   :  { %1068 = vmatpush3.bf16.msra.mxu1 %v1145_v11  ;;  %1035 = vmatprep.subr.bf16.mxu0 %v1146_v12  ;;  %v74_v38 = vld [vmem:[%s1516_s1 + $0x14] sm:$0xff]  ;;  %v75_v48 = vld [vmem:[%s1516_s1 + $0x1c] sm:$0xff]  ;;  %v91_v54 = vunpack.c.l.bf16 %v72_v47  ;;  %v92_v55 = vunpack.c.h.bf16 %v72_v47  ;;  %v147_v58 = vmul.f32 %v1339_v50, %v90_v43  ;;  %v1358_v0 = vrot.slane %v119_v39, %v131_v41  ;;  %v77_v22 = vld [vmem:[%s1516_s1 + $0x28] sm:$0xff] }
   0xe   :  { %1069 = vmatprep.subr.bf16.mxu1 %v1147_v13  ;;  %v94_v44 = vunpack.c.l.bf16 %v74_v38  ;;  %v95_v45 = vunpack.c.h.bf16 %v74_v38  ;;  %v96_v56 = vunpack.c.l.bf16 %v75_v48  ;;  %v97_v57 = vunpack.c.h.bf16 %v75_v48  ;;  %v1388_v34 = vld [vmem:[%s1516_s1 + $0x44] sm:$0xff]  ;;  %v1399_v48 = vld [vmem:[%s1516_s1 + $0x50] sm:$0xff] }
   0xf   :  { %v1360_v1 = vrot.slane %v176_v46, %v131_v41  ;;  %v204_v2 = vadd.f32 %v1343_v52, %v147_v58  ;;  %v149_v4 = vmul.f32 %v1350_v60, %v92_v55  ;;  %v146_v6 = vmul.f32 %v1354_v62, %v89_v42  ;;  %v1166_v37 = vld [vmem:[%s1515_s4 + $0x100] sm:$0xff]  }
  0x10   :  { %1036 = vmatpush3.bf16.msra.mxu0 %v1148_v14  ;;  %v152_v59 = vmul.f32 %v1339_v50, %v95_v45  ;;  %v154_v5 = vmul.f32 %v1350_v60, %v97_v57  ;;  %v151_v7 = vmul.f32 %v1354_v62, %v94_v44  ;;  %v148_v8 = vmul.f32 %v1358_v0, %v91_v54 }
  0x11   :  { %1070 = vmatpush3.bf16.msra.mxu1 %v1149_v15  ;;  %1037 = vmatprep.subr.bf16.mxu0 %v1150_v16  ;;  %v153_v9 = vmul.f32 %v1358_v0, %v96_v56  ;;  %vm234_vm0 = vcmp.ge.f32.partialorder %v204_v2, 0.0  ;;  %v264_v10 = vmul.f32 0.01, %v204_v2  ;;  %v206_v12 = vadd.f32 %v1352_v61, %v149_v4 }
  0x12   :  { %1071 = vmatprep.subr.bf16.mxu1 %v1151_v17  ;;  %v209_v3 = vadd.f32 %v1343_v52, %v152_v59  ;;  %v211_v13 = vadd.f32 %v1352_v61, %v154_v5  ;;  %v203_v14 = vadd.f32 %v1356_v63, %v146_v6  ;;  %v208_v15 = vadd.f32 %v1356_v63, %v151_v7 }
  0x13   :  { %v294_v16 = vsel %vm234_vm0, %v204_v2, %v264_v10  ;;  %vm236_vm2 = vcmp.ge.f32.partialorder %v206_v12, 0.0  ;;  %v100_v38 = vunpack.c.h.bf16 %v77_v22  ;;  %v107_v47 = vunpack.c.h.bf16 %v1388_v34 }
  0x14   :  { %1038 = vmatpush3.bf16.msra.mxu0 %v1152_v18  ;;  %vm239_vm1 = vcmp.ge.f32.partialorder %v209_v3, 0.0  ;;  %v269_v11 = vmul.f32 0.01, %v209_v3  ;;  %v205_v18 = vadd.f32 %v1360_v1, %v148_v8  ;;  %vm241_vm3 = vcmp.ge.f32.partialorder %v211_v13, 0.0 }
  0x15   :  { %1072 = vmatpush3.bf16.msra.mxu1 %v1153_v19  ;;  %1039 = vmatprep.subr.bf16.mxu0 %v1154_v20  ;;  %v210_v19 = vadd.f32 %v1360_v1, %v153_v9  ;;  %vm233_vm4 = vcmp.ge.f32.partialorder %v203_v14, 0.0  ;;  %vm238_vm5 = vcmp.ge.f32.partialorder %v208_v15, 0.0  ;;  %v157_v45 = vmul.f32 %v1339_v50, %v100_v38 }
  0x16   :  { %1073 = vmatprep.subr.bf16.mxu1 %v1155_v21  ;;  %v299_v17 = vsel %vm239_vm1, %v209_v3, %v269_v11  ;;  %v266_v21 = vmul.f32 0.01, %v206_v12  ;;  %vm235_vm6 = vcmp.ge.f32.partialorder %v205_v18, 0.0  ;;  %v265_v32 = vmul.f32 0.01, %v205_v18  ;;  %v1167_v3 = vld [vmem:[%s1515_s4 + $0x108] sm:$0xff]  }
  0x17   :  { %v324_v20 = vpack.c.bf16 %v299_v17, %v294_v16  ;;  %vm240_vm7 = vcmp.ge.f32.partialorder %v210_v19, 0.0  ;;  %v99_v55 = vunpack.c.l.bf16 %v77_v22  ;;  %v214_v58 = vadd.f32 %v1343_v52, %v157_v45 }
  0x18   :  { %1040 = vmatpush3.bf16.msra.mxu0 %v1156_v23  ;;  %v80_v23 = vld [vmem:[%s1516_s1 + $0x3c] sm:$0xff]  ;;  %v295_v41 = vsel %vm235_vm6, %v205_v18, %v265_v32  ;;  %v164_v2 = vmul.f32 %v1350_v60, %v107_v47  ;;  %v106_v4 = vunpack.c.l.bf16 %v1388_v34  ;;  %v110_v8 = vunpack.c.h.bf16 %v1399_v48  ;;  %v1168_v18 = vld [vmem:[%s1515_s4 + $0x110] sm:$0xff]  }
  0x19   :  { %1074 = vmatpush3.bf16.msra.mxu1 %v1157_v24  ;;  %1041 = vmatprep.subr.bf16.mxu0 %v1158_v25  ;;  %v271_v24 = vmul.f32 0.01, %v211_v13  ;;  %v263_v25 = vmul.f32 0.01, %v203_v14  ;;  %v105_v39 = vunpack.c.h.bf16 %v80_v23  ;;  %v104_v56 = vunpack.c.l.bf16 %v80_v23 }
  0x1a   :  { %1075 = vmatprep.subr.bf16.mxu1 %v1159_v26  ;;  %675 = vmatprep.mubr.bf16.mxu0 %v324_v20  ;;  %v296_v26 = vsel %vm236_vm2, %v206_v12, %v266_v21  ;;  %v156_v6 = vmul.f32 %v1354_v62, %v99_v55  ;;  %vm244_vm8 = vcmp.ge.f32.partialorder %v214_v58, 0.0  ;;  %v274_v9 = vmul.f32 0.01, %v214_v58 }
  0x1b   :  { %v162_v46 = vmul.f32 %v1339_v50, %v105_v39  ;;  %v161_v7 = vmul.f32 %v1354_v62, %v104_v56  ;;  %v221_v11 = vadd.f32 %v1352_v61, %v164_v2 }
  0x1c   :  { %1042 = vmatpush3.bf16.msra.mxu0 %v1160_v28  ;;  %v268_v28 = vmul.f32 0.01, %v208_v15 }
  0x1d   :  { %1076 = vmatpush3.bf16.msra.mxu1 %v1161_v29  ;;  %1043 = vmatprep.subr.bf16.mxu0 %v1162_v30  ;;  %v78_v29 = vld [vmem:[%s1516_s1 + $0x30] sm:$0xff]  ;;  %v301_v30 = vsel %vm241_vm3, %v211_v13, %v271_v24  ;;  %v219_v59 = vadd.f32 %v1343_v52, %v162_v46  ;;  %v213_v13 = vadd.f32 %v1356_v63, %v156_v6  ;;  %vm251_vm11 = vcmp.ge.f32.partialorder %v221_v11, 0.0 }
  0x1e   :  { %1077 = vmatprep.subr.bf16.mxu1 %v1163_v31  ;;  %v293_v31 = vsel %vm233_vm4, %v203_v14, %v263_v25  ;;  %v298_v36 = vsel %vm238_vm5, %v208_v15, %v268_v28  ;;  %v102_v43 = vunpack.c.h.bf16 %v78_v29  ;;  %v101_v57 = vunpack.c.l.bf16 %v78_v29 }
  0x1f   :  { %v323_v40 = vpack.c.bf16 %v298_v36, %v293_v31  ;;  %vm249_vm9 = vcmp.ge.f32.partialorder %v219_v59, 0.0  ;;  %v279_v10 = vmul.f32 0.01, %v219_v59  ;;  %v304_v14 = vsel %vm244_vm8, %v214_v58, %v274_v9  ;;  %v87_v31 = vld [vmem:[%s1516_s1 + $0x6c] sm:$0xff]  ;;  %v1169_v36 = vld [vmem:[%s1515_s4 + $0x118] sm:$0xff]  }
  0x20   :  { %1044 = vmatpush3.bf16.msra.mxu0 %v1164_v33  ;;  %v270_v33 = vmul.f32 0.01, %v210_v19  ;;  %v159_v54 = vmul.f32 %v1350_v60, %v102_v43  ;;  %v218_v16 = vadd.f32 %v1356_v63, %v161_v7  ;;  %v158_v17 = vmul.f32 %v1358_v0, %v101_v57 }
  0x21   :  { %1078 = vmatpush3.bf16.msra.mxu1 %v1165_v35  ;;  %1104 = vmatprep.subr.bf16.mxu0 %v1170_v49  ;;  %v326_v35 = vpack.c.bf16 %v301_v30, %v296_v26  ;;  %v309_v15 = vsel %vm249_vm9, %v219_v59, %v279_v10  ;;  %v281_v21 = vmul.f32 0.01, %v221_v11  ;;  %vm243_vm12 = vcmp.ge.f32.partialorder %v213_v13, 0.0  ;;  %v84_v30 = vld [vmem:[%s1516_s1 + $0x58] sm:$0xff]  ;;  %v73_v59 = vld [vmem:[%s1516_s1 + $0x10] ss:$20 sps:$4 sm:$0xff]  }
  0x22   :  { %1124 = vmatprep.subr.bf16.mxu1 %v1170_v49  ;;  %v300_v42 = vsel %vm240_vm7, %v210_v19, %v270_v33  ;;  %v216_v5 = vadd.f32 %v1352_v61, %v159_v54  ;;  %v86_v19 = vld [vmem:[%s1516_s1 + $0x64] sm:$0xff]  ;;  %v329_v20 = vpack.c.bf16 %v309_v15, %v304_v14  ;;  %vm248_vm13 = vcmp.ge.f32.partialorder %v218_v16, 0.0 }
  0x23   :  { %732 = vmatprep.mubr.bf16.mxu1 %v326_v35  ;;  %v325_v44 = vpack.c.bf16 %v300_v42, %v295_v41  ;;  %676 = vmatmul.mubr.bf16.vlgmr.msra.gmra.mrb[0].mxu0 %v323_v40  ;;  %v273_v23 = vmul.f32 0.01, %v213_v13  ;;  %v278_v24 = vmul.f32 0.01, %v218_v16  ;;  %v311_v25 = vsel %vm251_vm11, %v221_v11, %v281_v21 }
  0x24   :  { %1105 = vmatpush3.bf16.msra.mxu0 %v1166_v37  ;;  %vm246_vm10 = vcmp.ge.f32.partialorder %v216_v5, 0.0  ;;  %v276_v12 = vmul.f32 0.01, %v216_v5  ;;  %683 = vmatprep.mubr.bf16.mxu0 %v329_v20  ;;  %v163_v26 = vmul.f32 %v1358_v0, %v106_v4  ;;  %v215_v28 = vadd.f32 %v1360_v1, %v158_v17  ;;  %v79_v17 = vld [vmem:[%s1516_s1 + $0x38] ss:$20 sps:$4 sm:$0xff]  }
  0x25   :  { %733 = vmatmul.mubr.bf16.vlgmr.msra.gmra.mrb[0].mxu1 %v325_v44  ;;  %1106 = vmatprep.subr.bf16.mxu0 %v1170_v49  ;;  %v115_v29 = vunpack.c.h.bf16 %v86_v19  ;;  %v303_v33 = vsel %vm243_vm12, %v213_v13, %v273_v23  ;;  %v308_v34 = vsel %vm248_vm13, %v218_v16, %v278_v24  ;;  %v167_v35 = vmul.f32 %v1339_v50, %v110_v8 }
  0x26   :  { %1128 = vmatpush3.bf16.msra.mxu1 %v1166_v37  ;;  %v306_v22 = vsel %vm246_vm10, %v216_v5, %v276_v12  ;;  %v328_v37 = vpack.c.bf16 %v308_v34, %v303_v33  ;;  %v220_v38 = vadd.f32 %v1360_v1, %v163_v26  ;;  %vm245_vm14 = vcmp.ge.f32.partialorder %v215_v28, 0.0 }
  0x27   :  { %1125 = vmatprep.subr.bf16.mxu1 %v1170_v49  ;;  %v331_v32 = vpack.c.bf16 %v311_v25, %v306_v22  ;;  %v275_v39 = vmul.f32 0.01, %v215_v28  ;;  %v172_v40 = vmul.f32 %v1339_v50, %v115_v29  ;;  %v224_v41 = vadd.f32 %v1343_v52, %v167_v35 }
  0x28   :  { %1107 = vmatpush3.bf16.msra.mxu0 %v1167_v3  ;;  %v112_v42 = vunpack.c.h.bf16 %v84_v30  ;;  %v117_v43 = vunpack.c.h.bf16 %v87_v31  ;;  %vm250_vm15 = vcmp.ge.f32.partialorder %v220_v38, 0.0  ;;  %v280_v44 = vmul.f32 0.01, %v220_v38 }
  0x29   :  { %1108 = vmatprep.subr.bf16.mxu0 %v1170_v49  ;;  %740 = vmatprep.mubr.bf16.mxu1 %v331_v32  ;;  %v305_v45 = vsel %vm245_vm14, %v215_v28, %v275_v39  ;;  %v109_v46 = vunpack.c.l.bf16 %v1399_v48  ;;  %v229_v47 = vadd.f32 %v1343_v52, %v172_v40  ;;  %vm254_vm0 = vcmp.ge.f32.partialorder %v224_v41, 0.0  ;;  %v85_v28 = vld [vmem:[%s1516_s1 + $0x60] ss:$20 sps:$4 sm:$0xff]  }
  0x2a   :  { %1129 = vmatpush3.bf16.msra.mxu1 %v1167_v3  ;;  %v284_v54 = vmul.f32 0.01, %v224_v41  ;;  %v169_v55 = vmul.f32 %v1350_v60, %v112_v42  ;;  %v310_v50 = vsel %vm250_vm15, %v220_v38, %v280_v44  ;;  %v174_v56 = vmul.f32 %v1350_v60, %v117_v43 }
  0x2b   :  { %1126 = vmatprep.subr.bf16.mxu1 %v1170_v49  ;;  %684 = vmatmul.mubr.bf16.gmra.mrb[4].mxu0 %v328_v37  ;;  %v114_v57 = vunpack.c.l.bf16 %v86_v19  ;;  %v166_v58 = vmul.f32 %v1354_v62, %v109_v46  ;;  %v330_v2 = vpack.c.bf16 %v310_v50, %v305_v45  ;;  %vm259_vm1 = vcmp.ge.f32.partialorder %v229_v47, 0.0 }
  0x2c   :  { %1109 = vmatpush3.bf16.msra.mxu0 %v1168_v18  ;;  %v289_v48 = vmul.f32 0.01, %v229_v47  ;;  %v314_v52 = vsel %vm254_vm0, %v224_v41, %v284_v54  ;;  %v226_v3 = vadd.f32 %v1352_v61, %v169_v55  ;;  %v231_v4 = vadd.f32 %v1352_v61, %v174_v56 }
  0x2d   :  { %1110 = vmatprep.subr.bf16.mxu0 %v1170_v49  ;;  %v171_v5 = vmul.f32 %v1354_v62, %v114_v57  ;;  %v223_v60 = vadd.f32 %v1356_v63, %v166_v58  ;;  %741 = vmatmul.mubr.bf16.gmra.mrb[4].mxu1 %v330_v2  ;;  %v111_v7 = vunpack.c.l.bf16 %v84_v30  ;;  %v116_v8 = vunpack.c.l.bf16 %v87_v31 }
  0x2e   :  { %1130 = vmatpush3.bf16.msra.mxu1 %v1168_v18  ;;  %v319_v6 = vsel %vm259_vm1, %v229_v47, %v289_v48  ;;  %v93_v9 = vunpack.c.l.bf16 %v73_v59  ;;  %vm256_vm2 = vcmp.ge.f32.partialorder %v226_v3, 0.0  ;;  %vm261_vm3 = vcmp.ge.f32.partialorder %v231_v4, 0.0 }
  0x2f   :  { %1127 = vmatprep.subr.bf16.mxu1 %v1170_v49  ;;  %v334_v10 = vpack.c.bf16 %v319_v6, %v314_v52  ;;  %v286_v11 = vmul.f32 0.01, %v226_v3  ;;  %v291_v12 = vmul.f32 0.01, %v231_v4  ;;  %v228_v13 = vadd.f32 %v1356_v63, %v171_v5 }
  0x30   :  { %1111 = vmatpush3.bf16.msra.mxu0 %v1169_v36  ;;  %vm253_vm4 = vcmp.ge.f32.partialorder %v223_v60, 0.0  ;;  %v283_v14 = vmul.f32 0.01, %v223_v60  ;;  %v168_v62 = vmul.f32 %v1358_v0, %v111_v7  ;;  %v173_v15 = vmul.f32 %v1358_v0, %v116_v8 }
  0x31   :  { %691 = vmatprep.mubr.bf16.mxu0 %v334_v10  ;;  %v316_v61 = vsel %vm256_vm2, %v226_v3, %v286_v11  ;;  %v98_v16 = vunpack.c.h.bf16 %v73_v59  ;;  %v321_v18 = vsel %vm261_vm3, %v231_v4, %v291_v12  ;;  %vm258_vm5 = vcmp.ge.f32.partialorder %v228_v13, 0.0 }
  0x32   :  { %1131 = vmatpush3.bf16.msra.mxu1 %v1169_v36  ;;  %v288_v19 = vmul.f32 0.01, %v228_v13  ;;  %v313_v20 = vsel %vm253_vm4, %v223_v60, %v283_v14  ;;  %v336_v21 = vpack.c.bf16 %v321_v18, %v316_v61  ;;  %v225_v63 = vadd.f32 %v1360_v1, %v168_v62  ;;  %v960_v60 = vld [vmem:[%s1519_s5] ss:$0 sm:$0xff] }
  0x33   :  { %v230_v22 = vadd.f32 %v1360_v1, %v173_v15  ;;  %v150_v23 = vmul.f32 %v1341_v51, %v93_v9  ;;  %v155_v25 = vmul.f32 %v1341_v51, %v98_v16  ;;  %v103_v0 = vunpack.c.l.bf16 %v79_v17 }
  0x34   :  { %v318_v24 = vsel %vm258_vm5, %v228_v13, %v288_v19  ;;  %v108_v26 = vunpack.c.h.bf16 %v79_v17  ;;  %748 = vmatprep.mubr.bf16.mxu1 %v336_v21  ;;  %vm255_vm6 = vcmp.ge.f32.partialorder %v225_v63, 0.0  ;;  %v285_v30 = vmul.f32 0.01, %v225_v63 }
  0x35   :  { %v333_v29 = vpack.c.bf16 %v318_v24, %v313_v20  ;;  %vm260_vm7 = vcmp.ge.f32.partialorder %v230_v22, 0.0  ;;  %v290_v31 = vmul.f32 0.01, %v230_v22  ;;  %v207_v32 = vadd.f32 %v1345_v53, %v150_v23 }
  0x36   :  { %v212_v1 = vadd.f32 %v1345_v53, %v155_v25  ;;  %v160_v33 = vmul.f32 %v1341_v51, %v103_v0  ;;  %v315_v34 = vsel %vm255_vm6, %v225_v63, %v285_v30  ;;  %v165_v35 = vmul.f32 %v1341_v51, %v108_v26 }
  0x37   :  { %692 = vmatmul.mubr.bf16.gmra.mrb[8].mxu0 %v333_v29  ;;  %v113_v36 = vunpack.c.l.bf16 %v85_v28  ;;  %v118_v37 = vunpack.c.h.bf16 %v85_v28  ;;  %v320_v38 = vsel %vm260_vm7, %v230_v22, %v290_v31  ;;  %vm1171_vm8 = vmmov 0  }
  0x38   :  { %1112 = vmatprep.mubr.msk.bf16.mxu0 %vm1171_vm8, %v1170_v49  ;;  %vm237_vm9 = vcmp.ge.f32.partialorder %v207_v32, 0.0  ;;  %vm242_vm10 = vcmp.ge.f32.partialorder %v212_v1, 0.0  ;;  %v267_v39 = vmul.f32 0.01, %v207_v32  ;;  %v335_v40 = vpack.c.bf16 %v320_v38, %v315_v34 }
  0x39   :  { %v272_v41 = vmul.f32 0.01, %v212_v1  ;;  %v217_v42 = vadd.f32 %v1345_v53, %v160_v33  ;;  %v222_v43 = vadd.f32 %v1345_v53, %v165_v35  ;;  %vm633_vm11 = vcmask 523264  }
  0x3a   :  { %v297_v44 = vsel %vm237_vm9, %v207_v32, %v267_v39  ;;  %v170_v45 = vmul.f32 %v1341_v51, %v113_v36  ;;  %v175_v46 = vmul.f32 %v1341_v51, %v118_v37  ;;  %749 = vmatmul.mubr.bf16.gmra.mrb[8].mxu1 %v335_v40  ;;  %v861_v40 = vstv %s1520_s0 }
  0x3b   :  { %v302_v47 = vsel %vm242_vm10, %v212_v1, %v272_v41  ;;  %vm247_vm12 = vcmp.ge.f32.partialorder %v217_v42, 0.0  ;;  %vm252_vm13 = vcmp.ge.f32.partialorder %v222_v43, 0.0  ;;  %v277_v54 = vmul.f32 0.01, %v217_v42  ;;  %1116 = vmatprep.mubr.msk.bf16.mxu1 %vm1171_vm8, %v1170_v49 }
  0x3c   :  { %v327_v55 = vpack.c.bf16 %v302_v47, %v297_v44  ;;  %v282_v50 = vmul.f32 0.01, %v222_v43  ;;  %v227_v56 = vadd.f32 %v1345_v53, %v170_v45  ;;  %v232_v57 = vadd.f32 %v1345_v53, %v175_v46 }
  0x3d   :  { %v307_v58 = vsel %vm247_vm12, %v217_v42, %v277_v54  ;;  %v848_v44 = vadd.s32 8, %v1295_v27  ;;  %vm862_vm0 = vcmp.lt.s32.totalorder %v1295_v27, %v861_v40  ;;  %v849_v54 = vadd.s32 16, %v1295_v27 }
  0x3e   :  { %v312_v59 = vsel %vm252_vm13, %v222_v43, %v282_v50  ;;  %v287_v51 = vmul.f32 0.01, %v227_v56  ;;  %v292_v48 = vmul.f32 0.01, %v232_v57  ;;  %vm257_vm14 = vcmp.ge.f32.partialorder %v227_v56, 0.0 }
  0x3f   :  { %1113 = vmatmul.mubr.msk.bf16.vlgmr.msra.gmra.mrb[12].mxu0 %vm633_vm11, %v327_v55  ;;  %v332_v2 = vpack.c.bf16 %v312_v59, %v307_v58  ;;  %vm262_vm15 = vcmp.ge.f32.partialorder %v232_v57, 0.0  ;;  %vm863_vm1 = vcmp.lt.s32.totalorder %v848_v44, %v861_v40  ;;  %v850_v58 = vadd.s32 24, %v1295_v27 }
  0x40   :  { %v317_v52 = vsel %vm257_vm14, %v227_v56, %v287_v51  ;;  %v322_v3 = vsel %vm262_vm15, %v232_v57, %v292_v48  ;;  %vm864_vm2 = vcmp.lt.s32.totalorder %v849_v54, %v861_v40 }
  0x41   :  { %v337_v4 = vpack.c.bf16 %v322_v3, %v317_v52  ;;  %vm865_vm3 = vcmp.lt.s32.totalorder %v850_v58, %v861_v40 }
  0x42   :  { %1117 = vmatmul.mubr.msk.bf16.vlgmr.msra.gmra.mrb[12].mxu1 %vm633_vm11, %v332_v2 }
  0x43   :  { %1120 = vmatprep.mubr.msk.bf16.mxu1 %vm1171_vm8, %v1170_v49 }
  0x4a   :  { %1121 = vmatmul.mubr.msk.bf16.gmra.mrb[16].mxu1 %vm633_vm11, %v337_v4 }
  0xf6   :  { %v1045_v53 = vpop.f32.mrb[0].mxu0 }
  0xf7   :  { %v1046_v6 = vpop.f32.mrb[1].mxu0 }
  0xf8   :  { %v1079_v5 = vpop.f32.mrb[0].mxu1  ;;  %v1047_v7 = vadd.f32 %v1046_v6, %v1045_v53  ;;  %v1048_v9 = vpop.f32.mrb[2].mxu0 }
  0xf9   :  { %v1080_v8 = vpop.f32.mrb[1].mxu1  ;;  %v1049_v12 = vpop.f32.mrb[3].mxu0 }
  0xfa   :  { %v1081_v10 = vadd.f32 %v1080_v8, %v1079_v5  ;;  %v1082_v11 = vpop.f32.mrb[2].mxu1  ;;  %v678_v13 = vadd.f32 %v1047_v7, %v960_v60  ;;  %v1050_v49 = vadd.f32 %v1049_v12, %v1048_v9 }
  0xfb   :  { %v1083_v14 = vpop.f32.mrb[3].mxu1 }
  0xfc   :  { %v1084_v61 = vadd.f32 %v1083_v14, %v1082_v11  ;;  %v681_v62 = vadd.f32 %v1050_v49, %v960_v60  ;;  %v735_v15 = vadd.f32 %v1081_v10, %v678_v13  ;;  %v851_v14 = vadd.s32 32, %v1295_v27 }
  0xfe   :  { %v738_v16 = vadd.f32 %v1084_v61, %v681_v62  ;;  %v1051_v17 = vpop.f32.mrb[4].mxu0  ;;  %vm866_vm4 = vcmp.lt.s32.totalorder %v851_v14, %v861_v40 }
  0xff   :  { %v1052_v18 = vpop.f32.mrb[5].mxu0 }
 0x100   :  { %v1053_v19 = vadd.f32 %v1052_v18, %v1051_v17  ;;  %v1054_v20 = vpop.f32.mrb[6].mxu0  ;;  %v1085_v22 = vpop.f32.mrb[4].mxu1  ;;  %v852_v18 = vadd.s32 40, %v1295_v27 }
 0x101   :  { %v1055_v21 = vpop.f32.mrb[7].mxu0  ;;  %v1086_v24 = vpop.f32.mrb[5].mxu1 }
 0x102   :  { %v1056_v63 = vadd.f32 %v1055_v21, %v1054_v20  ;;  %v686_v23 = vadd.f32 %v1053_v19, %v960_v60  ;;  %v1087_v25 = vadd.f32 %v1086_v24, %v1085_v22  ;;  %v1088_v0 = vpop.f32.mrb[6].mxu1  ;;  %vm867_vm5 = vcmp.lt.s32.totalorder %v852_v18, %v861_v40 }
 0x103   :  { %v1089_v28 = vpop.f32.mrb[7].mxu1 }
 0x104   :  { %v689_v26 = vadd.f32 %v1056_v63, %v960_v60  ;;  %v1090_v29 = vadd.f32 %v1089_v28, %v1088_v0  ;;  %v743_v30 = vadd.f32 %v1087_v25, %v686_v23 }
 0x106   :  { %v746_v31 = vadd.f32 %v1090_v29, %v689_v26 }
 0x10a   :  { %v1057_v32 = vpop.f32.mrb[8].mxu0 }
 0x10b   :  { %v1058_v1 = vpop.f32.mrb[9].mxu0 }
 0x10c   :  { %v1059_v33 = vadd.f32 %v1058_v1, %v1057_v32  ;;  %v1060_v34 = vpop.f32.mrb[10].mxu0 }
 0x10d   :  { %v1061_v35 = vpop.f32.mrb[11].mxu0  ;;  %v1091_v36 = vpop.f32.mrb[8].mxu1 }
 0x10e   :  { %v694_v37 = vadd.f32 %v1059_v33, %v960_v60  ;;  %v1062_v38 = vadd.f32 %v1061_v35, %v1060_v34  ;;  %v1092_v39 = vpop.f32.mrb[9].mxu1 }
 0x10f   :  { %v1093_v41 = vadd.f32 %v1092_v39, %v1091_v36  ;;  %v1094_v42 = vpop.f32.mrb[10].mxu1 }
 0x110   :  { %v697_v43 = vadd.f32 %v1062_v38, %v960_v60  ;;  %v1095_v45 = vpop.f32.mrb[11].mxu1 }
 0x111   :  { %v1096_v46 = vadd.f32 %v1095_v45, %v1094_v42  ;;  %v751_v55 = vadd.f32 %v1093_v41, %v694_v37 }
 0x112   :  { %v791_v47 = vpop.f32.mrb[12].mxu0 }
 0x113   :  { %v792_v50 = vadd.f32 %v791_v47, %v735_v15  ;;  %v1114_v56 = vpop.f32.mrb[13].mxu0  ;;  %v754_v59 = vadd.f32 %v1096_v46, %v697_v43 }
 0x114   :  { %v794_v57 = vpop.f32.mrb[14].mxu0 }
 0x115   :  { %v880_v2 = vsel %vm862_vm0, %v792_v50, 0.0  ;;  %v795_v51 = vadd.f32 %v794_v57, %v738_v16  ;;  %v1115_v48 = vpop.f32.mrb[15].mxu0  ;;  %v799_v52 = vpop.f32.mrb[12].mxu1 }
 0x116   :  { %v800_v3 = vadd.f32 %v799_v52, %v743_v30  ;;  %v1118_v4 = vpop.f32.mrb[13].mxu1  ;;  %v901_v60 = vmul.f32 %v880_v2, %v880_v2 }
 0x117   :  { %v1015_v53 = vpack.c.bf16 %v795_v51, %v792_v50  ;;  %v881_v5 = vsel %vm863_vm1, %v795_v51, 0.0  ;;  %v802_v8 = vpop.f32.mrb[14].mxu1 }
 0x118   :  { %v887_v6 = vadd.f32 %v881_v5, %v880_v2  ;;  %v902_v7 = vmul.f32 %v881_v5, %v881_v5  ;;  %v882_v9 = vsel %vm864_vm2, %v800_v3, 0.0  ;;  %v803_v10 = vadd.f32 %v802_v8, %v746_v31  ;;  %v1119_v11 = vpop.f32.mrb[15].mxu1 }
 0x119   :  { %1016 = vst [vmem:[%s1521_s6] sm:$0xff] %v1015_v53   ;;  %v903_v12 = vmul.f32 %v882_v9, %v882_v9 }
 0x11a   :  { %v907_v13 = vadd.f32 %v902_v7, %v901_v60  ;;  %v888_v49 = vadd.f32 %v887_v6, %v882_v9  ;;  %v1020_v61 = vpack.c.bf16 %v803_v10, %v800_v3  ;;  %v883_v62 = vsel %vm865_vm3, %v803_v10, 0.0 }
 0x11b   :  { %v904_v16 = vmul.f32 %v883_v62, %v883_v62 }
 0x11c   :  { %v889_v15 = vadd.f32 %v888_v49, %v883_v62  ;;  %v908_v17 = vadd.f32 %v907_v13, %v903_v12  ;;  %1027 = vst [vmem:[%s1521_s6 + $0x8] sm:$0xff] %v1020_v61  }
 0x11d   :  { %v807_v20 = vpop.f32.mrb[16].mxu1 }
 0x11e   :  { %v909_v19 = vadd.f32 %v908_v17, %v904_v16  ;;  %v808_v21 = vadd.f32 %v807_v20, %v751_v55  ;;  %v1122_v63 = vpop.f32.mrb[17].mxu1 }
 0x11f   :  { %v810_v22 = vpop.f32.mrb[18].mxu1 }
 0x120   :  { %v884_v23 = vsel %vm866_vm4, %v808_v21, 0.0  ;;  %v811_v24 = vadd.f32 %v810_v22, %v754_v59  ;;  %v1123_v25 = vpop.f32.mrb[19].mxu1 }
 0x121   :  { %v890_v0 = vadd.f32 %v889_v15, %v884_v23  ;;  %v905_v26 = vmul.f32 %v884_v23, %v884_v23 }
 0x122   :  { %v1025_v28 = vpack.c.bf16 %v811_v24, %v808_v21  ;;  %v885_v29 = vsel %vm867_vm5, %v811_v24, 0.0 }
 0x123   :  { %v910_v30 = vadd.f32 %v909_v19, %v905_v26  ;;  %v891_v27 = vadd.f32 %v890_v0, %v885_v29  ;;  %v906_v31 = vmul.f32 %v885_v29, %v885_v29 }
 0x124   :  { %1028 = vst [vmem:[%s1521_s6 + $0x10] sm:$0xff] %v1025_v28  }
 0x125   :  { %v892_v32 = vrot.slane %v891_v27, 4  ;;  %v911_v1 = vadd.f32 %v910_v30, %v906_v31 }
 0x127   :  { %v893_v33 = vadd.f32 %v892_v32, %v891_v27  ;;  %v912_v34 = vrot.slane %v911_v1, 4 }
 0x129   :  { %v894_v35 = vrot.slane %v893_v33, 2  ;;  %v913_v36 = vadd.f32 %v912_v34, %v911_v1 }
 0x12b   :  { %v895_v37 = vadd.f32 %v894_v35, %v893_v33  ;;  %v914_v38 = vrot.slane %v913_v36, 2 }
 0x12d   :  { %v896_v39 = vrot.slane %v895_v37, 1  ;;  %v915_v40 = vadd.f32 %v914_v38, %v913_v36 }
 0x12f   :  { %v897_v41 = vadd.f32 %v896_v39, %v895_v37  ;;  %v916_v42 = vrot.slane %v915_v40, 1 }
 0x131   :  { %v917_v43 = vadd.f32 %v916_v42, %v915_v40  ;;  %899 = vst [vmem:[%s1522_s7] sm:$0xff] %v897_v41 }
 0x133   :  { %919 = vst [vmem:[%s1523_s8] sm:$0xff] %v917_v43 }

// kernel: encoder_forward.8
= control target key start
LH: loop header
LB: loop body
LE: loop exit
PB: predicated region body
PF: predicated region fallthrough
CT: control target
= control target key end

     0   :  { %v107_v37 = vlaneseq  ;;  %s2501_s4 = inlined_call_operand.vmem [shape: bf16[1152,256], index: 4, kind: input, shape index: {}]   ;;  %s2502_s1 = inlined_call_operand.vmem [shape: bf16[16,1152], index: 1, kind: input, shape index: {}]   ;;  %s2503_s2 = inlined_call_operand.vmem [shape: f32[1,1152], index: 2, kind: input, shape index: {}]   ;;  %s2504_s3 = inlined_call_operand.vmem [shape: f32[1,1152], index: 3, kind: input, shape index: {}]   ;;  %s2505_s5 = inlined_call_operand.vmem [shape: f32[1,256], index: 5, kind: input, shape index: {}]   ;;  %s2506_s0 = inlined_call_operand.<no memory space> [shape: s32[1], index: 0, kind: input, shape index: {}]   ;;  %s2507_s6 = inlined_call_operand.vmem [shape: bf16[16,256], index: 6, kind: output, shape index: {0}]   ;;  %s2508_s7 = inlined_call_operand.vmem [shape: f32[8,256], index: 7, kind: output, shape index: {1}]   ;;  %s2509_s8 = inlined_call_operand.vmem [shape: f32[8,256], index: 8, kind: output, shape index: {2}]  }
   0x1   :  { %v1683_v0 = vld [vmem:[%s2501_s4 + $0x4] ss:$8 sps:$4 sm:$0xff]   ;;  %v1687_v2 = vld [vmem:[%s2501_s4] ss:$8 sps:$4 sm:$0xff]   ;;  %v1689_v4 = vld [vmem:[%s2501_s4 + $0x14] ss:$8 sps:$4 sm:$0xff]  }
   0x2   :  { %v1685_v1 = vld [vmem:[%s2501_s4 + $0x204] ss:$8 sps:$4 sm:$0xff]   ;;  %1176 = vmatprep.subr.bf16.mxu1 %v1683_v0  ;;  %v1688_v3 = vld [vmem:[%s2501_s4 + $0x200] ss:$8 sps:$4 sm:$0xff]   ;;  %v1691_v5 = vld [vmem:[%s2501_s4 + $0x214] ss:$8 sps:$4 sm:$0xff]  }
   0x3   :  { %1262 = vmatprep.subr.bf16.mxu0 %v1685_v1  ;;  %1177 = vmatpush1.bf16.msra.mxu1 %v1687_v2  ;;  %v1693_v6 = vld [vmem:[%s2501_s4 + $0x10] ss:$8 sps:$4 sm:$0xff]   ;;  %v1695_v8 = vld [vmem:[%s2501_s4 + $0x24] ss:$8 sps:$4 sm:$0xff]   ;;  %v1699_v10 = vld [vmem:[%s2501_s4 + $0x20] ss:$8 sps:$4 sm:$0xff]  }
   0x4   :  { %1263 = vmatpush1.bf16.msra.mxu0 %v1688_v3  ;;  %1178 = vmatprep.subr.bf16.mxu1 %v1689_v4  ;;  %v1694_v7 = vld [vmem:[%s2501_s4 + $0x210] ss:$8 sps:$4 sm:$0xff]   ;;  %v1697_v9 = vld [vmem:[%s2501_s4 + $0x224] ss:$8 sps:$4 sm:$0xff]   ;;  %v1700_v11 = vld [vmem:[%s2501_s4 + $0x220] ss:$8 sps:$4 sm:$0xff]  }
   0x5   :  { %1264 = vmatprep.subr.bf16.mxu0 %v1691_v5  ;;  %v1701_v12 = vld [vmem:[%s2501_s4 + $0x34] ss:$8 sps:$4 sm:$0xff]   ;;  %v1705_v14 = vld [vmem:[%s2501_s4 + $0x30] ss:$8 sps:$4 sm:$0xff]   ;;  %v1707_v16 = vld [vmem:[%s2501_s4 + $0x44] ss:$8 sps:$4 sm:$0xff]  }
   0x6   :  { %v1703_v13 = vld [vmem:[%s2501_s4 + $0x234] ss:$8 sps:$4 sm:$0xff]   ;;  %v1706_v15 = vld [vmem:[%s2501_s4 + $0x230] ss:$8 sps:$4 sm:$0xff]   ;;  %v1709_v17 = vld [vmem:[%s2501_s4 + $0x244] ss:$8 sps:$4 sm:$0xff]  }
   0x7   :  { %1179 = vmatpush1.bf16.msra.mxu1 %v1693_v6  ;;  %v1711_v18 = vld [vmem:[%s2501_s4 + $0x40] ss:$8 sps:$4 sm:$0xff]   ;;  %v1713_v20 = vld [vmem:[%s2501_s4 + $0x54] ss:$8 sps:$4 sm:$0xff]   ;;  %v1717_v22 = vld [vmem:[%s2501_s4 + $0x50] ss:$8 sps:$4 sm:$0xff]  }
   0x8   :  { %1265 = vmatpush1.bf16.msra.mxu0 %v1694_v7  ;;  %1180 = vmatprep.subr.bf16.mxu1 %v1695_v8  ;;  %v1712_v19 = vld [vmem:[%s2501_s4 + $0x240] ss:$8 sps:$4 sm:$0xff]   ;;  %v1715_v21 = vld [vmem:[%s2501_s4 + $0x254] ss:$8 sps:$4 sm:$0xff]   ;;  %v1718_v23 = vld [vmem:[%s2501_s4 + $0x250] ss:$8 sps:$4 sm:$0xff]  }
   0x9   :  { %1266 = vmatprep.subr.bf16.mxu0 %v1697_v9  ;;  %v1719_v24 = vld [vmem:[%s2501_s4 + $0x64] ss:$8 sps:$4 sm:$0xff]   ;;  %v1723_v26 = vld [vmem:[%s2501_s4 + $0x60] ss:$8 sps:$4 sm:$0xff]   ;;  %v1725_v28 = vld [vmem:[%s2501_s4 + $0x74] ss:$8 sps:$4 sm:$0xff]  }
   0xa   :  { %v1721_v25 = vld [vmem:[%s2501_s4 + $0x264] ss:$8 sps:$4 sm:$0xff]   ;;  %v1724_v27 = vld [vmem:[%s2501_s4 + $0x260] ss:$8 sps:$4 sm:$0xff]   ;;  %v1727_v29 = vld [vmem:[%s2501_s4 + $0x274] ss:$8 sps:$4 sm:$0xff]  }
   0xb   :  { %1181 = vmatpush1.bf16.msra.mxu1 %v1699_v10  ;;  %v1729_v30 = vld [vmem:[%s2501_s4 + $0x70] ss:$8 sps:$4 sm:$0xff]   ;;  %v1731_v32 = vld [vmem:[%s2501_s4 + $0x84] ss:$8 sps:$4 sm:$0xff]   ;;  %v1735_v34 = vld [vmem:[%s2501_s4 + $0x80] ss:$8 sps:$4 sm:$0xff]  }
   0xc   :  { %1267 = vmatpush1.bf16.msra.mxu0 %v1700_v11  ;;  %1182 = vmatprep.subr.bf16.mxu1 %v1701_v12  ;;  %v1730_v31 = vld [vmem:[%s2501_s4 + $0x270] ss:$8 sps:$4 sm:$0xff]   ;;  %v1733_v33 = vld [vmem:[%s2501_s4 + $0x284] ss:$8 sps:$4 sm:$0xff]   ;;  %v1736_v35 = vld [vmem:[%s2501_s4 + $0x280] ss:$8 sps:$4 sm:$0xff]  }
   0xd   :  { %1268 = vmatprep.subr.bf16.mxu0 %v1703_v13  ;;  %v1737_v36 = vld [vmem:[%s2501_s4 + $0x94] ss:$8 sps:$4 sm:$0xff]   ;;  %v1741_v39 = vld [vmem:[%s2501_s4 + $0x90] ss:$8 sps:$4 sm:$0xff]   ;;  %v1743_v41 = vld [vmem:[%s2501_s4 + $0xa4] ss:$8 sps:$4 sm:$0xff]  }
   0xe   :  { %v1739_v38 = vld [vmem:[%s2501_s4 + $0x294] ss:$8 sps:$4 sm:$0xff]   ;;  %v1742_v40 = vld [vmem:[%s2501_s4 + $0x290] ss:$8 sps:$4 sm:$0xff]   ;;  %v2068_v42 = vshrl.u32 %v107_v37, 7  ;;  %v75_v53 = vld [vmem:[%s2502_s1] sm:$0xff] }
   0xf   :  { %1183 = vmatpush1.bf16.msra.mxu1 %v1705_v14  ;;  %v1745_v43 = vld [vmem:[%s2501_s4 + $0x2a4] ss:$8 sps:$4 sm:$0xff]   ;;  %v1747_v44 = vld [vmem:[%s2501_s4 + $0xa0] ss:$8 sps:$4 sm:$0xff]   ;;  %v1749_v46 = vld [vmem:[%s2501_s4 + $0xb4] ss:$8 sps:$4 sm:$0xff]   ;;  %v85_v55 = vunpack.c.l.bf16 %v75_v53  ;;  %v86_v56 = vunpack.c.h.bf16 %v75_v53 }
  0x10   :  { %1269 = vmatpush1.bf16.msra.mxu0 %v1706_v15  ;;  %1184 = vmatprep.subr.bf16.mxu1 %v1707_v16  ;;  %v1748_v45 = vld [vmem:[%s2501_s4 + $0x2a0] ss:$8 sps:$4 sm:$0xff]   ;;  %v2083_v47 = vsub.s32 1, %v2068_v42  ;;  %v1751_v48 = vld [vmem:[%s2501_s4 + $0x2b4] ss:$8 sps:$4 sm:$0xff]   ;;  %v129_v49 = vsub.s32 5, %v2068_v42 }
  0x11   :  { %1270 = vmatprep.subr.bf16.mxu0 %v1709_v17  ;;  %v2090_v50 = vsub.s32 0, %v2068_v42  ;;  %v1753_v51 = vld [vmem:[%s2501_s4 + $0xb0] ss:$8 sps:$4 sm:$0xff]   ;;  %v80_v54 = vld [vmem:[%s2502_s1 + $0x24] sm:$0xff]  ;;  %v125_v5 = vsub.s32 4, %v2068_v42 }
  0x12   :  { %v1754_v52 = vld [vmem:[%s2501_s4 + $0x2b0] ss:$8 sps:$4 sm:$0xff]   ;;  %v2107_v57 = vld [vmem:[%s2503_s2] sm:$0xff]  ;;  %v94_v60 = vunpack.c.l.bf16 %v80_v54  ;;  %v95_v61 = vunpack.c.h.bf16 %v80_v54  ;;  %v1775_v53 = vld [vmem:[%s2501_s4 + $0x2f4] ss:$8 sps:$4 sm:$0xff]  }
  0x13   :  { %1185 = vmatpush1.bf16.msra.mxu1 %v1711_v18  ;;  %v2112_v58 = vld [vmem:[%s2504_s3] sm:$0xff]  ;;  %v114_v62 = vrot.slane %v2107_v57, %v2083_v47  ;;  %v77_v1 = vld [vmem:[%s2502_s1 + $0x10] sm:$0xff]  ;;  %v130_v3 = vrot.slane %v2107_v57, %v129_v49  ;;  %v110_v4 = vrot.slane %v2107_v57, %v2090_v50 }
  0x14   :  { %1271 = vmatpush1.bf16.msra.mxu0 %v1712_v19  ;;  %1186 = vmatprep.subr.bf16.mxu1 %v1713_v20  ;;  %v1755_v59 = vld [vmem:[%s2501_s4 + $0xc4] ss:$8 sps:$4 sm:$0xff]   ;;  %v181_v63 = vrot.slane %v2112_v58, %v2083_v47  ;;  %v82_v2 = vld [vmem:[%s2502_s1 + $0x34] sm:$0xff]  ;;  %v90_v8 = vunpack.c.h.bf16 %v77_v1  ;;  %v197_v10 = vrot.slane %v2112_v58, %v129_v49  ;;  %v1759_v13 = vld [vmem:[%s2501_s4 + $0xc0] ss:$8 sps:$4 sm:$0xff]   ;;  %v89_v17 = vunpack.c.l.bf16 %v77_v1 }
  0x15   :  { %1272 = vmatprep.subr.bf16.mxu0 %v1715_v21  ;;  %v1757_v0 = vld [vmem:[%s2501_s4 + $0x2c4] ss:$8 sps:$4 sm:$0xff]   ;;  %v153_v6 = vmul.f32 %v114_v62, %v86_v56  ;;  %v162_v7 = vmul.f32 %v114_v62, %v95_v61  ;;  %v99_v9 = vunpack.c.h.bf16 %v82_v2  ;;  %v152_v11 = vmul.f32 %v110_v4, %v85_v55  ;;  %v1760_v14 = vld [vmem:[%s2501_s4 + $0x2c0] ss:$8 sps:$4 sm:$0xff]   ;;  %v1761_v19 = vld [vmem:[%s2501_s4 + $0xd4] ss:$8 sps:$4 sm:$0xff]  }
  0x16   :  { %v161_v12 = vmul.f32 %v110_v4, %v94_v60  ;;  %v157_v18 = vmul.f32 %v130_v3, %v90_v8  ;;  %v1763_v20 = vld [vmem:[%s2501_s4 + $0x2d4] ss:$8 sps:$4 sm:$0xff]   ;;  %v98_v21 = vunpack.c.l.bf16 %v82_v2  ;;  %v1769_v37 = vld [vmem:[%s2501_s4 + $0x2e4] ss:$8 sps:$4 sm:$0xff]   ;;  %v1777_v56 = vld [vmem:[%s2501_s4 + $0xf0] ss:$8 sps:$4 sm:$0xff]  }
  0x17   :  { %1187 = vmatpush1.bf16.msra.mxu1 %v1717_v22  ;;  %v220_v15 = vadd.f32 %v181_v63, %v153_v6  ;;  %v229_v16 = vadd.f32 %v181_v63, %v162_v7  ;;  %v166_v22 = vmul.f32 %v130_v3, %v99_v9  ;;  %v1778_v60 = vld [vmem:[%s2501_s4 + $0x2f0] ss:$8 sps:$4 sm:$0xff]   ;;  %v1781_v62 = vld [vmem:[%s2501_s4 + $0x104] ss:$8 sps:$4 sm:$0xff]   ;;  %v1782_v6 = vld [vmem:[%s2501_s4 + $0x300] ss:$8 sps:$4 sm:$0xff]  }
  0x18   :  { %1273 = vmatpush1.bf16.msra.mxu0 %v1718_v23  ;;  %1188 = vmatprep.subr.bf16.mxu1 %v1719_v24  ;;  %v177_v23 = vrot.slane %v2112_v58, %v2090_v50  ;;  %v126_v24 = vrot.slane %v2107_v57, %v125_v5  ;;  %v1784_v2 = vld [vmem:[%s2501_s4 + $0x304] ss:$8 sps:$4 sm:$0xff]   ;;  %v1787_v9 = vld [vmem:[%s2501_s4 + $0x114] ss:$8 sps:$4 sm:$0xff]  }
  0x19   :  { %1274 = vmatprep.subr.bf16.mxu0 %v1721_v25  ;;  %v1765_v25 = vld [vmem:[%s2501_s4 + $0xd0] ss:$8 sps:$4 sm:$0xff]   ;;  %vm238_vm0 = vcmp.ge.f32.partialorder %v220_v15, 0.0  ;;  %vm247_vm1 = vcmp.ge.f32.partialorder %v229_v16, 0.0 }
  0x1b   :  { %1189 = vmatpush1.bf16.msra.mxu1 %v1723_v26  ;;  %v256_v26 = vmul.f32 0.01, %v220_v15 }
  0x1c   :  { %1275 = vmatpush1.bf16.msra.mxu0 %v1724_v27  ;;  %1190 = vmatprep.subr.bf16.mxu1 %v1725_v28  ;;  %v265_v27 = vmul.f32 0.01, %v229_v16  ;;  %v1766_v28 = vld [vmem:[%s2501_s4 + $0x2d0] ss:$8 sps:$4 sm:$0xff]  }
  0x1d   :  { %1276 = vmatprep.subr.bf16.mxu0 %v1727_v29  ;;  %v224_v29 = vadd.f32 %v197_v10, %v157_v18  ;;  %v1802_v18 = vld [vmem:[%s2501_s4 + $0x334] ss:$8 sps:$4 sm:$0xff]  }
  0x1f   :  { %1191 = vmatpush1.bf16.msra.mxu1 %v1729_v30  ;;  %v233_v30 = vadd.f32 %v197_v10, %v166_v22  ;;  %vm242_vm2 = vcmp.ge.f32.partialorder %v224_v29, 0.0  ;;  %v1790_v10 = vld [vmem:[%s2501_s4 + $0x314] ss:$8 sps:$4 sm:$0xff]   ;;  %v1808_v22 = vld [vmem:[%s2501_s4 + $0x344] ss:$8 sps:$4 sm:$0xff]  }
  0x20   :  { %1277 = vmatpush1.bf16.msra.mxu0 %v1730_v31  ;;  %1192 = vmatprep.subr.bf16.mxu1 %v1731_v32  ;;  %v219_v31 = vadd.f32 %v177_v23, %v152_v11  ;;  %v228_v32 = vadd.f32 %v177_v23, %v161_v12  ;;  %v1785_v11 = vld [vmem:[%s2501_s4 + $0x110] ss:$8 sps:$4 sm:$0xff]   ;;  %v1803_v23 = vld [vmem:[%s2501_s4 + $0x140] ss:$8 sps:$4 sm:$0xff]  }
  0x21   :  { %1278 = vmatprep.subr.bf16.mxu0 %v1733_v33  ;;  %v1767_v33 = vld [vmem:[%s2501_s4 + $0xe4] ss:$8 sps:$4 sm:$0xff]   ;;  %vm251_vm3 = vcmp.ge.f32.partialorder %v233_v30, 0.0  ;;  %v1788_v12 = vld [vmem:[%s2501_s4 + $0x310] ss:$8 sps:$4 sm:$0xff]  }
  0x22   :  { %vm237_vm4 = vcmp.ge.f32.partialorder %v219_v31, 0.0  ;;  %vm246_vm5 = vcmp.ge.f32.partialorder %v228_v32, 0.0 }
  0x23   :  { %1193 = vmatpush1.bf16.msra.mxu1 %v1735_v34  ;;  %v274_v34 = vsel %vm238_vm0, %v220_v15, %v256_v26  ;;  %v1791_v15 = vld [vmem:[%s2501_s4 + $0x120] ss:$8 sps:$4 sm:$0xff]   ;;  %v1814_v26 = vld [vmem:[%s2501_s4 + $0x354] ss:$8 sps:$4 sm:$0xff]  }
  0x24   :  { %1279 = vmatpush1.bf16.msra.mxu0 %v1736_v35  ;;  %1194 = vmatprep.subr.bf16.mxu1 %v1737_v36  ;;  %v283_v35 = vsel %vm247_vm1, %v229_v16, %v265_v27  ;;  %v156_v36 = vmul.f32 %v126_v24, %v89_v17  ;;  %v1794_v16 = vld [vmem:[%s2501_s4 + $0x320] ss:$8 sps:$4 sm:$0xff]   ;;  %v1799_v17 = vld [vmem:[%s2501_s4 + $0x134] ss:$8 sps:$4 sm:$0xff]   ;;  %v1809_v27 = vld [vmem:[%s2501_s4 + $0x150] ss:$8 sps:$4 sm:$0xff]  }
  0x25   :  { %1280 = vmatprep.subr.bf16.mxu0 %v1739_v38  ;;  %v292_v38 = vpack.c.bf16 %v283_v35, %v274_v34  ;;  %v133_v34 = vsub.s32 6, %v2068_v42  ;;  %v1815_v35 = vld [vmem:[%s2501_s4 + $0x160] ss:$8 sps:$4 sm:$0xff]  }
  0x27   :  { %1195 = vmatpush1.bf16.msra.mxu1 %v1741_v39  ;;  %v260_v39 = vmul.f32 0.01, %v224_v29  ;;  %1208 = vmatprep.mubr.bf16.mxu1 %v292_v38  ;;  %v1826_v38 = vld [vmem:[%s2501_s4 + $0x374] ss:$8 sps:$4 sm:$0xff]  }
  0x28   :  { %1281 = vmatpush1.bf16.msra.mxu0 %v1742_v40  ;;  %1196 = vmatprep.subr.bf16.mxu1 %v1743_v41  ;;  %v1771_v40 = vld [vmem:[%s2501_s4 + $0xe0] ss:$8 sps:$4 sm:$0xff]  }
  0x29   :  { %1282 = vmatprep.subr.bf16.mxu0 %v1745_v43  ;;  %v1772_v41 = vld [vmem:[%s2501_s4 + $0x2e0] ss:$8 sps:$4 sm:$0xff]   ;;  %v269_v43 = vmul.f32 0.01, %v233_v30 }
  0x2b   :  { %1197 = vmatpush1.bf16.msra.mxu1 %v1747_v44  ;;  %v1773_v44 = vld [vmem:[%s2501_s4 + $0xf4] ss:$8 sps:$4 sm:$0xff]   ;;  %v287_v49 = vsel %vm251_vm3, %v233_v30, %v269_v43  ;;  %v1820_v30 = vld [vmem:[%s2501_s4 + $0x364] ss:$8 sps:$4 sm:$0xff]   ;;  %v1824_v43 = vld [vmem:[%s2501_s4 + $0x370] ss:$8 sps:$4 sm:$0xff]  }
  0x2c   :  { %1283 = vmatpush1.bf16.msra.mxu0 %v1748_v45  ;;  %1198 = vmatprep.subr.bf16.mxu1 %v1749_v46  ;;  %v278_v45 = vsel %vm242_vm2, %v224_v29, %v260_v39  ;;  %v165_v46 = vmul.f32 %v126_v24, %v98_v21  ;;  %v1805_v21 = vld [vmem:[%s2501_s4 + $0x144] ss:$8 sps:$4 sm:$0xff]   ;;  %v1806_v24 = vld [vmem:[%s2501_s4 + $0x340] ss:$8 sps:$4 sm:$0xff]  }
  0x2d   :  { %1284 = vmatprep.subr.bf16.mxu0 %v1751_v48  ;;  %v193_v48 = vrot.slane %v2112_v58, %v125_v5  ;;  %v296_v54 = vpack.c.bf16 %v287_v49, %v278_v45  ;;  %v1779_v5 = vld [vmem:[%s2501_s4 + $0x100] ss:$8 sps:$4 sm:$0xff]   ;;  %v1817_v29 = vld [vmem:[%s2501_s4 + $0x164] ss:$8 sps:$4 sm:$0xff]   ;;  %v134_v49 = vrot.slane %v2107_v57, %v133_v34 }
  0x2f   :  { %1199 = vmatpush1.bf16.msra.mxu1 %v1753_v51  ;;  %v255_v51 = vmul.f32 0.01, %v219_v31  ;;  %v223_v55 = vadd.f32 %v193_v48, %v156_v36  ;;  %1294 = vmatprep.mubr.bf16.mxu0 %v296_v54  ;;  %v1818_v36 = vld [vmem:[%s2501_s4 + $0x360] ss:$8 sps:$4 sm:$0xff]   ;;  %v78_v54 = vld [vmem:[%s2502_s1 + $0x18] sm:$0xff] }
  0x30   :  { %1285 = vmatpush1.bf16.msra.mxu0 %v1754_v52  ;;  %1200 = vmatprep.subr.bf16.mxu1 %v1755_v59  ;;  %v264_v52 = vmul.f32 0.01, %v228_v32  ;;  %v232_v59 = vadd.f32 %v193_v48, %v165_v46 }
  0x31   :  { %1286 = vmatprep.subr.bf16.mxu0 %v1757_v0  ;;  %vm241_vm6 = vcmp.ge.f32.partialorder %v223_v55, 0.0  ;;  %v259_v61 = vmul.f32 0.01, %v223_v55  ;;  %v273_v63 = vsel %vm237_vm4, %v219_v31, %v255_v51  ;;  %v121_v31 = vsub.s32 3, %v2068_v42  ;;  %v81_v51 = vld [vmem:[%s2502_s1 + $0x2c] sm:$0xff] }
  0x32   :  { %v282_v0 = vsel %vm246_vm5, %v228_v32, %v264_v52  ;;  %vm250_vm7 = vcmp.ge.f32.partialorder %v232_v59, 0.0  ;;  %v268_v1 = vmul.f32 0.01, %v232_v59  ;;  %v117_v32 = vsub.s32 2, %v2068_v42 }
  0x33   :  { %1201 = vmatpush1.bf16.msra.mxu1 %v1759_v13  ;;  %v277_v3 = vsel %vm241_vm6, %v223_v55, %v259_v61  ;;  %v291_v7 = vpack.c.bf16 %v282_v0, %v273_v63  ;;  %v1793_v13 = vld [vmem:[%s2501_s4 + $0x124] ss:$8 sps:$4 sm:$0xff]   ;;  %v122_v39 = vrot.slane %v2107_v57, %v121_v31  ;;  %v189_v45 = vrot.slane %v2112_v58, %v121_v31  ;;  %v83_v55 = vld [vmem:[%s2502_s1 + $0x3c] sm:$0xff] }
  0x34   :  { %1287 = vmatpush1.bf16.msra.mxu0 %v1760_v14  ;;  %1202 = vmatprep.subr.bf16.mxu1 %v1761_v19  ;;  %v286_v4 = vsel %vm250_vm7, %v232_v59, %v268_v1  ;;  %v1796_v14 = vld [vmem:[%s2501_s4 + $0x324] ss:$8 sps:$4 sm:$0xff]   ;;  %v1797_v19 = vld [vmem:[%s2501_s4 + $0x130] ss:$8 sps:$4 sm:$0xff]   ;;  %v185_v46 = vrot.slane %v2112_v58, %v117_v32  ;;  %v2301_v59 = vrot.slane %v2112_v58, %v133_v34  ;;  %v97_v61 = vunpack.c.h.bf16 %v81_v51 }
  0x35   :  { %1288 = vmatprep.subr.bf16.mxu0 %v1763_v20  ;;  %v295_v8 = vpack.c.bf16 %v286_v4, %v277_v3  ;;  %v1800_v20 = vld [vmem:[%s2501_s4 + $0x330] ss:$8 sps:$4 sm:$0xff]   ;;  %v92_v63 = vunpack.c.h.bf16 %v78_v54  ;;  %v1832_v0 = vld [vmem:[%s2501_s4 + $0x384] ss:$8 sps:$4 sm:$0xff]   ;;  %v101_v3 = vunpack.c.h.bf16 %v83_v55  ;;  %v1827_v4 = vld [vmem:[%s2501_s4 + $0x180] ss:$8 sps:$4 sm:$0xff]  }
  0x37   :  { %1203 = vmatpush1.bf16.msra.mxu1 %v1765_v25  ;;  %v1811_v25 = vld [vmem:[%s2501_s4 + $0x154] ss:$8 sps:$4 sm:$0xff]  }
  0x38   :  { %1289 = vmatpush1.bf16.msra.mxu0 %v1766_v28  ;;  %1204 = vmatprep.subr.bf16.mxu1 %v1767_v33  ;;  %v1812_v28 = vld [vmem:[%s2501_s4 + $0x350] ss:$8 sps:$4 sm:$0xff]   ;;  %v137_v33 = vsub.s32 7, %v2068_v42 }
  0x39   :  { %1290 = vmatprep.subr.bf16.mxu0 %v1769_v37  ;;  %v1823_v37 = vld [vmem:[%s2501_s4 + $0x174] ss:$8 sps:$4 sm:$0xff]  }
  0x3a   :  { %v138_v48 = vrot.slane %v2107_v57, %v137_v33 }
  0x3b   :  { %1205 = vmatpush1.bf16.msra.mxu1 %v1771_v40  ;;  %v118_v40 = vrot.slane %v2107_v57, %v117_v32  ;;  %v1829_v57 = vld [vmem:[%s2501_s4 + $0x184] ss:$8 sps:$4 sm:$0xff]  }
  0x3c   :  { %1291 = vmatpush1.bf16.msra.mxu0 %v1772_v41  ;;  %1206 = vmatprep.subr.bf16.mxu1 %v1773_v44  ;;  %v1821_v41 = vld [vmem:[%s2501_s4 + $0x170] ss:$8 sps:$4 sm:$0xff]   ;;  %v76_v44 = vld [vmem:[%s2502_s1 + $0x8] sm:$0xff] }
  0x3d   :  { %1292 = vmatprep.subr.bf16.mxu0 %v1775_v53  ;;  %v87_v52 = vunpack.c.l.bf16 %v76_v44  ;;  %v88_v53 = vunpack.c.h.bf16 %v76_v44 }
  0x3f   :  { %1207 = vmatpush1.bf16.msra.mxu1 %v1777_v56  ;;  %v205_v56 = vrot.slane %v2112_v58, %v137_v33  ;;  %v155_v1 = vmul.f32 %v122_v39, %v88_v53  ;;  %v100_v58 = vunpack.c.l.bf16 %v83_v55  ;;  %v1511_v55 = vld [vmem:[%s2503_s2 + $0x8] ss:$0 sm:$0xff] }
  0x40   :  { %1293 = vmatpush1.bf16.msra.mxu0 %v1778_v60  ;;  %1219 = vmatprep.subr.bf16.mxu1 %v1781_v62  ;;  %v96_v60 = vunpack.c.l.bf16 %v81_v51  ;;  %v91_v62 = vunpack.c.l.bf16 %v78_v54  ;;  %v79_v51 = vld [vmem:[%s2502_s1 + $0x20] ss:$36 sps:$4 sm:$0xff]  }
  0x41   :  { %1305 = vmatprep.subr.bf16.mxu0 %v1784_v2  ;;  %v154_v2 = vmul.f32 %v118_v40, %v87_v52  ;;  %v93_v53 = vunpack.c.l.bf16 %v79_v51  ;;  %v102_v54 = vunpack.c.h.bf16 %v79_v51  ;;  %v1409_v51 = vadd.s32 8, %v2068_v42 }
  0x42   :  { %1209 = vmatmul.mubr.bf16.vlgmr.msra.gmra.mrb[0].mxu1 %v291_v7  ;;  %v159_v7 = vmul.f32 %v138_v48, %v92_v63  ;;  %v1853_v63 = vld [vmem:[%s2501_s4 + $0x1c4] ss:$8 sps:$4 sm:$0xff]  }
  0x43   :  { %1295 = vmatmul.mubr.bf16.vlgmr.msra.gmra.mrb[0].mxu0 %v295_v8  ;;  %1220 = vmatpush1.bf16.msra.mxu1 %v1779_v5  ;;  %v164_v5 = vmul.f32 %v122_v39, %v97_v61  ;;  %v158_v8 = vmul.f32 %v134_v49, %v91_v62  ;;  %v160_v61 = vmul.f32 %v1511_v55, %v93_v53 }
  0x44   :  { %1306 = vmatpush1.bf16.msra.mxu0 %v1782_v6  ;;  %1221 = vmatprep.subr.bf16.mxu1 %v1787_v9  ;;  %v163_v6 = vmul.f32 %v118_v40, %v96_v60  ;;  %v1830_v9 = vld [vmem:[%s2501_s4 + $0x380] ss:$8 sps:$4 sm:$0xff]   ;;  %v1848_v60 = vld [vmem:[%s2501_s4 + $0x3b0] ss:$8 sps:$4 sm:$0xff]   ;;  %v169_v62 = vmul.f32 %v1511_v55, %v102_v54 }
  0x45   :  { %1307 = vmatprep.subr.bf16.mxu0 %v1790_v10  ;;  %v1835_v10 = vld [vmem:[%s2501_s4 + $0x194] ss:$8 sps:$4 sm:$0xff]   ;;  %v225_v33 = vadd.f32 %v2301_v59, %v158_v8  ;;  %v1839_v40 = vld [vmem:[%s2501_s4 + $0x1a0] ss:$8 sps:$4 sm:$0xff]  }
  0x47   :  { %1222 = vmatpush1.bf16.msra.mxu1 %v1785_v11  ;;  %v222_v11 = vadd.f32 %v189_v45, %v155_v1  ;;  %vm243_vm14 = vcmp.ge.f32.partialorder %v225_v33, 0.0  ;;  %v261_v39 = vmul.f32 0.01, %v225_v33 }
  0x48   :  { %1308 = vmatpush1.bf16.msra.mxu0 %v1788_v12  ;;  %1223 = vmatprep.subr.bf16.mxu1 %v1793_v13  ;;  %v221_v12 = vadd.f32 %v185_v46, %v154_v2  ;;  %v168_v13 = vmul.f32 %v138_v48, %v101_v3  ;;  %v1847_v48 = vld [vmem:[%s2501_s4 + $0x1b4] ss:$8 sps:$4 sm:$0xff]   ;;  %v1854_v3 = vld [vmem:[%s2501_s4 + $0x3c0] ss:$8 sps:$4 sm:$0xff]  }
  0x49   :  { %1309 = vmatprep.subr.bf16.mxu0 %v1796_v14  ;;  %v167_v14 = vmul.f32 %v134_v49, %v100_v58  ;;  %vm240_vm8 = vcmp.ge.f32.partialorder %v222_v11, 0.0  ;;  %v1850_v49 = vld [vmem:[%s2501_s4 + $0x3b4] ss:$8 sps:$4 sm:$0xff]   ;;  %v1851_v58 = vld [vmem:[%s2501_s4 + $0x1c0] ss:$8 sps:$4 sm:$0xff]  }
  0x4a   :  { %vm239_vm9 = vcmp.ge.f32.partialorder %v221_v12, 0.0 }
  0x4b   :  { %1224 = vmatpush1.bf16.msra.mxu1 %v1791_v15  ;;  %v1838_v15 = vld [vmem:[%s2501_s4 + $0x394] ss:$8 sps:$4 sm:$0xff]  }
  0x4c   :  { %1310 = vmatpush1.bf16.msra.mxu0 %v1794_v16  ;;  %1225 = vmatprep.subr.bf16.mxu1 %v1799_v17  ;;  %v231_v16 = vadd.f32 %v189_v45, %v164_v5  ;;  %v230_v17 = vadd.f32 %v185_v46, %v163_v6  ;;  %v2347_v46 = vsel %vm243_vm14, %v225_v33, %v261_v39  ;;  %v1859_v6 = vld [vmem:[%s2501_s4 + $0x1d4] ss:$8 sps:$4 sm:$0xff]   ;;  %v1890_v33 = vld [vmem:[%s2501_s4 + $0x450] ss:$8 sps:$4 sm:$0xff]  }
  0x4d   :  { %1311 = vmatprep.subr.bf16.mxu0 %v1802_v18  ;;  %v226_v18 = vadd.f32 %v205_v56, %v159_v7  ;;  %v1862_v7 = vld [vmem:[%s2501_s4 + $0x3d4] ss:$8 sps:$4 sm:$0xff]  }
  0x4e   :  { %vm249_vm10 = vcmp.ge.f32.partialorder %v231_v16, 0.0  ;;  %vm248_vm11 = vcmp.ge.f32.partialorder %v230_v17, 0.0 }
  0x4f   :  { %1226 = vmatpush1.bf16.msra.mxu1 %v1797_v19  ;;  %v258_v19 = vmul.f32 0.01, %v222_v11  ;;  %vm244_vm12 = vcmp.ge.f32.partialorder %v226_v18, 0.0  ;;  %v262_v32 = vmul.f32 0.01, %v226_v18 }
  0x50   :  { %1312 = vmatpush1.bf16.msra.mxu0 %v1800_v20  ;;  %1227 = vmatprep.subr.bf16.mxu1 %v1805_v21  ;;  %v257_v20 = vmul.f32 0.01, %v221_v12  ;;  %v1833_v21 = vld [vmem:[%s2501_s4 + $0x190] ss:$8 sps:$4 sm:$0xff]  }
  0x51   :  { %1313 = vmatprep.subr.bf16.mxu0 %v1808_v22  ;;  %v267_v22 = vmul.f32 0.01, %v231_v16 }
  0x53   :  { %1228 = vmatpush1.bf16.msra.mxu1 %v1803_v23  ;;  %v266_v23 = vmul.f32 0.01, %v230_v17 }
  0x54   :  { %1314 = vmatpush1.bf16.msra.mxu0 %v1806_v24  ;;  %1229 = vmatprep.subr.bf16.mxu1 %v1811_v25  ;;  %v1836_v24 = vld [vmem:[%s2501_s4 + $0x390] ss:$8 sps:$4 sm:$0xff]   ;;  %v276_v25 = vsel %vm240_vm8, %v222_v11, %v258_v19 }
  0x55   :  { %1315 = vmatprep.subr.bf16.mxu0 %v1814_v26  ;;  %v2327_v26 = vsel %vm239_vm9, %v221_v12, %v257_v20  ;;  %v2335_v31 = vsel %vm248_vm11, %v230_v17, %v266_v23  ;;  %v1857_v11 = vld [vmem:[%s2501_s4 + $0x1d0] ss:$8 sps:$4 sm:$0xff]   ;;  %v1871_v17 = vld [vmem:[%s2501_s4 + $0x1f4] ss:$8 sps:$4 sm:$0xff]  }
  0x56   :  { %v1860_v12 = vld [vmem:[%s2501_s4 + $0x3d0] ss:$8 sps:$4 sm:$0xff]   ;;  %v1880_v23 = vld [vmem:[%s2501_s4 + $0x414] ss:$8 sps:$4 sm:$0xff]  }
  0x57   :  { %1230 = vmatpush1.bf16.msra.mxu1 %v1809_v27  ;;  %v235_v27 = vadd.f32 %v205_v56, %v168_v13  ;;  %v1865_v13 = vld [vmem:[%s2501_s4 + $0x1e4] ss:$8 sps:$4 sm:$0xff]   ;;  %v1869_v19 = vld [vmem:[%s2501_s4 + $0x1f0] ss:$8 sps:$4 sm:$0xff]  }
  0x58   :  { %1316 = vmatpush1.bf16.msra.mxu0 %v1812_v28  ;;  %1231 = vmatprep.subr.bf16.mxu1 %v1817_v29  ;;  %v1841_v28 = vld [vmem:[%s2501_s4 + $0x1a4] ss:$8 sps:$4 sm:$0xff]   ;;  %v1872_v20 = vld [vmem:[%s2501_s4 + $0x3f0] ss:$8 sps:$4 sm:$0xff]  }
  0x59   :  { %1317 = vmatprep.subr.bf16.mxu0 %v1820_v30  ;;  %v1844_v29 = vld [vmem:[%s2501_s4 + $0x3a4] ss:$8 sps:$4 sm:$0xff]   ;;  %v285_v30 = vsel %vm249_vm10, %v231_v16, %v267_v22  ;;  %vm253_vm13 = vcmp.ge.f32.partialorder %v235_v27, 0.0  ;;  %v1866_v16 = vld [vmem:[%s2501_s4 + $0x3e0] ss:$8 sps:$4 sm:$0xff]  }
  0x5a   :  { %v294_v34 = vpack.c.bf16 %v285_v30, %v276_v25  ;;  %v1875_v22 = vld [vmem:[%s2501_s4 + $0x400] ss:$8 sps:$4 sm:$0xff]   ;;  %v1899_v25 = vmov 0   ;;  %v1889_v30 = vld [vmem:[%s2501_s4 + $0x444] ss:$8 sps:$4 sm:$0xff]  }
  0x5b   :  { %1232 = vmatpush1.bf16.msra.mxu1 %v1815_v35  ;;  %v293_v35 = vpack.c.bf16 %v2335_v31, %v2327_v26  ;;  %v1886_v26 = vld [vmem:[%s2501_s4 + $0x434] ss:$8 sps:$4 sm:$0xff]   ;;  %v1887_v31 = vld [vmem:[%s2501_s4 + $0x440] ss:$8 sps:$4 sm:$0xff]  }
  0x5c   :  { %1318 = vmatpush1.bf16.msra.mxu0 %v1818_v36  ;;  %1233 = vmatprep.subr.bf16.mxu1 %v1823_v37  ;;  %v271_v36 = vmul.f32 0.01, %v235_v27  ;;  %v280_v37 = vsel %vm244_vm12, %v226_v18, %v262_v32  ;;  %v1874_v18 = vld [vmem:[%s2501_s4 + $0x3f4] ss:$8 sps:$4 sm:$0xff]  }
  0x5d   :  { %1319 = vmatprep.subr.bf16.mxu0 %v1826_v38  ;;  %v234_v38 = vadd.f32 %v2301_v59, %v167_v14  ;;  %1251 = vmatprep.mubr.bf16.mxu1 %v294_v34  ;;  %v1512_v59 = vld [vmem:[%s2504_s3 + $0x8] ss:$0 sm:$0xff]  ;;  %v1868_v14 = vld [vmem:[%s2501_s4 + $0x3e4] ss:$8 sps:$4 sm:$0xff]   ;;  %v1892_v32 = vld [vmem:[%s2501_s4 + $0x454] ss:$8 sps:$4 sm:$0xff]  }
  0x5e   :  { %v227_v1 = vadd.f32 %v1512_v59, %v160_v61  ;;  %v236_v2 = vadd.f32 %v1512_v59, %v169_v62  ;;  %v1895_v34 = vld [vmem:[%s2501_s4 + $0x464] ss:$8 sps:$4 sm:$0xff]  }
  0x5f   :  { %1234 = vmatpush1.bf16.msra.mxu1 %v1821_v41  ;;  %v1842_v41 = vld [vmem:[%s2501_s4 + $0x3a0] ss:$8 sps:$4 sm:$0xff]   ;;  %vm252_vm15 = vcmp.ge.f32.partialorder %v234_v38, 0.0  ;;  %v270_v45 = vmul.f32 0.01, %v234_v38 }
  0x60   :  { %1320 = vmatpush1.bf16.msra.mxu0 %v1824_v43  ;;  %1235 = vmatprep.subr.bf16.mxu1 %v1829_v57  ;;  %v289_v43 = vsel %vm253_vm13, %v235_v27, %v271_v36  ;;  %v1845_v57 = vld [vmem:[%s2501_s4 + $0x1b0] ss:$8 sps:$4 sm:$0xff]   ;;  %vm245_vm0 = vcmp.ge.f32.partialorder %v227_v1, 0.0  ;;  %vm254_vm1 = vcmp.ge.f32.partialorder %v236_v2, 0.0  ;;  %v272_v5 = vmul.f32 0.01, %v236_v2 }
  0x61   :  { %1321 = vmatprep.subr.bf16.mxu0 %v1832_v0  ;;  %v298_v44 = vpack.c.bf16 %v289_v43, %v280_v37  ;;  %v288_v52 = vsel %vm252_vm15, %v234_v38, %v270_v45  ;;  %v1856_v0 = vld [vmem:[%s2501_s4 + $0x3c4] ss:$8 sps:$4 sm:$0xff]   ;;  %v1898_v36 = vld [vmem:[%s2501_s4 + $0x474] ss:$8 sps:$4 sm:$0xff]   ;;  %v1896_v37 = vld [vmem:[%s2501_s4 + $0x470] ss:$8 sps:$4 sm:$0xff]  }
  0x62   :  { %v297_v56 = vpack.c.bf16 %v288_v52, %v2347_v46  ;;  %v1883_v27 = vld [vmem:[%s2501_s4 + $0x424] ss:$8 sps:$4 sm:$0xff]   ;;  %v444_v38 = vld [vmem:[%s2505_s5] sm:$0x3] }
  0x63   :  { %1236 = vmatpush1.bf16.msra.mxu1 %v1827_v4  ;;  %1337 = vmatprep.mubr.bf16.mxu0 %v298_v44  ;;  %v263_v4 = vmul.f32 0.01, %v227_v1  ;;  %v449_v39 = vrot.slane %v444_v38, %v2090_v50 }
  0x64   :  { %1322 = vmatpush1.bf16.msra.mxu0 %v1830_v9  ;;  %1237 = vmatprep.subr.bf16.mxu1 %v1835_v10  ;;  %v290_v9 = vsel %vm254_vm1, %v236_v2, %v272_v5 }
  0x65   :  { %1323 = vmatprep.subr.bf16.mxu0 %v1838_v15  ;;  %v2389_v8 = vsel %vm245_vm0, %v227_v1, %v263_v4  ;;  %v1863_v15 = vld [vmem:[%s2501_s4 + $0x1e0] ss:$8 sps:$4 sm:$0xff]  }
  0x66   :  { %v299_v10 = vpack.c.bf16 %v290_v9, %v2389_v8 }
  0x67   :  { %1238 = vmatpush1.bf16.msra.mxu1 %v1833_v21  ;;  %v1877_v21 = vld [vmem:[%s2501_s4 + $0x404] ss:$8 sps:$4 sm:$0xff]  }
  0x68   :  { %1324 = vmatpush1.bf16.msra.mxu0 %v1836_v24  ;;  %1239 = vmatprep.subr.bf16.mxu1 %v1841_v28  ;;  %v1878_v24 = vld [vmem:[%s2501_s4 + $0x410] ss:$8 sps:$4 sm:$0xff]   ;;  %v1881_v28 = vld [vmem:[%s2501_s4 + $0x420] ss:$8 sps:$4 sm:$0xff]  }
  0x69   :  { %1325 = vmatprep.subr.bf16.mxu0 %v1844_v29  ;;  %v1884_v29 = vld [vmem:[%s2501_s4 + $0x430] ss:$8 sps:$4 sm:$0xff]  }
  0x6b   :  { %1240 = vmatpush1.bf16.msra.mxu1 %v1839_v40 }
  0x6c   :  { %1326 = vmatpush1.bf16.msra.mxu0 %v1842_v41  ;;  %1241 = vmatprep.subr.bf16.mxu1 %v1847_v48  ;;  %v453_v48 = vrot.slane %v444_v38, %v2083_v47 }
  0x6d   :  { %1327 = vmatprep.subr.bf16.mxu0 %v1850_v49  ;;  %v1414_v49 = vstv %s2506_s0 }
  0x6e   :  { %vm1415_vm2 = vcmp.lt.s32.totalorder %v2068_v42, %v1414_v49  ;;  %vm1416_vm3 = vcmp.lt.s32.totalorder %v1409_v51, %v1414_v49 }
  0x6f   :  { %1242 = vmatpush1.bf16.msra.mxu1 %v1845_v57 }
  0x70   :  { %1328 = vmatpush1.bf16.msra.mxu0 %v1848_v60  ;;  %1243 = vmatprep.subr.bf16.mxu1 %v1853_v63 }
  0x71   :  { %1329 = vmatprep.subr.bf16.mxu0 %v1856_v0 }
  0x73   :  { %1244 = vmatpush1.bf16.msra.mxu1 %v1851_v58 }
  0x74   :  { %1330 = vmatpush1.bf16.msra.mxu0 %v1854_v3  ;;  %1245 = vmatprep.subr.bf16.mxu1 %v1859_v6 }
  0x75   :  { %1331 = vmatprep.subr.bf16.mxu0 %v1862_v7 }
  0x77   :  { %1246 = vmatpush1.bf16.msra.mxu1 %v1857_v11 }
  0x78   :  { %1332 = vmatpush1.bf16.msra.mxu0 %v1860_v12  ;;  %1247 = vmatprep.subr.bf16.mxu1 %v1865_v13 }
  0x79   :  { %1333 = vmatprep.subr.bf16.mxu0 %v1868_v14 }
  0x7b   :  { %1248 = vmatpush1.bf16.msra.mxu1 %v1863_v15 }
  0x7c   :  { %1334 = vmatpush1.bf16.msra.mxu0 %v1866_v16  ;;  %1249 = vmatprep.subr.bf16.mxu1 %v1871_v17 }
  0x7d   :  { %1335 = vmatprep.subr.bf16.mxu0 %v1874_v18 }
  0x7f   :  { %1250 = vmatpush1.bf16.msra.mxu1 %v1869_v19 }
  0x80   :  { %1336 = vmatpush1.bf16.msra.mxu0 %v1872_v20 }
  0x81   :  { %1348 = vmatprep.subr.bf16.mxu0 %v1877_v21 }
  0x82   :  { %1252 = vmatmul.mubr.bf16.vlgmr.msra.gmra.mrb[0].mxu1 %v293_v35  ;;  %v1893_v35 = vld [vmem:[%s2501_s4 + $0x460] ss:$8 sps:$4 sm:$0xff]  }
  0x83   :  { %1338 = vmatmul.mubr.bf16.vlgmr.msra.gmra.mrb[0].mxu0 %v297_v56 }
  0x84   :  { %1349 = vmatpush1.bf16.msra.mxu0 %v1875_v22  ;;  %1380 = vmatprep.mubr.bf16.mxu0 %v1899_v25 }
  0x85   :  { %1350 = vmatprep.subr.bf16.mxu0 %v1880_v23 }
  0x88   :  { %1351 = vmatpush1.bf16.msra.mxu0 %v1878_v24 }
  0x89   :  { %1352 = vmatprep.subr.bf16.mxu0 %v1883_v27 }
  0x8c   :  { %1353 = vmatpush1.bf16.msra.mxu0 %v1881_v28 }
  0x8d   :  { %1354 = vmatprep.subr.bf16.mxu0 %v1886_v26 }
  0x90   :  { %1355 = vmatpush1.bf16.msra.mxu0 %v1884_v29 }
  0x91   :  { %1356 = vmatprep.subr.bf16.mxu0 %v1889_v30 }
  0x94   :  { %1357 = vmatpush1.bf16.msra.mxu0 %v1887_v31 }
  0x95   :  { %1358 = vmatprep.subr.bf16.mxu0 %v1892_v32 }
  0x98   :  { %1359 = vmatpush1.bf16.msra.mxu0 %v1890_v33 }
  0x99   :  { %1360 = vmatprep.subr.bf16.mxu0 %v1895_v34 }
  0x9c   :  { %1361 = vmatpush1.bf16.msra.mxu0 %v1893_v35 }
  0x9d   :  { %1362 = vmatprep.subr.bf16.mxu0 %v1898_v36 }
  0xa0   :  { %1363 = vmatpush1.bf16.msra.mxu0 %v1896_v37 }
  0xa3   :  { %1381 = vmatmul.mubr.bf16.vlgmr.msra.gmra.mrb[0].mxu0 %v299_v10 }
 0x155   :  { %v1253_v40 = vpop.f32.mrb[0].mxu1 }
 0x156   :  { %v1661_v41 = vadd.f32 %v1253_v40, %v449_v39  ;;  %v1255_v43 = vpop.f32.mrb[1].mxu1 }
 0x157   :  { %v1257_v44 = vpop.f32.mrb[2].mxu1  ;;  %v1663_v52 = vadd.f32 %v1255_v43, %v453_v48 }
 0x158   :  { %v1665_v45 = vadd.f32 %v1257_v44, %v449_v39  ;;  %v1259_v46 = vpop.f32.mrb[3].mxu1 }
 0x159   :  { %v1667_v55 = vadd.f32 %v1259_v46, %v453_v48 }
 0x176   :  { %v1382_v53 = vpop.f32.mrb[0].mxu0 }
 0x177   :  { %v1662_v54 = vadd.f32 %v1661_v41, %v1382_v53  ;;  %v1384_v50 = vpop.f32.mrb[1].mxu0 }
 0x178   :  { %v1664_v56 = vadd.f32 %v1663_v52, %v1384_v50  ;;  %v1386_v59 = vpop.f32.mrb[2].mxu0 }
 0x179   :  { %v1421_v57 = vsel %vm1415_vm2, %v1662_v54, 0.0  ;;  %v1666_v60 = vadd.f32 %v1665_v45, %v1386_v59  ;;  %v1388_v61 = vpop.f32.mrb[3].mxu0 }
 0x17a   :  { %v1659_v47 = vpack.c.bf16 %v1664_v56, %v1662_v54  ;;  %v1422_v62 = vsel %vm1415_vm2, %v1664_v56, 0.0  ;;  %v1668_v63 = vadd.f32 %v1667_v55, %v1388_v61  ;;  %v1447_v0 = vmul.f32 %v1421_v57, %v1421_v57 }
 0x17b   :  { %v1423_v1 = vsel %vm1416_vm3, %v1666_v60, 0.0  ;;  %v1448_v4 = vmul.f32 %v1422_v62, %v1422_v62 }
 0x17c   :  { %1403 = vst [vmem:[%s2507_s6] sm:$0xff] %v1659_v47  ;;  %v1427_v2 = vadd.f32 %v1423_v1, %v1421_v57  ;;  %v1449_v42 = vmul.f32 %v1423_v1, %v1423_v1  ;;  %v1660_v58 = vpack.c.bf16 %v1668_v63, %v1666_v60  ;;  %v1424_v3 = vsel %vm1416_vm3, %v1668_v63, 0.0 }
 0x17d   :  { %v1434_v5 = vadd.f32 %v1424_v3, %v1422_v62  ;;  %v1450_v6 = vmul.f32 %v1424_v3, %v1424_v3 }
 0x17e   :  { %v1428_v7 = vrot.slane %v1427_v2, 4  ;;  %v1451_v8 = vadd.f32 %v1449_v42, %v1447_v0  ;;  %1404 = vst [vmem:[%s2507_s6 + $0x8] sm:$0xff] %v1660_v58 }
 0x17f   :  { %v1435_v9 = vrot.slane %v1434_v5, 4  ;;  %v1458_v10 = vadd.f32 %v1450_v6, %v1448_v4 }
 0x180   :  { %v1429_v11 = vadd.f32 %v1428_v7, %v1427_v2  ;;  %v1452_v12 = vrot.slane %v1451_v8, 4 }
 0x181   :  { %v1436_v13 = vadd.f32 %v1435_v9, %v1434_v5  ;;  %v1459_v14 = vrot.slane %v1458_v10, 4 }
 0x182   :  { %v1430_v15 = vrot.slane %v1429_v11, 2  ;;  %v1453_v16 = vadd.f32 %v1452_v12, %v1451_v8 }
 0x183   :  { %v1437_v17 = vrot.slane %v1436_v13, 2  ;;  %v1460_v18 = vadd.f32 %v1459_v14, %v1458_v10 }
 0x184   :  { %v1431_v19 = vadd.f32 %v1430_v15, %v1429_v11  ;;  %v1454_v20 = vrot.slane %v1453_v16, 2 }
 0x185   :  { %v1438_v21 = vadd.f32 %v1437_v17, %v1436_v13  ;;  %v1461_v22 = vrot.slane %v1460_v18, 2 }
 0x186   :  { %v1432_v23 = vrot.slane %v1431_v19, 1  ;;  %v1455_v24 = vadd.f32 %v1454_v20, %v1453_v16 }
 0x187   :  { %v1439_v25 = vrot.slane %v1438_v21, 1  ;;  %v1462_v27 = vadd.f32 %v1461_v22, %v1460_v18 }
 0x188   :  { %v1433_v28 = vadd.f32 %v1432_v23, %v1431_v19  ;;  %v1456_v26 = vrot.slane %v1455_v24, 1 }
 0x189   :  { %v1440_v29 = vadd.f32 %v1439_v25, %v1438_v21  ;;  %v1463_v30 = vrot.slane %v1462_v27, 1 }
 0x18a   :  { %v1457_v31 = vadd.f32 %v1456_v26, %v1455_v24  ;;  %1443 = vst [vmem:[%s2508_s7] sm:$0xff] %v1433_v28 }
 0x18b   :  { %v1464_v32 = vadd.f32 %v1463_v30, %v1462_v27  ;;  %1444 = vst [vmem:[%s2508_s7 + $0x8] sm:$0xff] %v1440_v29 }
 0x18c   :  { %1467 = vst [vmem:[%s2509_s8] sm:$0xff] %v1457_v31 }
 0x18d   :  { %1468 = vst [vmem:[%s2509_s8 + $0x8] sm:$0xff] %v1464_v32 }

// kernel: encoder_forward.9
= control target key start
LH: loop header
LB: loop body
LE: loop exit
PB: predicated region body
PF: predicated region fallthrough
CT: control target
= control target key end

     0   :  { %v29_v5 = vlaneseq  ;;  %s409_s3 = inlined_call_operand.vmem [shape: bf16[256,128], index: 3, kind: input, shape index: {}]   ;;  %s410_s0 = inlined_call_operand.vmem [shape: bf16[16,256], index: 0, kind: input, shape index: {}]   ;;  %s411_s1 = inlined_call_operand.vmem [shape: f32[1,256], index: 1, kind: input, shape index: {}]   ;;  %s412_s2 = inlined_call_operand.vmem [shape: f32[1,256], index: 2, kind: input, shape index: {}]   ;;  %s413_s4 = inlined_call_operand.vmem [shape: f32[1,128], index: 4, kind: input, shape index: {}]   ;;  %s414_s5 = inlined_call_operand.vmem [shape: f32[16,128], index: 5, kind: output, shape index: {}]  }
   0x1   :  { %v294_v0 = vld [vmem:[%s409_s3 + $0x40] sm:$0xff]   ;;  %v296_v2 = vld [vmem:[%s409_s3 + $0x48] sm:$0xff]   ;;  %v298_v4 = vld [vmem:[%s409_s3 + $0x50] sm:$0xff]  }
   0x2   :  { %v295_v1 = vld [vmem:[%s409_s3] sm:$0xff]   ;;  %272 = vmatprep.subr.bf16.mxu0 %v294_v0  ;;  %v297_v3 = vld [vmem:[%s409_s3 + $0x8] sm:$0xff]   ;;  %v299_v6 = vld [vmem:[%s409_s3 + $0x10] sm:$0xff]   ;;  %v30_v8 = vshrl.u32 %v29_v5, 7 }
   0x3   :  { %273 = vmatpush3.bf16.msra.mxu0 %v295_v1  ;;  %v300_v7 = vld [vmem:[%s409_s3 + $0x58] sm:$0xff]   ;;  %v302_v10 = vld [vmem:[%s409_s3 + $0x60] sm:$0xff]   ;;  %v304_v14 = vld [vmem:[%s409_s3 + $0x68] sm:$0xff]  }
   0x4   :  { %274 = vmatprep.subr.bf16.mxu0 %v296_v2  ;;  %v301_v9 = vld [vmem:[%s409_s3 + $0x18] sm:$0xff]   ;;  %v31_v11 = vsub.s32 0, %v30_v8  ;;  %v303_v12 = vld [vmem:[%s409_s3 + $0x20] sm:$0xff]   ;;  %v35_v13 = vsub.s32 1, %v30_v8  ;;  %v22_v16 = vld [vmem:[%s410_s0 + $0x8] sm:$0xff] }
   0x5   :  { %v21_v15 = vld [vmem:[%s410_s0] sm:$0xff]  ;;  %v25_v20 = vunpack.c.l.bf16 %v22_v16  ;;  %v26_v21 = vunpack.c.h.bf16 %v22_v16  ;;  %v305_v27 = vld [vmem:[%s409_s3 + $0x28] sm:$0xff]   ;;  %v306_v28 = vld [vmem:[%s409_s3 + $0x70] sm:$0xff]  }
   0x6   :  { %v27_v17 = vld [vmem:[%s411_s1] sm:$0x3]  ;;  %v23_v18 = vunpack.c.l.bf16 %v21_v15  ;;  %v24_v19 = vunpack.c.h.bf16 %v21_v15  ;;  %v307_v37 = vld [vmem:[%s409_s3 + $0x30] sm:$0xff]   ;;  %v308_v38 = vld [vmem:[%s409_s3 + $0x78] sm:$0xff]  }
   0x7   :  { %275 = vmatpush3.bf16.msra.mxu0 %v297_v3  ;;  %v43_v22 = vld [vmem:[%s412_s2] sm:$0x3]  ;;  %v32_v23 = vrot.slane %v27_v17, %v31_v11  ;;  %v36_v24 = vrot.slane %v27_v17, %v35_v13  ;;  %v309_v45 = vld [vmem:[%s409_s3 + $0x38] sm:$0xff]  }
   0x8   :  { %276 = vmatprep.subr.bf16.mxu0 %v298_v4  ;;  %v48_v25 = vrot.slane %v43_v22, %v31_v11  ;;  %v52_v26 = vrot.slane %v43_v22, %v35_v13  ;;  %v255_v51 = vld [vmem:[%s413_s4] ss:$0 sm:$0xff] }
   0x9   :  { %v40_v29 = vmul.f32 %v36_v24, %v24_v19  ;;  %v42_v30 = vmul.f32 %v36_v24, %v26_v21  ;;  %v39_v31 = vmul.f32 %v32_v23, %v23_v18  ;;  %v41_v32 = vmul.f32 %v32_v23, %v25_v20 }
   0xb   :  { %277 = vmatpush3.bf16.msra.mxu0 %v299_v6  ;;  %v56_v33 = vadd.f32 %v52_v26, %v40_v29  ;;  %v58_v34 = vadd.f32 %v52_v26, %v42_v30  ;;  %v55_v35 = vadd.f32 %v48_v25, %v39_v31  ;;  %v57_v36 = vadd.f32 %v48_v25, %v41_v32 }
   0xc   :  { %278 = vmatprep.subr.bf16.mxu0 %v300_v7 }
   0xd   :  { %vm60_vm0 = vcmp.ge.f32.partialorder %v56_v33, 0.0  ;;  %vm62_vm1 = vcmp.ge.f32.partialorder %v58_v34, 0.0  ;;  %v64_v39 = vmul.f32 0.01, %v56_v33  ;;  %v66_v40 = vmul.f32 0.01, %v58_v34 }
   0xe   :  { %vm59_vm2 = vcmp.ge.f32.partialorder %v55_v35, 0.0  ;;  %vm61_vm3 = vcmp.ge.f32.partialorder %v57_v36, 0.0  ;;  %v63_v41 = vmul.f32 0.01, %v55_v35  ;;  %v65_v42 = vmul.f32 0.01, %v57_v36 }
   0xf   :  { %279 = vmatpush3.bf16.msra.mxu0 %v301_v9  ;;  %v68_v43 = vsel %vm60_vm0, %v56_v33, %v64_v39  ;;  %v70_v44 = vsel %vm62_vm1, %v58_v34, %v66_v40 }
  0x10   :  { %280 = vmatprep.subr.bf16.mxu0 %v302_v10  ;;  %v72_v46 = vpack.c.bf16 %v70_v44, %v68_v43  ;;  %v67_v47 = vsel %vm59_vm2, %v55_v35, %v63_v41  ;;  %v69_v48 = vsel %vm61_vm3, %v57_v36, %v65_v42 }
  0x11   :  { %v71_v49 = vpack.c.bf16 %v69_v48, %v67_v47 }
  0x12   :  { %240 = vmatprep.mubr.bf16.mxu0 %v72_v46 }
  0x13   :  { %281 = vmatpush3.bf16.msra.mxu0 %v303_v12 }
  0x14   :  { %282 = vmatprep.subr.bf16.mxu0 %v304_v14 }
  0x17   :  { %283 = vmatpush3.bf16.msra.mxu0 %v305_v27 }
  0x18   :  { %284 = vmatprep.subr.bf16.mxu0 %v306_v28 }
  0x1b   :  { %285 = vmatpush3.bf16.msra.mxu0 %v307_v37 }
  0x1c   :  { %286 = vmatprep.subr.bf16.mxu0 %v308_v38 }
  0x1f   :  { %287 = vmatpush3.bf16.msra.mxu0 %v309_v45 }
  0x22   :  { %241 = vmatmul.mubr.bf16.vlgmr.msra.gmra.mrb[0].mxu0 %v71_v49 }
  0xf5   :  { %v288_v50 = vpop.f32.mrb[0].mxu0 }
  0xf6   :  { %v289_v52 = vpop.f32.mrb[1].mxu0 }
  0xf7   :  { %v290_v53 = vadd.f32 %v289_v52, %v288_v50  ;;  %v291_v54 = vpop.f32.mrb[2].mxu0 }
  0xf8   :  { %v292_v55 = vpop.f32.mrb[3].mxu0 }
  0xf9   :  { %v243_v56 = vadd.f32 %v290_v53, %v255_v51  ;;  %v293_v57 = vadd.f32 %v292_v55, %v291_v54 }
  0xfb   :  { %249 = vst [vmem:[%s414_s5] sm:$0xff] %v243_v56  ;;  %v246_v58 = vadd.f32 %v293_v57, %v255_v51 }
  0xfd   :  { %250 = vst [vmem:[%s414_s5 + $0x8] sm:$0xff] %v246_v58 }

</bundles_post_ra>
